<compile_context>
chip_gen: v7x
topology: tpu7x:2x2x1
jax: 0.10.0
libtpu: 0.0.40
codegen_flags: <defaults>
</compile_context>

<pallas_src>
import jax
import jax.numpy as jnp
from jax.experimental import pallas as pl
from jax.experimental.pallas import tpu as pltpu

K_CHEB = 4  # ChebConv(K=4)


def gcrnn_gcn_kernel(x_ref, Lc_ref, Ag_ref, WA_ref, bA_ref, WB_ref, bB_ref,
                     W1_ref, b1_ref, W2_ref, b2_ref, Wfc_ref, bfc_ref, S_ref,
                     y_ref, zcat_ref):
    """Whole GCRNNGCN forward in one invocation (everything resident in VMEM).

    x_ref   : (N, T)            node signal (inChannels = 1), time in lanes
    Lc_ref  : (N, N)            ChebConv scaled Laplacian  -D^-1/2 A D^-1/2
    Ag_ref  : (N, N)            GCNConv  D^-1/2 (A + I) D^-1/2
    WA_ref  : (K, Ch)           ChebConv A weights (inChannels==1 squeezed)
    WB_ref  : (K*Ch, Ch)        ChebConv B weights, K matmuls pre-fused
    W1/W2   : GCN weights, Wfc_ref: (Co2, N, nCls) fc weight tiled per node
    S_ref   : (B, N)            batch-segment selector (1 iff node in sample)
    zcat_ref: (N, K*Ch)         VMEM scratch for the fused Cheb contraction
    """
    f32 = jnp.float32
    X = x_ref[...]                                  # (N, T)
    L = Lc_ref[...]                                 # (N, N)
    N, T = X.shape
    Ch = WA_ref.shape[1]

    # ---- x-path ChebConv hoisted out of the recurrence (no h dependence) ---
    # Z_k = T_k(L) @ X for all time steps at once: 3 (N,N)@(N,T) matmuls total.
    Z0 = X
    Z1 = jnp.dot(L, Z0, preferred_element_type=f32)
    Z2 = 2.0 * jnp.dot(L, Z1, preferred_element_type=f32) - Z0
    Z3 = 2.0 * jnp.dot(L, Z2, preferred_element_type=f32) - Z1

    WAr = WA_ref[...]                               # (K, Ch)
    WBf = WB_ref[...]                               # (K*Ch, Ch)
    bias = bA_ref[...] + bB_ref[...]                # (1, Ch) fused bias

    # ---- recurrence: T is small & static -> fully unrolled, h in registers --
    h = jnp.zeros((N, Ch), f32)                     # h0 = zeros (init_hidden)
    for t in range(T):
        # input path: rank-1 outer products stay on the VPU (no MXU)
        a_t = (Z0[:, t:t + 1] * WAr[0:1, :] + Z1[:, t:t + 1] * WAr[1:2, :]
               + Z2[:, t:t + 1] * WAr[2:3, :] + Z3[:, t:t + 1] * WAr[3:4, :])
        # hidden path: Chebyshev recurrence (serial in t); the K weight
        # matmuls are fused into a single (N, K*Ch) @ (K*Ch, Ch) MXU op.
        z0 = h
        z1 = jnp.dot(L, z0, preferred_element_type=f32)
        z2 = 2.0 * jnp.dot(L, z1, preferred_element_type=f32) - z0
        z3 = 2.0 * jnp.dot(L, z2, preferred_element_type=f32) - z1
        zcat_ref[:, 0 * Ch:1 * Ch] = z0
        zcat_ref[:, 1 * Ch:2 * Ch] = z1
        zcat_ref[:, 2 * Ch:3 * Ch] = z2
        zcat_ref[:, 3 * Ch:4 * Ch] = z3
        b_t = jnp.dot(zcat_ref[...], WBf, preferred_element_type=f32)
        h = jax.nn.sigmoid(a_t + b_t + bias)

    # ---- GCN readout on the final hidden state -----------------------------
    A = Ag_ref[...]                                 # (N, N)
    z = jnp.dot(A, jnp.dot(h, W1_ref[...], preferred_element_type=f32),
                preferred_element_type=f32) + b1_ref[...]
    z = jnp.maximum(z, 0.0)
    z = jnp.dot(A, jnp.dot(z, W2_ref[...], preferred_element_type=f32),
                preferred_element_type=f32) + b2_ref[...]
    z = jnp.maximum(z, 0.0)                         # (N, Co2)

    # ---- classifier: Linear over the per-sample flattened nodes + logsoftmax
    # logits[b, c] = sum_{n, j} z[b*nN + n, j] * Wfc[n*Co2 + j, c]
    # Implemented with no in-kernel reshape: per-feature broadcast into a
    # per-node contribution, then a batch-segment sum via the selector S.
    Co2 = z.shape[1]
    contrib = z[:, 0:1] * Wfc_ref[0]                # (N, nCls)
    for j in range(1, Co2):
        contrib = contrib + z[:, j:j + 1] * Wfc_ref[j]
    logits = jnp.dot(S_ref[...], contrib,
                     preferred_element_type=f32) + bfc_ref[...]   # (B, nCls)
    m = jnp.max(logits, axis=1, keepdims=True)
    lse = jnp.log(jnp.sum(jnp.exp(logits - m), axis=1, keepdims=True)) + m
    y_ref[...] = (logits - lse).astype(y_ref.dtype)


def gcrnn_gcn_forward(x_nt, L_cheb, A_gcn, params, batch_size, num_nodes):
    """Host wrapper: reshapes weights to the kernel layouts and calls Pallas."""
    WA, bA, WB, bB, W1, b1, W2, b2, Wfc, bfc = params
    N, _ = x_nt.shape
    Ch = WA.shape[-1]
    Co2 = W2.shape[-1]
    n_cls = Wfc.shape[-1]

    WA2 = WA.reshape(K_CHEB, Ch)                    # inChannels == 1 squeezed
    WBf = WB.reshape(K_CHEB * Ch, Ch)               # fused K weight matmuls
    # fc weight laid out per (feature j, node i): Wbig[j, i, c]
    Wbig = jnp.transpose(
        jnp.tile(Wfc.reshape(num_nodes, Co2, n_cls), (batch_size, 1, 1)),
        (1, 0, 2))                                  # (Co2, N, n_cls)
    # batch-segment selector: S[b, i] = 1 iff node i belongs to sample b
    S = jnp.repeat(jnp.eye(batch_size, dtype=jnp.float32), num_nodes, axis=1)

    args = (x_nt, L_cheb, A_gcn, WA2, bA, WBf, bB, W1, b1, W2, b2, Wbig, bfc, S)
    vmem = pl.BlockSpec(memory_space=pltpu.MemorySpace.VMEM)  # whole array
    return pl.pallas_call(
        gcrnn_gcn_kernel,
        out_shape=jax.ShapeDtypeStruct((batch_size, n_cls), jnp.float32),
        in_specs=[vmem] * len(args),
        out_specs=vmem,
        scratch_shapes=[pltpu.VMEM((N, K_CHEB * Ch), jnp.float32)],
    )(*args)


# ---------------------- host-side graph-operator builders --------------------
def build_cheb_lhat(edge_index, edge_weight, num_nodes):
    """PyG ChebConv ('sym', lambda_max=2): L_hat = -D^-1/2 A D^-1/2 (dense)."""
    row, col = edge_index[0], edge_index[1]
    deg = jnp.zeros((num_nodes,), jnp.float32).at[row].add(edge_weight)
    dis = jnp.where(deg > 0.0, jax.lax.rsqrt(deg), 0.0)
    norm = -dis[row] * edge_weight * dis[col]
    return jnp.zeros((num_nodes, num_nodes), jnp.float32).at[col, row].add(norm)


def build_gcn_ahat(edge_index, edge_weight, num_nodes):
    """PyG GCNConv default: A_hat = D^-1/2 (A + I) D^-1/2 (dense)."""
    loop = jnp.arange(num_nodes, dtype=edge_index.dtype)
    row = jnp.concatenate([edge_index[0], loop])
    col = jnp.concatenate([edge_index[1], loop])
    w = jnp.concatenate([edge_weight, jnp.ones((num_nodes,), jnp.float32)])
    deg = jnp.zeros((num_nodes,), jnp.float32).at[col].add(w)
    dis = jnp.where(deg > 0.0, jax.lax.rsqrt(deg), 0.0)
    norm = dis[row] * w * dis[col]
    return jnp.zeros((num_nodes, num_nodes), jnp.float32).at[col, row].add(norm)


def glorot(key, shape):
    fan_in, fan_out = shape[-2], shape[-1]
    bound = jnp.sqrt(6.0 / (fan_in + fan_out))
    return jax.random.uniform(key, shape, jnp.float32, -bound, bound)


# --------------------------- pure-JAX reference ------------------------------
def reference(x_nt, L_hat, A_hat, params, batch_size, num_nodes):
    """High-precision pure-JAX implementation of the PyTorch forward."""
    WA, bA, WB, bB, W1, b1, W2, b2, Wfc, bfc = params
    hp = jax.lax.Precision.HIGHEST
    N, T = x_nt.shape
    Ch = WA.shape[-1]

    def cheb(z, W, b):
        z0 = z
        out = jnp.dot(z0, W[0], precision=hp)
        z1 = jnp.dot(L_hat, z0, precision=hp)
        out = out + jnp.dot(z1, W[1], precision=hp)
        zm2, zm1 = z0, z1
        for k in range(2, K_CHEB):
            zk = 2.0 * jnp.dot(L_hat, zm1, precision=hp) - zm2
            out = out + jnp.dot(zk, W[k], precision=hp)
            zm2, zm1 = zm1, zk
        return out + b

    h = jnp.zeros((N, Ch), jnp.float32)
    for t in range(T):
        xt = x_nt[:, t:t + 1]
        h = jax.nn.sigmoid(cheb(xt, WA, bA) + cheb(h, WB, bB))

    def gcn(v, W, b):
        return jnp.dot(A_hat, jnp.dot(v, W, precision=hp), precision=hp) + b

    z = jax.nn.relu(gcn(h, W1, b1))
    z = jax.nn.relu(gcn(z, W2, b2))
    zb = z.reshape(batch_size, num_nodes * z.shape[1])
    logits = jnp.dot(zb, Wfc, precision=hp) + bfc
    return jax.nn.log_softmax(logits, axis=1)


if __name__ == "__main__":
    batch_size, num_nodes, T = 2, 16, 8
    hidden_c, out_c, n_classes = 8, 8, 4          # inChannels = 1
    out_c_half = out_c // 2
    N = batch_size * num_nodes                    # batched block-diagonal graph

    key = jax.random.PRNGKey(0)
    (kx, kw, kA, kB, k1, k2, kf,
     kbA, kbB, kb1, kb2, kbf) = jax.random.split(key, 12)

    # node signal over time, x[n, t]
    x_nt = jax.random.normal(kx, (N, T), jnp.float32)

    # block-diagonal batched graph: one undirected weighted ring per sample
    src = jnp.arange(num_nodes, dtype=jnp.int32)
    dst = (src + 1) % num_nodes
    w = jax.random.uniform(kw, (num_nodes,), jnp.float32, 0.5, 1.5)
    ei_one = jnp.concatenate([jnp.stack([src, dst]), jnp.stack([dst, src])], 1)
    ew_one = jnp.concatenate([w, w])
    edge_index = jnp.concatenate(
        [ei_one + b * num_nodes for b in range(batch_size)], axis=1)
    edge_weight = jnp.concatenate([ew_one] * batch_size)

    L_cheb = build_cheb_lhat(edge_index, edge_weight, N)
    A_gcn = build_gcn_ahat(edge_index, edge_weight, N)

    # parameters (glorot weights, small random biases), deterministic
    WA = glorot(kA, (K_CHEB, 1, hidden_c))               # ChebConv A: 1 -> Ch
    WB = glorot(kB, (K_CHEB, hidden_c, hidden_c))        # ChebConv B: Ch -> Ch
    W1 = glorot(k1, (hidden_c, out_c))                   # GCNConv phi1
    W2 = glorot(k2, (out_c, out_c_half))                 # GCNConv phi2
    Wfc = glorot(kf, (num_nodes * out_c_half, n_classes))  # final Linear
    bA = 0.1 * jax.random.normal(kbA, (1, hidden_c), jnp.float32)
    bB = 0.1 * jax.random.normal(kbB, (1, hidden_c), jnp.float32)
    b1 = 0.1 * jax.random.normal(kb1, (1, out_c), jnp.float32)
    b2 = 0.1 * jax.random.normal(kb2, (1, out_c_half), jnp.float32)
    bfc = 0.1 * jax.random.normal(kbf, (1, n_classes), jnp.float32)
    params = (WA, bA, WB, bB, W1, b1, W2, b2, Wfc, bfc)

    y = gcrnn_gcn_forward(x_nt, L_cheb, A_gcn, params, batch_size, num_nodes)
    y = jax.block_until_ready(y)
    assert y.shape == (batch_size, n_classes)

    y_ref = reference(x_nt, L_cheb, A_gcn, params, batch_size, num_nodes)
    assert jnp.allclose(y, y_ref, atol=5e-3, rtol=5e-3), "mismatch vs reference"

    print("KERNEL_OK")
</pallas_src>

<mosaic_0001>
module attributes {stable_mosaic.version = 11 : i64} {
  func.func @gcrnn_gcn_kernel(%arg0: memref<32x8xf32, #tpu.memory_space<vmem>>, %arg1: memref<32x32xf32, #tpu.memory_space<vmem>>, %arg2: memref<32x32xf32, #tpu.memory_space<vmem>>, %arg3: memref<4x8xf32, #tpu.memory_space<vmem>>, %arg4: memref<1x8xf32, #tpu.memory_space<vmem>>, %arg5: memref<32x8xf32, #tpu.memory_space<vmem>>, %arg6: memref<1x8xf32, #tpu.memory_space<vmem>>, %arg7: memref<8x8xf32, #tpu.memory_space<vmem>>, %arg8: memref<1x8xf32, #tpu.memory_space<vmem>>, %arg9: memref<8x4xf32, #tpu.memory_space<vmem>>, %arg10: memref<1x4xf32, #tpu.memory_space<vmem>>, %arg11: memref<4x32x4xf32, #tpu.memory_space<vmem>>, %arg12: memref<1x4xf32, #tpu.memory_space<vmem>>, %arg13: memref<2x32xf32, #tpu.memory_space<vmem>>, %arg14: memref<2x4xf32, #tpu.memory_space<vmem>>, %arg15: memref<32x32xf32, #tpu.memory_space<vmem>>) attributes {dimension_semantics = [], scalar_prefetch = 0 : i64, scratch_operands = 1 : i64, tpu.core_type = #tpu.core_type<tc>} {
    %c0 = arith.constant 0 : index
    %c0_0 = arith.constant 0 : index
    %0 = vector.load %arg0[%c0, %c0_0] : memref<32x8xf32, #tpu.memory_space<vmem>>, vector<32x8xf32>
    %c0_1 = arith.constant 0 : index
    %c0_2 = arith.constant 0 : index
    %1 = vector.load %arg1[%c0_1, %c0_2] : memref<32x32xf32, #tpu.memory_space<vmem>>, vector<32x32xf32>
    %cst = arith.constant dense<0.000000e+00> : vector<32x8xf32>
    %2 = tpu.matmul %1, %0, %cst {dimension_numbers = #tpu.dot_dimension_numbers<[1], [0], [0], [1], [0, 0, 1, 1], [], []>} : vector<32x32xf32>, vector<32x8xf32>, vector<32x8xf32> -> vector<32x8xf32>
    %cst_3 = arith.constant dense<0.000000e+00> : vector<32x8xf32>
    %3 = tpu.matmul %1, %2, %cst_3 {dimension_numbers = #tpu.dot_dimension_numbers<[1], [0], [0], [1], [0, 0, 1, 1], [], []>} : vector<32x32xf32>, vector<32x8xf32>, vector<32x8xf32> -> vector<32x8xf32>
    %cst_4 = arith.constant 2.000000e+00 : f32
    %4 = vector.broadcast %cst_4 : f32 to vector<32x8xf32>
    %5 = arith.mulf %4, %3 : vector<32x8xf32>
    %6 = arith.subf %5, %0 : vector<32x8xf32>
    %cst_5 = arith.constant dense<0.000000e+00> : vector<32x8xf32>
    %7 = tpu.matmul %1, %6, %cst_5 {dimension_numbers = #tpu.dot_dimension_numbers<[1], [0], [0], [1], [0, 0, 1, 1], [], []>} : vector<32x32xf32>, vector<32x8xf32>, vector<32x8xf32> -> vector<32x8xf32>
    %cst_6 = arith.constant 2.000000e+00 : f32
    %8 = vector.broadcast %cst_6 : f32 to vector<32x8xf32>
    %9 = arith.mulf %8, %7 : vector<32x8xf32>
    %10 = arith.subf %9, %2 : vector<32x8xf32>
    %c0_7 = arith.constant 0 : index
    %c0_8 = arith.constant 0 : index
    %11 = vector.load %arg3[%c0_7, %c0_8] : memref<4x8xf32, #tpu.memory_space<vmem>>, vector<4x8xf32>
    %c0_9 = arith.constant 0 : index
    %c0_10 = arith.constant 0 : index
    %12 = vector.load %arg5[%c0_9, %c0_10] : memref<32x8xf32, #tpu.memory_space<vmem>>, vector<32x8xf32>
    %c0_11 = arith.constant 0 : index
    %c0_12 = arith.constant 0 : index
    %13 = vector.load %arg4[%c0_11, %c0_12] : memref<1x8xf32, #tpu.memory_space<vmem>>, vector<1x8xf32>
    %c0_13 = arith.constant 0 : index
    %c0_14 = arith.constant 0 : index
    %14 = vector.load %arg6[%c0_13, %c0_14] : memref<1x8xf32, #tpu.memory_space<vmem>>, vector<1x8xf32>
    %15 = arith.addf %13, %14 : vector<1x8xf32>
    %cst_15 = arith.constant 0.000000e+00 : f32
    %16 = vector.broadcast %cst_15 : f32 to vector<32x8xf32>
    %17 = vector.extract_strided_slice %0 {offsets = [0, 0], sizes = [32, 1], strides = [1, 1]} : vector<32x8xf32> to vector<32x1xf32>
    %18 = vector.extract_strided_slice %11 {offsets = [0, 0], sizes = [1, 8], strides = [1, 1]} : vector<4x8xf32> to vector<1x8xf32>
    %19 = vector.broadcast %17 : vector<32x1xf32> to vector<32x8xf32>
    %20 = vector.broadcast %18 : vector<1x8xf32> to vector<32x8xf32>
    %21 = arith.mulf %19, %20 : vector<32x8xf32>
    %22 = vector.extract_strided_slice %2 {offsets = [0, 0], sizes = [32, 1], strides = [1, 1]} : vector<32x8xf32> to vector<32x1xf32>
    %23 = vector.extract_strided_slice %11 {offsets = [1, 0], sizes = [1, 8], strides = [1, 1]} : vector<4x8xf32> to vector<1x8xf32>
    %24 = vector.broadcast %22 : vector<32x1xf32> to vector<32x8xf32>
    %25 = vector.broadcast %23 : vector<1x8xf32> to vector<32x8xf32>
    %26 = arith.mulf %24, %25 : vector<32x8xf32>
    %27 = arith.addf %21, %26 : vector<32x8xf32>
    %28 = vector.extract_strided_slice %6 {offsets = [0, 0], sizes = [32, 1], strides = [1, 1]} : vector<32x8xf32> to vector<32x1xf32>
    %29 = vector.extract_strided_slice %11 {offsets = [2, 0], sizes = [1, 8], strides = [1, 1]} : vector<4x8xf32> to vector<1x8xf32>
    %30 = vector.broadcast %28 : vector<32x1xf32> to vector<32x8xf32>
    %31 = vector.broadcast %29 : vector<1x8xf32> to vector<32x8xf32>
    %32 = arith.mulf %30, %31 : vector<32x8xf32>
    %33 = arith.addf %27, %32 : vector<32x8xf32>
    %34 = vector.extract_strided_slice %10 {offsets = [0, 0], sizes = [32, 1], strides = [1, 1]} : vector<32x8xf32> to vector<32x1xf32>
    %35 = vector.extract_strided_slice %11 {offsets = [3, 0], sizes = [1, 8], strides = [1, 1]} : vector<4x8xf32> to vector<1x8xf32>
    %36 = vector.broadcast %34 : vector<32x1xf32> to vector<32x8xf32>
    %37 = vector.broadcast %35 : vector<1x8xf32> to vector<32x8xf32>
    %38 = arith.mulf %36, %37 : vector<32x8xf32>
    %39 = arith.addf %33, %38 : vector<32x8xf32>
    %cst_16 = arith.constant dense<0.000000e+00> : vector<32x8xf32>
    %40 = tpu.matmul %1, %16, %cst_16 {dimension_numbers = #tpu.dot_dimension_numbers<[1], [0], [0], [1], [0, 0, 1, 1], [], []>} : vector<32x32xf32>, vector<32x8xf32>, vector<32x8xf32> -> vector<32x8xf32>
    %cst_17 = arith.constant dense<0.000000e+00> : vector<32x8xf32>
    %41 = tpu.matmul %1, %40, %cst_17 {dimension_numbers = #tpu.dot_dimension_numbers<[1], [0], [0], [1], [0, 0, 1, 1], [], []>} : vector<32x32xf32>, vector<32x8xf32>, vector<32x8xf32> -> vector<32x8xf32>
    %cst_18 = arith.constant 2.000000e+00 : f32
    %42 = vector.broadcast %cst_18 : f32 to vector<32x8xf32>
    %43 = arith.mulf %42, %41 : vector<32x8xf32>
    %44 = arith.subf %43, %16 : vector<32x8xf32>
    %cst_19 = arith.constant dense<0.000000e+00> : vector<32x8xf32>
    %45 = tpu.matmul %1, %44, %cst_19 {dimension_numbers = #tpu.dot_dimension_numbers<[1], [0], [0], [1], [0, 0, 1, 1], [], []>} : vector<32x32xf32>, vector<32x8xf32>, vector<32x8xf32> -> vector<32x8xf32>
    %cst_20 = arith.constant 2.000000e+00 : f32
    %46 = vector.broadcast %cst_20 : f32 to vector<32x8xf32>
    %47 = arith.mulf %46, %45 : vector<32x8xf32>
    %48 = arith.subf %47, %40 : vector<32x8xf32>
    %c0_21 = arith.constant 0 : index
    %c0_22 = arith.constant 0 : index
    %49 = vector.load %arg15[%c0_21, %c0_22] : memref<32x32xf32, #tpu.memory_space<vmem>>, vector<32x8xf32>
    tpu.vector_store %arg15[%c0_21, %c0_22], %16 {strides = array<i32>} : memref<32x32xf32, #tpu.memory_space<vmem>>, vector<32x8xf32>,
    %c0_23 = arith.constant 0 : index
    %c8 = arith.constant 8 : index
    %50 = vector.load %arg15[%c0_23, %c8] : memref<32x32xf32, #tpu.memory_space<vmem>>, vector<32x8xf32>
    tpu.vector_store %arg15[%c0_23, %c8], %40 {strides = array<i32>} : memref<32x32xf32, #tpu.memory_space<vmem>>, vector<32x8xf32>,
    %c0_24 = arith.constant 0 : index
    %c16 = arith.constant 16 : index
    %51 = vector.load %arg15[%c0_24, %c16] : memref<32x32xf32, #tpu.memory_space<vmem>>, vector<32x8xf32>
    tpu.vector_store %arg15[%c0_24, %c16], %44 {strides = array<i32>} : memref<32x32xf32, #tpu.memory_space<vmem>>, vector<32x8xf32>,
    %c0_25 = arith.constant 0 : index
    %c24 = arith.constant 24 : index
    %52 = vector.load %arg15[%c0_25, %c24] : memref<32x32xf32, #tpu.memory_space<vmem>>, vector<32x8xf32>
    tpu.vector_store %arg15[%c0_25, %c24], %48 {strides = array<i32>} : memref<32x32xf32, #tpu.memory_space<vmem>>, vector<32x8xf32>,
    %c0_26 = arith.constant 0 : index
    %c0_27 = arith.constant 0 : index
    %53 = vector.load %arg15[%c0_26, %c0_27] : memref<32x32xf32, #tpu.memory_space<vmem>>, vector<32x32xf32>
    %cst_28 = arith.constant dense<0.000000e+00> : vector<32x8xf32>
    %54 = tpu.matmul %53, %12, %cst_28 {dimension_numbers = #tpu.dot_dimension_numbers<[1], [0], [0], [1], [0, 0, 1, 1], [], []>} : vector<32x32xf32>, vector<32x8xf32>, vector<32x8xf32> -> vector<32x8xf32>
    %55 = arith.addf %39, %54 : vector<32x8xf32>
    %56 = vector.broadcast %15 : vector<1x8xf32> to vector<32x8xf32>
    %57 = arith.addf %55, %56 : vector<32x8xf32>
    %58 = arith.negf %57 : vector<32x8xf32>
    %59 = math.exp %58 : vector<32x8xf32>
    %cst_29 = arith.constant 1.000000e+00 : f32
    %60 = vector.broadcast %cst_29 : f32 to vector<32x8xf32>
    %61 = arith.addf %60, %59 : vector<32x8xf32>
    %62 = arith.divf %60, %61 : vector<32x8xf32>
    %63 = vector.extract_strided_slice %0 {offsets = [0, 1], sizes = [32, 1], strides = [1, 1]} : vector<32x8xf32> to vector<32x1xf32>
    %64 = vector.extract_strided_slice %11 {offsets = [0, 0], sizes = [1, 8], strides = [1, 1]} : vector<4x8xf32> to vector<1x8xf32>
    %65 = vector.broadcast %63 : vector<32x1xf32> to vector<32x8xf32>
    %66 = vector.broadcast %64 : vector<1x8xf32> to vector<32x8xf32>
    %67 = arith.mulf %65, %66 : vector<32x8xf32>
    %68 = vector.extract_strided_slice %2 {offsets = [0, 1], sizes = [32, 1], strides = [1, 1]} : vector<32x8xf32> to vector<32x1xf32>
    %69 = vector.extract_strided_slice %11 {offsets = [1, 0], sizes = [1, 8], strides = [1, 1]} : vector<4x8xf32> to vector<1x8xf32>
    %70 = vector.broadcast %68 : vector<32x1xf32> to vector<32x8xf32>
    %71 = vector.broadcast %69 : vector<1x8xf32> to vector<32x8xf32>
    %72 = arith.mulf %70, %71 : vector<32x8xf32>
    %73 = arith.addf %67, %72 : vector<32x8xf32>
    %74 = vector.extract_strided_slice %6 {offsets = [0, 1], sizes = [32, 1], strides = [1, 1]} : vector<32x8xf32> to vector<32x1xf32>
    %75 = vector.extract_strided_slice %11 {offsets = [2, 0], sizes = [1, 8], strides = [1, 1]} : vector<4x8xf32> to vector<1x8xf32>
    %76 = vector.broadcast %74 : vector<32x1xf32> to vector<32x8xf32>
    %77 = vector.broadcast %75 : vector<1x8xf32> to vector<32x8xf32>
    %78 = arith.mulf %76, %77 : vector<32x8xf32>
    %79 = arith.addf %73, %78 : vector<32x8xf32>
    %80 = vector.extract_strided_slice %10 {offsets = [0, 1], sizes = [32, 1], strides = [1, 1]} : vector<32x8xf32> to vector<32x1xf32>
    %81 = vector.extract_strided_slice %11 {offsets = [3, 0], sizes = [1, 8], strides = [1, 1]} : vector<4x8xf32> to vector<1x8xf32>
    %82 = vector.broadcast %80 : vector<32x1xf32> to vector<32x8xf32>
    %83 = vector.broadcast %81 : vector<1x8xf32> to vector<32x8xf32>
    %84 = arith.mulf %82, %83 : vector<32x8xf32>
    %85 = arith.addf %79, %84 : vector<32x8xf32>
    %cst_30 = arith.constant dense<0.000000e+00> : vector<32x8xf32>
    %86 = tpu.matmul %1, %62, %cst_30 {dimension_numbers = #tpu.dot_dimension_numbers<[1], [0], [0], [1], [0, 0, 1, 1], [], []>} : vector<32x32xf32>, vector<32x8xf32>, vector<32x8xf32> -> vector<32x8xf32>
    %cst_31 = arith.constant dense<0.000000e+00> : vector<32x8xf32>
    %87 = tpu.matmul %1, %86, %cst_31 {dimension_numbers = #tpu.dot_dimension_numbers<[1], [0], [0], [1], [0, 0, 1, 1], [], []>} : vector<32x32xf32>, vector<32x8xf32>, vector<32x8xf32> -> vector<32x8xf32>
    %cst_32 = arith.constant 2.000000e+00 : f32
    %88 = vector.broadcast %cst_32 : f32 to vector<32x8xf32>
    %89 = arith.mulf %88, %87 : vector<32x8xf32>
    %90 = arith.subf %89, %62 : vector<32x8xf32>
    %cst_33 = arith.constant dense<0.000000e+00> : vector<32x8xf32>
    %91 = tpu.matmul %1, %90, %cst_33 {dimension_numbers = #tpu.dot_dimension_numbers<[1], [0], [0], [1], [0, 0, 1, 1], [], []>} : vector<32x32xf32>, vector<32x8xf32>, vector<32x8xf32> -> vector<32x8xf32>
    %cst_34 = arith.constant 2.000000e+00 : f32
    %92 = vector.broadcast %cst_34 : f32 to vector<32x8xf32>
    %93 = arith.mulf %92, %91 : vector<32x8xf32>
    %94 = arith.subf %93, %86 : vector<32x8xf32>
    %c0_35 = arith.constant 0 : index
    %c0_36 = arith.constant 0 : index
    %95 = vector.load %arg15[%c0_35, %c0_36] : memref<32x32xf32, #tpu.memory_space<vmem>>, vector<32x8xf32>
    tpu.vector_store %arg15[%c0_35, %c0_36], %62 {strides = array<i32>} : memref<32x32xf32, #tpu.memory_space<vmem>>, vector<32x8xf32>,
    %c0_37 = arith.constant 0 : index
    %c8_38 = arith.constant 8 : index
    %96 = vector.load %arg15[%c0_37, %c8_38] : memref<32x32xf32, #tpu.memory_space<vmem>>, vector<32x8xf32>
    tpu.vector_store %arg15[%c0_37, %c8_38], %86 {strides = array<i32>} : memref<32x32xf32, #tpu.memory_space<vmem>>, vector<32x8xf32>,
    %c0_39 = arith.constant 0 : index
    %c16_40 = arith.constant 16 : index
    %97 = vector.load %arg15[%c0_39, %c16_40] : memref<32x32xf32, #tpu.memory_space<vmem>>, vector<32x8xf32>
    tpu.vector_store %arg15[%c0_39, %c16_40], %90 {strides = array<i32>} : memref<32x32xf32, #tpu.memory_space<vmem>>, vector<32x8xf32>,
    %c0_41 = arith.constant 0 : index
    %c24_42 = arith.constant 24 : index
    %98 = vector.load %arg15[%c0_41, %c24_42] : memref<32x32xf32, #tpu.memory_space<vmem>>, vector<32x8xf32>
    tpu.vector_store %arg15[%c0_41, %c24_42], %94 {strides = array<i32>} : memref<32x32xf32, #tpu.memory_space<vmem>>, vector<32x8xf32>,
    %c0_43 = arith.constant 0 : index
    %c0_44 = arith.constant 0 : index
    %99 = vector.load %arg15[%c0_43, %c0_44] : memref<32x32xf32, #tpu.memory_space<vmem>>, vector<32x32xf32>
    %cst_45 = arith.constant dense<0.000000e+00> : vector<32x8xf32>
    %100 = tpu.matmul %99, %12, %cst_45 {dimension_numbers = #tpu.dot_dimension_numbers<[1], [0], [0], [1], [0, 0, 1, 1], [], []>} : vector<32x32xf32>, vector<32x8xf32>, vector<32x8xf32> -> vector<32x8xf32>
    %101 = arith.addf %85, %100 : vector<32x8xf32>
    %102 = vector.broadcast %15 : vector<1x8xf32> to vector<32x8xf32>
    %103 = arith.addf %101, %102 : vector<32x8xf32>
    %104 = arith.negf %103 : vector<32x8xf32>
    %105 = math.exp %104 : vector<32x8xf32>
    %cst_46 = arith.constant 1.000000e+00 : f32
    %106 = vector.broadcast %cst_46 : f32 to vector<32x8xf32>
    %107 = arith.addf %106, %105 : vector<32x8xf32>
    %108 = arith.divf %106, %107 : vector<32x8xf32>
    %109 = vector.extract_strided_slice %0 {offsets = [0, 2], sizes = [32, 1], strides = [1, 1]} : vector<32x8xf32> to vector<32x1xf32>
    %110 = vector.extract_strided_slice %11 {offsets = [0, 0], sizes = [1, 8], strides = [1, 1]} : vector<4x8xf32> to vector<1x8xf32>
    %111 = vector.broadcast %109 : vector<32x1xf32> to vector<32x8xf32>
    %112 = vector.broadcast %110 : vector<1x8xf32> to vector<32x8xf32>
    %113 = arith.mulf %111, %112 : vector<32x8xf32>
    %114 = vector.extract_strided_slice %2 {offsets = [0, 2], sizes = [32, 1], strides = [1, 1]} : vector<32x8xf32> to vector<32x1xf32>
    %115 = vector.extract_strided_slice %11 {offsets = [1, 0], sizes = [1, 8], strides = [1, 1]} : vector<4x8xf32> to vector<1x8xf32>
    %116 = vector.broadcast %114 : vector<32x1xf32> to vector<32x8xf32>
    %117 = vector.broadcast %115 : vector<1x8xf32> to vector<32x8xf32>
    %118 = arith.mulf %116, %117 : vector<32x8xf32>
    %119 = arith.addf %113, %118 : vector<32x8xf32>
    %120 = vector.extract_strided_slice %6 {offsets = [0, 2], sizes = [32, 1], strides = [1, 1]} : vector<32x8xf32> to vector<32x1xf32>
    %121 = vector.extract_strided_slice %11 {offsets = [2, 0], sizes = [1, 8], strides = [1, 1]} : vector<4x8xf32> to vector<1x8xf32>
    %122 = vector.broadcast %120 : vector<32x1xf32> to vector<32x8xf32>
    %123 = vector.broadcast %121 : vector<1x8xf32> to vector<32x8xf32>
    %124 = arith.mulf %122, %123 : vector<32x8xf32>
    %125 = arith.addf %119, %124 : vector<32x8xf32>
    %126 = vector.extract_strided_slice %10 {offsets = [0, 2], sizes = [32, 1], strides = [1, 1]} : vector<32x8xf32> to vector<32x1xf32>
    %127 = vector.extract_strided_slice %11 {offsets = [3, 0], sizes = [1, 8], strides = [1, 1]} : vector<4x8xf32> to vector<1x8xf32>
    %128 = vector.broadcast %126 : vector<32x1xf32> to vector<32x8xf32>
    %129 = vector.broadcast %127 : vector<1x8xf32> to vector<32x8xf32>
    %130 = arith.mulf %128, %129 : vector<32x8xf32>
    %131 = arith.addf %125, %130 : vector<32x8xf32>
    %cst_47 = arith.constant dense<0.000000e+00> : vector<32x8xf32>
    %132 = tpu.matmul %1, %108, %cst_47 {dimension_numbers = #tpu.dot_dimension_numbers<[1], [0], [0], [1], [0, 0, 1, 1], [], []>} : vector<32x32xf32>, vector<32x8xf32>, vector<32x8xf32> -> vector<32x8xf32>
    %cst_48 = arith.constant dense<0.000000e+00> : vector<32x8xf32>
    %133 = tpu.matmul %1, %132, %cst_48 {dimension_numbers = #tpu.dot_dimension_numbers<[1], [0], [0], [1], [0, 0, 1, 1], [], []>} : vector<32x32xf32>, vector<32x8xf32>, vector<32x8xf32> -> vector<32x8xf32>
    %cst_49 = arith.constant 2.000000e+00 : f32
    %134 = vector.broadcast %cst_49 : f32 to vector<32x8xf32>
    %135 = arith.mulf %134, %133 : vector<32x8xf32>
    %136 = arith.subf %135, %108 : vector<32x8xf32>
    %cst_50 = arith.constant dense<0.000000e+00> : vector<32x8xf32>
    %137 = tpu.matmul %1, %136, %cst_50 {dimension_numbers = #tpu.dot_dimension_numbers<[1], [0], [0], [1], [0, 0, 1, 1], [], []>} : vector<32x32xf32>, vector<32x8xf32>, vector<32x8xf32> -> vector<32x8xf32>
    %cst_51 = arith.constant 2.000000e+00 : f32
    %138 = vector.broadcast %cst_51 : f32 to vector<32x8xf32>
    %139 = arith.mulf %138, %137 : vector<32x8xf32>
    %140 = arith.subf %139, %132 : vector<32x8xf32>
    %c0_52 = arith.constant 0 : index
    %c0_53 = arith.constant 0 : index
    %141 = vector.load %arg15[%c0_52, %c0_53] : memref<32x32xf32, #tpu.memory_space<vmem>>, vector<32x8xf32>
    tpu.vector_store %arg15[%c0_52, %c0_53], %108 {strides = array<i32>} : memref<32x32xf32, #tpu.memory_space<vmem>>, vector<32x8xf32>,
    %c0_54 = arith.constant 0 : index
    %c8_55 = arith.constant 8 : index
    %142 = vector.load %arg15[%c0_54, %c8_55] : memref<32x32xf32, #tpu.memory_space<vmem>>, vector<32x8xf32>
    tpu.vector_store %arg15[%c0_54, %c8_55], %132 {strides = array<i32>} : memref<32x32xf32, #tpu.memory_space<vmem>>, vector<32x8xf32>,
    %c0_56 = arith.constant 0 : index
    %c16_57 = arith.constant 16 : index
    %143 = vector.load %arg15[%c0_56, %c16_57] : memref<32x32xf32, #tpu.memory_space<vmem>>, vector<32x8xf32>
    tpu.vector_store %arg15[%c0_56, %c16_57], %136 {strides = array<i32>} : memref<32x32xf32, #tpu.memory_space<vmem>>, vector<32x8xf32>,
    %c0_58 = arith.constant 0 : index
    %c24_59 = arith.constant 24 : index
    %144 = vector.load %arg15[%c0_58, %c24_59] : memref<32x32xf32, #tpu.memory_space<vmem>>, vector<32x8xf32>
    tpu.vector_store %arg15[%c0_58, %c24_59], %140 {strides = array<i32>} : memref<32x32xf32, #tpu.memory_space<vmem>>, vector<32x8xf32>,
    %c0_60 = arith.constant 0 : index
    %c0_61 = arith.constant 0 : index
    %145 = vector.load %arg15[%c0_60, %c0_61] : memref<32x32xf32, #tpu.memory_space<vmem>>, vector<32x32xf32>
    %cst_62 = arith.constant dense<0.000000e+00> : vector<32x8xf32>
    %146 = tpu.matmul %145, %12, %cst_62 {dimension_numbers = #tpu.dot_dimension_numbers<[1], [0], [0], [1], [0, 0, 1, 1], [], []>} : vector<32x32xf32>, vector<32x8xf32>, vector<32x8xf32> -> vector<32x8xf32>
    %147 = arith.addf %131, %146 : vector<32x8xf32>
    %148 = vector.broadcast %15 : vector<1x8xf32> to vector<32x8xf32>
    %149 = arith.addf %147, %148 : vector<32x8xf32>
    %150 = arith.negf %149 : vector<32x8xf32>
    %151 = math.exp %150 : vector<32x8xf32>
    %cst_63 = arith.constant 1.000000e+00 : f32
    %152 = vector.broadcast %cst_63 : f32 to vector<32x8xf32>
    %153 = arith.addf %152, %151 : vector<32x8xf32>
    %154 = arith.divf %152, %153 : vector<32x8xf32>
    %155 = vector.extract_strided_slice %0 {offsets = [0, 3], sizes = [32, 1], strides = [1, 1]} : vector<32x8xf32> to vector<32x1xf32>
    %156 = vector.extract_strided_slice %11 {offsets = [0, 0], sizes = [1, 8], strides = [1, 1]} : vector<4x8xf32> to vector<1x8xf32>
    %157 = vector.broadcast %155 : vector<32x1xf32> to vector<32x8xf32>
    %158 = vector.broadcast %156 : vector<1x8xf32> to vector<32x8xf32>
    %159 = arith.mulf %157, %158 : vector<32x8xf32>
    %160 = vector.extract_strided_slice %2 {offsets = [0, 3], sizes = [32, 1], strides = [1, 1]} : vector<32x8xf32> to vector<32x1xf32>
    %161 = vector.extract_strided_slice %11 {offsets = [1, 0], sizes = [1, 8], strides = [1, 1]} : vector<4x8xf32> to vector<1x8xf32>
    %162 = vector.broadcast %160 : vector<32x1xf32> to vector<32x8xf32>
    %163 = vector.broadcast %161 : vector<1x8xf32> to vector<32x8xf32>
    %164 = arith.mulf %162, %163 : vector<32x8xf32>
    %165 = arith.addf %159, %164 : vector<32x8xf32>
    %166 = vector.extract_strided_slice %6 {offsets = [0, 3], sizes = [32, 1], strides = [1, 1]} : vector<32x8xf32> to vector<32x1xf32>
    %167 = vector.extract_strided_slice %11 {offsets = [2, 0], sizes = [1, 8], strides = [1, 1]} : vector<4x8xf32> to vector<1x8xf32>
    %168 = vector.broadcast %166 : vector<32x1xf32> to vector<32x8xf32>
    %169 = vector.broadcast %167 : vector<1x8xf32> to vector<32x8xf32>
    %170 = arith.mulf %168, %169 : vector<32x8xf32>
    %171 = arith.addf %165, %170 : vector<32x8xf32>
    %172 = vector.extract_strided_slice %10 {offsets = [0, 3], sizes = [32, 1], strides = [1, 1]} : vector<32x8xf32> to vector<32x1xf32>
    %173 = vector.extract_strided_slice %11 {offsets = [3, 0], sizes = [1, 8], strides = [1, 1]} : vector<4x8xf32> to vector<1x8xf32>
    %174 = vector.broadcast %172 : vector<32x1xf32> to vector<32x8xf32>
    %175 = vector.broadcast %173 : vector<1x8xf32> to vector<32x8xf32>
    %176 = arith.mulf %174, %175 : vector<32x8xf32>
    %177 = arith.addf %171, %176 : vector<32x8xf32>
    %cst_64 = arith.constant dense<0.000000e+00> : vector<32x8xf32>
    %178 = tpu.matmul %1, %154, %cst_64 {dimension_numbers = #tpu.dot_dimension_numbers<[1], [0], [0], [1], [0, 0, 1, 1], [], []>} : vector<32x32xf32>, vector<32x8xf32>, vector<32x8xf32> -> vector<32x8xf32>
    %cst_65 = arith.constant dense<0.000000e+00> : vector<32x8xf32>
    %179 = tpu.matmul %1, %178, %cst_65 {dimension_numbers = #tpu.dot_dimension_numbers<[1], [0], [0], [1], [0, 0, 1, 1], [], []>} : vector<32x32xf32>, vector<32x8xf32>, vector<32x8xf32> -> vector<32x8xf32>
    %cst_66 = arith.constant 2.000000e+00 : f32
    %180 = vector.broadcast %cst_66 : f32 to vector<32x8xf32>
    %181 = arith.mulf %180, %179 : vector<32x8xf32>
    %182 = arith.subf %181, %154 : vector<32x8xf32>
    %cst_67 = arith.constant dense<0.000000e+00> : vector<32x8xf32>
    %183 = tpu.matmul %1, %182, %cst_67 {dimension_numbers = #tpu.dot_dimension_numbers<[1], [0], [0], [1], [0, 0, 1, 1], [], []>} : vector<32x32xf32>, vector<32x8xf32>, vector<32x8xf32> -> vector<32x8xf32>
    %cst_68 = arith.constant 2.000000e+00 : f32
    %184 = vector.broadcast %cst_68 : f32 to vector<32x8xf32>
    %185 = arith.mulf %184, %183 : vector<32x8xf32>
    %186 = arith.subf %185, %178 : vector<32x8xf32>
    %c0_69 = arith.constant 0 : index
    %c0_70 = arith.constant 0 : index
    %187 = vector.load %arg15[%c0_69, %c0_70] : memref<32x32xf32, #tpu.memory_space<vmem>>, vector<32x8xf32>
    tpu.vector_store %arg15[%c0_69, %c0_70], %154 {strides = array<i32>} : memref<32x32xf32, #tpu.memory_space<vmem>>, vector<32x8xf32>,
    %c0_71 = arith.constant 0 : index
    %c8_72 = arith.constant 8 : index
    %188 = vector.load %arg15[%c0_71, %c8_72] : memref<32x32xf32, #tpu.memory_space<vmem>>, vector<32x8xf32>
    tpu.vector_store %arg15[%c0_71, %c8_72], %178 {strides = array<i32>} : memref<32x32xf32, #tpu.memory_space<vmem>>, vector<32x8xf32>,
    %c0_73 = arith.constant 0 : index
    %c16_74 = arith.constant 16 : index
    %189 = vector.load %arg15[%c0_73, %c16_74] : memref<32x32xf32, #tpu.memory_space<vmem>>, vector<32x8xf32>
    tpu.vector_store %arg15[%c0_73, %c16_74], %182 {strides = array<i32>} : memref<32x32xf32, #tpu.memory_space<vmem>>, vector<32x8xf32>,
    %c0_75 = arith.constant 0 : index
    %c24_76 = arith.constant 24 : index
    %190 = vector.load %arg15[%c0_75, %c24_76] : memref<32x32xf32, #tpu.memory_space<vmem>>, vector<32x8xf32>
    tpu.vector_store %arg15[%c0_75, %c24_76], %186 {strides = array<i32>} : memref<32x32xf32, #tpu.memory_space<vmem>>, vector<32x8xf32>,
    %c0_77 = arith.constant 0 : index
    %c0_78 = arith.constant 0 : index
    %191 = vector.load %arg15[%c0_77, %c0_78] : memref<32x32xf32, #tpu.memory_space<vmem>>, vector<32x32xf32>
    %cst_79 = arith.constant dense<0.000000e+00> : vector<32x8xf32>
    %192 = tpu.matmul %191, %12, %cst_79 {dimension_numbers = #tpu.dot_dimension_numbers<[1], [0], [0], [1], [0, 0, 1, 1], [], []>} : vector<32x32xf32>, vector<32x8xf32>, vector<32x8xf32> -> vector<32x8xf32>
    %193 = arith.addf %177, %192 : vector<32x8xf32>
    %194 = vector.broadcast %15 : vector<1x8xf32> to vector<32x8xf32>
    %195 = arith.addf %193, %194 : vector<32x8xf32>
    %196 = arith.negf %195 : vector<32x8xf32>
    %197 = math.exp %196 : vector<32x8xf32>
    %cst_80 = arith.constant 1.000000e+00 : f32
    %198 = vector.broadcast %cst_80 : f32 to vector<32x8xf32>
    %199 = arith.addf %198, %197 : vector<32x8xf32>
    %200 = arith.divf %198, %199 : vector<32x8xf32>
    %201 = vector.extract_strided_slice %0 {offsets = [0, 4], sizes = [32, 1], strides = [1, 1]} : vector<32x8xf32> to vector<32x1xf32>
    %202 = vector.extract_strided_slice %11 {offsets = [0, 0], sizes = [1, 8], strides = [1, 1]} : vector<4x8xf32> to vector<1x8xf32>
    %203 = vector.broadcast %201 : vector<32x1xf32> to vector<32x8xf32>
    %204 = vector.broadcast %202 : vector<1x8xf32> to vector<32x8xf32>
    %205 = arith.mulf %203, %204 : vector<32x8xf32>
    %206 = vector.extract_strided_slice %2 {offsets = [0, 4], sizes = [32, 1], strides = [1, 1]} : vector<32x8xf32> to vector<32x1xf32>
    %207 = vector.extract_strided_slice %11 {offsets = [1, 0], sizes = [1, 8], strides = [1, 1]} : vector<4x8xf32> to vector<1x8xf32>
    %208 = vector.broadcast %206 : vector<32x1xf32> to vector<32x8xf32>
    %209 = vector.broadcast %207 : vector<1x8xf32> to vector<32x8xf32>
    %210 = arith.mulf %208, %209 : vector<32x8xf32>
    %211 = arith.addf %205, %210 : vector<32x8xf32>
    %212 = vector.extract_strided_slice %6 {offsets = [0, 4], sizes = [32, 1], strides = [1, 1]} : vector<32x8xf32> to vector<32x1xf32>
    %213 = vector.extract_strided_slice %11 {offsets = [2, 0], sizes = [1, 8], strides = [1, 1]} : vector<4x8xf32> to vector<1x8xf32>
    %214 = vector.broadcast %212 : vector<32x1xf32> to vector<32x8xf32>
    %215 = vector.broadcast %213 : vector<1x8xf32> to vector<32x8xf32>
    %216 = arith.mulf %214, %215 : vector<32x8xf32>
    %217 = arith.addf %211, %216 : vector<32x8xf32>
    %218 = vector.extract_strided_slice %10 {offsets = [0, 4], sizes = [32, 1], strides = [1, 1]} : vector<32x8xf32> to vector<32x1xf32>
    %219 = vector.extract_strided_slice %11 {offsets = [3, 0], sizes = [1, 8], strides = [1, 1]} : vector<4x8xf32> to vector<1x8xf32>
    %220 = vector.broadcast %218 : vector<32x1xf32> to vector<32x8xf32>
    %221 = vector.broadcast %219 : vector<1x8xf32> to vector<32x8xf32>
    %222 = arith.mulf %220, %221 : vector<32x8xf32>
    %223 = arith.addf %217, %222 : vector<32x8xf32>
    %cst_81 = arith.constant dense<0.000000e+00> : vector<32x8xf32>
    %224 = tpu.matmul %1, %200, %cst_81 {dimension_numbers = #tpu.dot_dimension_numbers<[1], [0], [0], [1], [0, 0, 1, 1], [], []>} : vector<32x32xf32>, vector<32x8xf32>, vector<32x8xf32> -> vector<32x8xf32>
    %cst_82 = arith.constant dense<0.000000e+00> : vector<32x8xf32>
    %225 = tpu.matmul %1, %224, %cst_82 {dimension_numbers = #tpu.dot_dimension_numbers<[1], [0], [0], [1], [0, 0, 1, 1], [], []>} : vector<32x32xf32>, vector<32x8xf32>, vector<32x8xf32> -> vector<32x8xf32>
    %cst_83 = arith.constant 2.000000e+00 : f32
    %226 = vector.broadcast %cst_83 : f32 to vector<32x8xf32>
    %227 = arith.mulf %226, %225 : vector<32x8xf32>
    %228 = arith.subf %227, %200 : vector<32x8xf32>
    %cst_84 = arith.constant dense<0.000000e+00> : vector<32x8xf32>
    %229 = tpu.matmul %1, %228, %cst_84 {dimension_numbers = #tpu.dot_dimension_numbers<[1], [0], [0], [1], [0, 0, 1, 1], [], []>} : vector<32x32xf32>, vector<32x8xf32>, vector<32x8xf32> -> vector<32x8xf32>
    %cst_85 = arith.constant 2.000000e+00 : f32
    %230 = vector.broadcast %cst_85 : f32 to vector<32x8xf32>
    %231 = arith.mulf %230, %229 : vector<32x8xf32>
    %232 = arith.subf %231, %224 : vector<32x8xf32>
    %c0_86 = arith.constant 0 : index
    %c0_87 = arith.constant 0 : index
    %233 = vector.load %arg15[%c0_86, %c0_87] : memref<32x32xf32, #tpu.memory_space<vmem>>, vector<32x8xf32>
    tpu.vector_store %arg15[%c0_86, %c0_87], %200 {strides = array<i32>} : memref<32x32xf32, #tpu.memory_space<vmem>>, vector<32x8xf32>,
    %c0_88 = arith.constant 0 : index
    %c8_89 = arith.constant 8 : index
    %234 = vector.load %arg15[%c0_88, %c8_89] : memref<32x32xf32, #tpu.memory_space<vmem>>, vector<32x8xf32>
    tpu.vector_store %arg15[%c0_88, %c8_89], %224 {strides = array<i32>} : memref<32x32xf32, #tpu.memory_space<vmem>>, vector<32x8xf32>,
    %c0_90 = arith.constant 0 : index
    %c16_91 = arith.constant 16 : index
    %235 = vector.load %arg15[%c0_90, %c16_91] : memref<32x32xf32, #tpu.memory_space<vmem>>, vector<32x8xf32>
    tpu.vector_store %arg15[%c0_90, %c16_91], %228 {strides = array<i32>} : memref<32x32xf32, #tpu.memory_space<vmem>>, vector<32x8xf32>,
    %c0_92 = arith.constant 0 : index
    %c24_93 = arith.constant 24 : index
    %236 = vector.load %arg15[%c0_92, %c24_93] : memref<32x32xf32, #tpu.memory_space<vmem>>, vector<32x8xf32>
    tpu.vector_store %arg15[%c0_92, %c24_93], %232 {strides = array<i32>} : memref<32x32xf32, #tpu.memory_space<vmem>>, vector<32x8xf32>,
    %c0_94 = arith.constant 0 : index
    %c0_95 = arith.constant 0 : index
    %237 = vector.load %arg15[%c0_94, %c0_95] : memref<32x32xf32, #tpu.memory_space<vmem>>, vector<32x32xf32>
    %cst_96 = arith.constant dense<0.000000e+00> : vector<32x8xf32>
    %238 = tpu.matmul %237, %12, %cst_96 {dimension_numbers = #tpu.dot_dimension_numbers<[1], [0], [0], [1], [0, 0, 1, 1], [], []>} : vector<32x32xf32>, vector<32x8xf32>, vector<32x8xf32> -> vector<32x8xf32>
    %239 = arith.addf %223, %238 : vector<32x8xf32>
    %240 = vector.broadcast %15 : vector<1x8xf32> to vector<32x8xf32>
    %241 = arith.addf %239, %240 : vector<32x8xf32>
    %242 = arith.negf %241 : vector<32x8xf32>
    %243 = math.exp %242 : vector<32x8xf32>
    %cst_97 = arith.constant 1.000000e+00 : f32
    %244 = vector.broadcast %cst_97 : f32 to vector<32x8xf32>
    %245 = arith.addf %244, %243 : vector<32x8xf32>
    %246 = arith.divf %244, %245 : vector<32x8xf32>
    %247 = vector.extract_strided_slice %0 {offsets = [0, 5], sizes = [32, 1], strides = [1, 1]} : vector<32x8xf32> to vector<32x1xf32>
    %248 = vector.extract_strided_slice %11 {offsets = [0, 0], sizes = [1, 8], strides = [1, 1]} : vector<4x8xf32> to vector<1x8xf32>
    %249 = vector.broadcast %247 : vector<32x1xf32> to vector<32x8xf32>
    %250 = vector.broadcast %248 : vector<1x8xf32> to vector<32x8xf32>
    %251 = arith.mulf %249, %250 : vector<32x8xf32>
    %252 = vector.extract_strided_slice %2 {offsets = [0, 5], sizes = [32, 1], strides = [1, 1]} : vector<32x8xf32> to vector<32x1xf32>
    %253 = vector.extract_strided_slice %11 {offsets = [1, 0], sizes = [1, 8], strides = [1, 1]} : vector<4x8xf32> to vector<1x8xf32>
    %254 = vector.broadcast %252 : vector<32x1xf32> to vector<32x8xf32>
    %255 = vector.broadcast %253 : vector<1x8xf32> to vector<32x8xf32>
    %256 = arith.mulf %254, %255 : vector<32x8xf32>
    %257 = arith.addf %251, %256 : vector<32x8xf32>
    %258 = vector.extract_strided_slice %6 {offsets = [0, 5], sizes = [32, 1], strides = [1, 1]} : vector<32x8xf32> to vector<32x1xf32>
    %259 = vector.extract_strided_slice %11 {offsets = [2, 0], sizes = [1, 8], strides = [1, 1]} : vector<4x8xf32> to vector<1x8xf32>
    %260 = vector.broadcast %258 : vector<32x1xf32> to vector<32x8xf32>
    %261 = vector.broadcast %259 : vector<1x8xf32> to vector<32x8xf32>
    %262 = arith.mulf %260, %261 : vector<32x8xf32>
    %263 = arith.addf %257, %262 : vector<32x8xf32>
    %264 = vector.extract_strided_slice %10 {offsets = [0, 5], sizes = [32, 1], strides = [1, 1]} : vector<32x8xf32> to vector<32x1xf32>
    %265 = vector.extract_strided_slice %11 {offsets = [3, 0], sizes = [1, 8], strides = [1, 1]} : vector<4x8xf32> to vector<1x8xf32>
    %266 = vector.broadcast %264 : vector<32x1xf32> to vector<32x8xf32>
    %267 = vector.broadcast %265 : vector<1x8xf32> to vector<32x8xf32>
    %268 = arith.mulf %266, %267 : vector<32x8xf32>
    %269 = arith.addf %263, %268 : vector<32x8xf32>
    %cst_98 = arith.constant dense<0.000000e+00> : vector<32x8xf32>
    %270 = tpu.matmul %1, %246, %cst_98 {dimension_numbers = #tpu.dot_dimension_numbers<[1], [0], [0], [1], [0, 0, 1, 1], [], []>} : vector<32x32xf32>, vector<32x8xf32>, vector<32x8xf32> -> vector<32x8xf32>
    %cst_99 = arith.constant dense<0.000000e+00> : vector<32x8xf32>
    %271 = tpu.matmul %1, %270, %cst_99 {dimension_numbers = #tpu.dot_dimension_numbers<[1], [0], [0], [1], [0, 0, 1, 1], [], []>} : vector<32x32xf32>, vector<32x8xf32>, vector<32x8xf32> -> vector<32x8xf32>
    %cst_100 = arith.constant 2.000000e+00 : f32
    %272 = vector.broadcast %cst_100 : f32 to vector<32x8xf32>
    %273 = arith.mulf %272, %271 : vector<32x8xf32>
    %274 = arith.subf %273, %246 : vector<32x8xf32>
    %cst_101 = arith.constant dense<0.000000e+00> : vector<32x8xf32>
    %275 = tpu.matmul %1, %274, %cst_101 {dimension_numbers = #tpu.dot_dimension_numbers<[1], [0], [0], [1], [0, 0, 1, 1], [], []>} : vector<32x32xf32>, vector<32x8xf32>, vector<32x8xf32> -> vector<32x8xf32>
    %cst_102 = arith.constant 2.000000e+00 : f32
    %276 = vector.broadcast %cst_102 : f32 to vector<32x8xf32>
    %277 = arith.mulf %276, %275 : vector<32x8xf32>
    %278 = arith.subf %277, %270 : vector<32x8xf32>
    %c0_103 = arith.constant 0 : index
    %c0_104 = arith.constant 0 : index
    %279 = vector.load %arg15[%c0_103, %c0_104] : memref<32x32xf32, #tpu.memory_space<vmem>>, vector<32x8xf32>
    tpu.vector_store %arg15[%c0_103, %c0_104], %246 {strides = array<i32>} : memref<32x32xf32, #tpu.memory_space<vmem>>, vector<32x8xf32>,
    %c0_105 = arith.constant 0 : index
    %c8_106 = arith.constant 8 : index
    %280 = vector.load %arg15[%c0_105, %c8_106] : memref<32x32xf32, #tpu.memory_space<vmem>>, vector<32x8xf32>
    tpu.vector_store %arg15[%c0_105, %c8_106], %270 {strides = array<i32>} : memref<32x32xf32, #tpu.memory_space<vmem>>, vector<32x8xf32>,
    %c0_107 = arith.constant 0 : index
    %c16_108 = arith.constant 16 : index
    %281 = vector.load %arg15[%c0_107, %c16_108] : memref<32x32xf32, #tpu.memory_space<vmem>>, vector<32x8xf32>
    tpu.vector_store %arg15[%c0_107, %c16_108], %274 {strides = array<i32>} : memref<32x32xf32, #tpu.memory_space<vmem>>, vector<32x8xf32>,
    %c0_109 = arith.constant 0 : index
    %c24_110 = arith.constant 24 : index
    %282 = vector.load %arg15[%c0_109, %c24_110] : memref<32x32xf32, #tpu.memory_space<vmem>>, vector<32x8xf32>
    tpu.vector_store %arg15[%c0_109, %c24_110], %278 {strides = array<i32>} : memref<32x32xf32, #tpu.memory_space<vmem>>, vector<32x8xf32>,
    %c0_111 = arith.constant 0 : index
    %c0_112 = arith.constant 0 : index
    %283 = vector.load %arg15[%c0_111, %c0_112] : memref<32x32xf32, #tpu.memory_space<vmem>>, vector<32x32xf32>
    %cst_113 = arith.constant dense<0.000000e+00> : vector<32x8xf32>
    %284 = tpu.matmul %283, %12, %cst_113 {dimension_numbers = #tpu.dot_dimension_numbers<[1], [0], [0], [1], [0, 0, 1, 1], [], []>} : vector<32x32xf32>, vector<32x8xf32>, vector<32x8xf32> -> vector<32x8xf32>
    %285 = arith.addf %269, %284 : vector<32x8xf32>
    %286 = vector.broadcast %15 : vector<1x8xf32> to vector<32x8xf32>
    %287 = arith.addf %285, %286 : vector<32x8xf32>
    %288 = arith.negf %287 : vector<32x8xf32>
    %289 = math.exp %288 : vector<32x8xf32>
    %cst_114 = arith.constant 1.000000e+00 : f32
    %290 = vector.broadcast %cst_114 : f32 to vector<32x8xf32>
    %291 = arith.addf %290, %289 : vector<32x8xf32>
    %292 = arith.divf %290, %291 : vector<32x8xf32>
    %293 = vector.extract_strided_slice %0 {offsets = [0, 6], sizes = [32, 1], strides = [1, 1]} : vector<32x8xf32> to vector<32x1xf32>
    %294 = vector.extract_strided_slice %11 {offsets = [0, 0], sizes = [1, 8], strides = [1, 1]} : vector<4x8xf32> to vector<1x8xf32>
    %295 = vector.broadcast %293 : vector<32x1xf32> to vector<32x8xf32>
    %296 = vector.broadcast %294 : vector<1x8xf32> to vector<32x8xf32>
    %297 = arith.mulf %295, %296 : vector<32x8xf32>
    %298 = vector.extract_strided_slice %2 {offsets = [0, 6], sizes = [32, 1], strides = [1, 1]} : vector<32x8xf32> to vector<32x1xf32>
    %299 = vector.extract_strided_slice %11 {offsets = [1, 0], sizes = [1, 8], strides = [1, 1]} : vector<4x8xf32> to vector<1x8xf32>
    %300 = vector.broadcast %298 : vector<32x1xf32> to vector<32x8xf32>
    %301 = vector.broadcast %299 : vector<1x8xf32> to vector<32x8xf32>
    %302 = arith.mulf %300, %301 : vector<32x8xf32>
    %303 = arith.addf %297, %302 : vector<32x8xf32>
    %304 = vector.extract_strided_slice %6 {offsets = [0, 6], sizes = [32, 1], strides = [1, 1]} : vector<32x8xf32> to vector<32x1xf32>
    %305 = vector.extract_strided_slice %11 {offsets = [2, 0], sizes = [1, 8], strides = [1, 1]} : vector<4x8xf32> to vector<1x8xf32>
    %306 = vector.broadcast %304 : vector<32x1xf32> to vector<32x8xf32>
    %307 = vector.broadcast %305 : vector<1x8xf32> to vector<32x8xf32>
    %308 = arith.mulf %306, %307 : vector<32x8xf32>
    %309 = arith.addf %303, %308 : vector<32x8xf32>
    %310 = vector.extract_strided_slice %10 {offsets = [0, 6], sizes = [32, 1], strides = [1, 1]} : vector<32x8xf32> to vector<32x1xf32>
    %311 = vector.extract_strided_slice %11 {offsets = [3, 0], sizes = [1, 8], strides = [1, 1]} : vector<4x8xf32> to vector<1x8xf32>
    %312 = vector.broadcast %310 : vector<32x1xf32> to vector<32x8xf32>
    %313 = vector.broadcast %311 : vector<1x8xf32> to vector<32x8xf32>
    %314 = arith.mulf %312, %313 : vector<32x8xf32>
    %315 = arith.addf %309, %314 : vector<32x8xf32>
    %cst_115 = arith.constant dense<0.000000e+00> : vector<32x8xf32>
    %316 = tpu.matmul %1, %292, %cst_115 {dimension_numbers = #tpu.dot_dimension_numbers<[1], [0], [0], [1], [0, 0, 1, 1], [], []>} : vector<32x32xf32>, vector<32x8xf32>, vector<32x8xf32> -> vector<32x8xf32>
    %cst_116 = arith.constant dense<0.000000e+00> : vector<32x8xf32>
    %317 = tpu.matmul %1, %316, %cst_116 {dimension_numbers = #tpu.dot_dimension_numbers<[1], [0], [0], [1], [0, 0, 1, 1], [], []>} : vector<32x32xf32>, vector<32x8xf32>, vector<32x8xf32> -> vector<32x8xf32>
    %cst_117 = arith.constant 2.000000e+00 : f32
    %318 = vector.broadcast %cst_117 : f32 to vector<32x8xf32>
    %319 = arith.mulf %318, %317 : vector<32x8xf32>
    %320 = arith.subf %319, %292 : vector<32x8xf32>
    %cst_118 = arith.constant dense<0.000000e+00> : vector<32x8xf32>
    %321 = tpu.matmul %1, %320, %cst_118 {dimension_numbers = #tpu.dot_dimension_numbers<[1], [0], [0], [1], [0, 0, 1, 1], [], []>} : vector<32x32xf32>, vector<32x8xf32>, vector<32x8xf32> -> vector<32x8xf32>
    %cst_119 = arith.constant 2.000000e+00 : f32
    %322 = vector.broadcast %cst_119 : f32 to vector<32x8xf32>
    %323 = arith.mulf %322, %321 : vector<32x8xf32>
    %324 = arith.subf %323, %316 : vector<32x8xf32>
    %c0_120 = arith.constant 0 : index
    %c0_121 = arith.constant 0 : index
    %325 = vector.load %arg15[%c0_120, %c0_121] : memref<32x32xf32, #tpu.memory_space<vmem>>, vector<32x8xf32>
    tpu.vector_store %arg15[%c0_120, %c0_121], %292 {strides = array<i32>} : memref<32x32xf32, #tpu.memory_space<vmem>>, vector<32x8xf32>,
    %c0_122 = arith.constant 0 : index
    %c8_123 = arith.constant 8 : index
    %326 = vector.load %arg15[%c0_122, %c8_123] : memref<32x32xf32, #tpu.memory_space<vmem>>, vector<32x8xf32>
    tpu.vector_store %arg15[%c0_122, %c8_123], %316 {strides = array<i32>} : memref<32x32xf32, #tpu.memory_space<vmem>>, vector<32x8xf32>,
    %c0_124 = arith.constant 0 : index
    %c16_125 = arith.constant 16 : index
    %327 = vector.load %arg15[%c0_124, %c16_125] : memref<32x32xf32, #tpu.memory_space<vmem>>, vector<32x8xf32>
    tpu.vector_store %arg15[%c0_124, %c16_125], %320 {strides = array<i32>} : memref<32x32xf32, #tpu.memory_space<vmem>>, vector<32x8xf32>,
    %c0_126 = arith.constant 0 : index
    %c24_127 = arith.constant 24 : index
    %328 = vector.load %arg15[%c0_126, %c24_127] : memref<32x32xf32, #tpu.memory_space<vmem>>, vector<32x8xf32>
    tpu.vector_store %arg15[%c0_126, %c24_127], %324 {strides = array<i32>} : memref<32x32xf32, #tpu.memory_space<vmem>>, vector<32x8xf32>,
    %c0_128 = arith.constant 0 : index
    %c0_129 = arith.constant 0 : index
    %329 = vector.load %arg15[%c0_128, %c0_129] : memref<32x32xf32, #tpu.memory_space<vmem>>, vector<32x32xf32>
    %cst_130 = arith.constant dense<0.000000e+00> : vector<32x8xf32>
    %330 = tpu.matmul %329, %12, %cst_130 {dimension_numbers = #tpu.dot_dimension_numbers<[1], [0], [0], [1], [0, 0, 1, 1], [], []>} : vector<32x32xf32>, vector<32x8xf32>, vector<32x8xf32> -> vector<32x8xf32>
    %331 = arith.addf %315, %330 : vector<32x8xf32>
    %332 = vector.broadcast %15 : vector<1x8xf32> to vector<32x8xf32>
    %333 = arith.addf %331, %332 : vector<32x8xf32>
    %334 = arith.negf %333 : vector<32x8xf32>
    %335 = math.exp %334 : vector<32x8xf32>
    %cst_131 = arith.constant 1.000000e+00 : f32
    %336 = vector.broadcast %cst_131 : f32 to vector<32x8xf32>
    %337 = arith.addf %336, %335 : vector<32x8xf32>
    %338 = arith.divf %336, %337 : vector<32x8xf32>
    %339 = vector.extract_strided_slice %0 {offsets = [0, 7], sizes = [32, 1], strides = [1, 1]} : vector<32x8xf32> to vector<32x1xf32>
    %340 = vector.extract_strided_slice %11 {offsets = [0, 0], sizes = [1, 8], strides = [1, 1]} : vector<4x8xf32> to vector<1x8xf32>
    %341 = vector.broadcast %339 : vector<32x1xf32> to vector<32x8xf32>
    %342 = vector.broadcast %340 : vector<1x8xf32> to vector<32x8xf32>
    %343 = arith.mulf %341, %342 : vector<32x8xf32>
    %344 = vector.extract_strided_slice %2 {offsets = [0, 7], sizes = [32, 1], strides = [1, 1]} : vector<32x8xf32> to vector<32x1xf32>
    %345 = vector.extract_strided_slice %11 {offsets = [1, 0], sizes = [1, 8], strides = [1, 1]} : vector<4x8xf32> to vector<1x8xf32>
    %346 = vector.broadcast %344 : vector<32x1xf32> to vector<32x8xf32>
    %347 = vector.broadcast %345 : vector<1x8xf32> to vector<32x8xf32>
    %348 = arith.mulf %346, %347 : vector<32x8xf32>
    %349 = arith.addf %343, %348 : vector<32x8xf32>
    %350 = vector.extract_strided_slice %6 {offsets = [0, 7], sizes = [32, 1], strides = [1, 1]} : vector<32x8xf32> to vector<32x1xf32>
    %351 = vector.extract_strided_slice %11 {offsets = [2, 0], sizes = [1, 8], strides = [1, 1]} : vector<4x8xf32> to vector<1x8xf32>
    %352 = vector.broadcast %350 : vector<32x1xf32> to vector<32x8xf32>
    %353 = vector.broadcast %351 : vector<1x8xf32> to vector<32x8xf32>
    %354 = arith.mulf %352, %353 : vector<32x8xf32>
    %355 = arith.addf %349, %354 : vector<32x8xf32>
    %356 = vector.extract_strided_slice %10 {offsets = [0, 7], sizes = [32, 1], strides = [1, 1]} : vector<32x8xf32> to vector<32x1xf32>
    %357 = vector.extract_strided_slice %11 {offsets = [3, 0], sizes = [1, 8], strides = [1, 1]} : vector<4x8xf32> to vector<1x8xf32>
    %358 = vector.broadcast %356 : vector<32x1xf32> to vector<32x8xf32>
    %359 = vector.broadcast %357 : vector<1x8xf32> to vector<32x8xf32>
    %360 = arith.mulf %358, %359 : vector<32x8xf32>
    %361 = arith.addf %355, %360 : vector<32x8xf32>
    %cst_132 = arith.constant dense<0.000000e+00> : vector<32x8xf32>
    %362 = tpu.matmul %1, %338, %cst_132 {dimension_numbers = #tpu.dot_dimension_numbers<[1], [0], [0], [1], [0, 0, 1, 1], [], []>} : vector<32x32xf32>, vector<32x8xf32>, vector<32x8xf32> -> vector<32x8xf32>
    %cst_133 = arith.constant dense<0.000000e+00> : vector<32x8xf32>
    %363 = tpu.matmul %1, %362, %cst_133 {dimension_numbers = #tpu.dot_dimension_numbers<[1], [0], [0], [1], [0, 0, 1, 1], [], []>} : vector<32x32xf32>, vector<32x8xf32>, vector<32x8xf32> -> vector<32x8xf32>
    %cst_134 = arith.constant 2.000000e+00 : f32
    %364 = vector.broadcast %cst_134 : f32 to vector<32x8xf32>
    %365 = arith.mulf %364, %363 : vector<32x8xf32>
    %366 = arith.subf %365, %338 : vector<32x8xf32>
    %cst_135 = arith.constant dense<0.000000e+00> : vector<32x8xf32>
    %367 = tpu.matmul %1, %366, %cst_135 {dimension_numbers = #tpu.dot_dimension_numbers<[1], [0], [0], [1], [0, 0, 1, 1], [], []>} : vector<32x32xf32>, vector<32x8xf32>, vector<32x8xf32> -> vector<32x8xf32>
    %cst_136 = arith.constant 2.000000e+00 : f32
    %368 = vector.broadcast %cst_136 : f32 to vector<32x8xf32>
    %369 = arith.mulf %368, %367 : vector<32x8xf32>
    %370 = arith.subf %369, %362 : vector<32x8xf32>
    %c0_137 = arith.constant 0 : index
    %c0_138 = arith.constant 0 : index
    %371 = vector.load %arg15[%c0_137, %c0_138] : memref<32x32xf32, #tpu.memory_space<vmem>>, vector<32x8xf32>
    tpu.vector_store %arg15[%c0_137, %c0_138], %338 {strides = array<i32>} : memref<32x32xf32, #tpu.memory_space<vmem>>, vector<32x8xf32>,
    %c0_139 = arith.constant 0 : index
    %c8_140 = arith.constant 8 : index
    %372 = vector.load %arg15[%c0_139, %c8_140] : memref<32x32xf32, #tpu.memory_space<vmem>>, vector<32x8xf32>
    tpu.vector_store %arg15[%c0_139, %c8_140], %362 {strides = array<i32>} : memref<32x32xf32, #tpu.memory_space<vmem>>, vector<32x8xf32>,
    %c0_141 = arith.constant 0 : index
    %c16_142 = arith.constant 16 : index
    %373 = vector.load %arg15[%c0_141, %c16_142] : memref<32x32xf32, #tpu.memory_space<vmem>>, vector<32x8xf32>
    tpu.vector_store %arg15[%c0_141, %c16_142], %366 {strides = array<i32>} : memref<32x32xf32, #tpu.memory_space<vmem>>, vector<32x8xf32>,
    %c0_143 = arith.constant 0 : index
    %c24_144 = arith.constant 24 : index
    %374 = vector.load %arg15[%c0_143, %c24_144] : memref<32x32xf32, #tpu.memory_space<vmem>>, vector<32x8xf32>
    tpu.vector_store %arg15[%c0_143, %c24_144], %370 {strides = array<i32>} : memref<32x32xf32, #tpu.memory_space<vmem>>, vector<32x8xf32>,
    %c0_145 = arith.constant 0 : index
    %c0_146 = arith.constant 0 : index
    %375 = vector.load %arg15[%c0_145, %c0_146] : memref<32x32xf32, #tpu.memory_space<vmem>>, vector<32x32xf32>
    %cst_147 = arith.constant dense<0.000000e+00> : vector<32x8xf32>
    %376 = tpu.matmul %375, %12, %cst_147 {dimension_numbers = #tpu.dot_dimension_numbers<[1], [0], [0], [1], [0, 0, 1, 1], [], []>} : vector<32x32xf32>, vector<32x8xf32>, vector<32x8xf32> -> vector<32x8xf32>
    %377 = arith.addf %361, %376 : vector<32x8xf32>
    %378 = vector.broadcast %15 : vector<1x8xf32> to vector<32x8xf32>
    %379 = arith.addf %377, %378 : vector<32x8xf32>
    %380 = arith.negf %379 : vector<32x8xf32>
    %381 = math.exp %380 : vector<32x8xf32>
    %cst_148 = arith.constant 1.000000e+00 : f32
    %382 = vector.broadcast %cst_148 : f32 to vector<32x8xf32>
    %383 = arith.addf %382, %381 : vector<32x8xf32>
    %384 = arith.divf %382, %383 : vector<32x8xf32>
    %c0_149 = arith.constant 0 : index
    %c0_150 = arith.constant 0 : index
    %385 = vector.load %arg2[%c0_149, %c0_150] : memref<32x32xf32, #tpu.memory_space<vmem>>, vector<32x32xf32>
    %c0_151 = arith.constant 0 : index
    %c0_152 = arith.constant 0 : index
    %386 = vector.load %arg7[%c0_151, %c0_152] : memref<8x8xf32, #tpu.memory_space<vmem>>, vector<8x8xf32>
    %cst_153 = arith.constant dense<0.000000e+00> : vector<32x8xf32>
    %387 = tpu.matmul %384, %386, %cst_153 {dimension_numbers = #tpu.dot_dimension_numbers<[1], [0], [0], [1], [0, 0, 1, 1], [], []>} : vector<32x8xf32>, vector<8x8xf32>, vector<32x8xf32> -> vector<32x8xf32>
    %cst_154 = arith.constant dense<0.000000e+00> : vector<32x8xf32>
    %388 = tpu.matmul %385, %387, %cst_154 {dimension_numbers = #tpu.dot_dimension_numbers<[1], [0], [0], [1], [0, 0, 1, 1], [], []>} : vector<32x32xf32>, vector<32x8xf32>, vector<32x8xf32> -> vector<32x8xf32>
    %c0_155 = arith.constant 0 : index
    %c0_156 = arith.constant 0 : index
    %389 = vector.load %arg8[%c0_155, %c0_156] : memref<1x8xf32, #tpu.memory_space<vmem>>, vector<1x8xf32>
    %390 = vector.broadcast %389 : vector<1x8xf32> to vector<32x8xf32>
    %391 = arith.addf %388, %390 : vector<32x8xf32>
    %cst_157 = arith.constant 0.000000e+00 : f32
    %392 = vector.broadcast %cst_157 : f32 to vector<32x8xf32>
    %393 = arith.maximumf %391, %392 : vector<32x8xf32>
    %c0_158 = arith.constant 0 : index
    %c0_159 = arith.constant 0 : index
    %394 = vector.load %arg9[%c0_158, %c0_159] : memref<8x4xf32, #tpu.memory_space<vmem>>, vector<8x4xf32>
    %cst_160 = arith.constant dense<0.000000e+00> : vector<32x4xf32>
    %395 = tpu.matmul %393, %394, %cst_160 {dimension_numbers = #tpu.dot_dimension_numbers<[1], [0], [0], [1], [0, 0, 1, 1], [], []>} : vector<32x8xf32>, vector<8x4xf32>, vector<32x4xf32> -> vector<32x4xf32>
    %cst_161 = arith.constant dense<0.000000e+00> : vector<32x4xf32>
    %396 = tpu.matmul %385, %395, %cst_161 {dimension_numbers = #tpu.dot_dimension_numbers<[1], [0], [0], [1], [0, 0, 1, 1], [], []>} : vector<32x32xf32>, vector<32x4xf32>, vector<32x4xf32> -> vector<32x4xf32>
    %c0_162 = arith.constant 0 : index
    %c0_163 = arith.constant 0 : index
    %397 = vector.load %arg10[%c0_162, %c0_163] : memref<1x4xf32, #tpu.memory_space<vmem>>, vector<1x4xf32>
    %398 = vector.broadcast %397 : vector<1x4xf32> to vector<32x4xf32>
    %399 = arith.addf %396, %398 : vector<32x4xf32>
    %cst_164 = arith.constant 0.000000e+00 : f32
    %400 = vector.broadcast %cst_164 : f32 to vector<32x4xf32>
    %401 = arith.maximumf %399, %400 : vector<32x4xf32>
    %402 = vector.extract_strided_slice %401 {offsets = [0, 0], sizes = [32, 1], strides = [1, 1]} : vector<32x4xf32> to vector<32x1xf32>
    %c0_165 = arith.constant 0 : index
    %c0_166 = arith.constant 0 : index
    %c0_167 = arith.constant 0 : index
    %403 = vector.load %arg11[%c0_165, %c0_166, %c0_167] : memref<4x32x4xf32, #tpu.memory_space<vmem>>, vector<1x32x4xf32>
    %404 = vector.shape_cast %403 : vector<1x32x4xf32> to vector<32x4xf32>
    %405 = vector.broadcast %402 : vector<32x1xf32> to vector<32x4xf32>
    %406 = arith.mulf %405, %404 : vector<32x4xf32>
    %407 = vector.extract_strided_slice %401 {offsets = [0, 1], sizes = [32, 1], strides = [1, 1]} : vector<32x4xf32> to vector<32x1xf32>
    %c1 = arith.constant 1 : index
    %c0_168 = arith.constant 0 : index
    %c0_169 = arith.constant 0 : index
    %408 = vector.load %arg11[%c1, %c0_168, %c0_169] : memref<4x32x4xf32, #tpu.memory_space<vmem>>, vector<1x32x4xf32>
    %409 = vector.shape_cast %408 : vector<1x32x4xf32> to vector<32x4xf32>
    %410 = vector.broadcast %407 : vector<32x1xf32> to vector<32x4xf32>
    %411 = arith.mulf %410, %409 : vector<32x4xf32>
    %412 = arith.addf %406, %411 : vector<32x4xf32>
    %413 = vector.extract_strided_slice %401 {offsets = [0, 2], sizes = [32, 1], strides = [1, 1]} : vector<32x4xf32> to vector<32x1xf32>
    %c2 = arith.constant 2 : index
    %c0_170 = arith.constant 0 : index
    %c0_171 = arith.constant 0 : index
    %414 = vector.load %arg11[%c2, %c0_170, %c0_171] : memref<4x32x4xf32, #tpu.memory_space<vmem>>, vector<1x32x4xf32>
    %415 = vector.shape_cast %414 : vector<1x32x4xf32> to vector<32x4xf32>
    %416 = vector.broadcast %413 : vector<32x1xf32> to vector<32x4xf32>
    %417 = arith.mulf %416, %415 : vector<32x4xf32>
    %418 = arith.addf %412, %417 : vector<32x4xf32>
    %419 = vector.extract_strided_slice %401 {offsets = [0, 3], sizes = [32, 1], strides = [1, 1]} : vector<32x4xf32> to vector<32x1xf32>
    %c3 = arith.constant 3 : index
    %c0_172 = arith.constant 0 : index
    %c0_173 = arith.constant 0 : index
    %420 = vector.load %arg11[%c3, %c0_172, %c0_173] : memref<4x32x4xf32, #tpu.memory_space<vmem>>, vector<1x32x4xf32>
    %421 = vector.shape_cast %420 : vector<1x32x4xf32> to vector<32x4xf32>
    %422 = vector.broadcast %419 : vector<32x1xf32> to vector<32x4xf32>
    %423 = arith.mulf %422, %421 : vector<32x4xf32>
    %424 = arith.addf %418, %423 : vector<32x4xf32>
    %c0_174 = arith.constant 0 : index
    %c0_175 = arith.constant 0 : index
    %425 = vector.load %arg13[%c0_174, %c0_175] : memref<2x32xf32, #tpu.memory_space<vmem>>, vector<2x32xf32>
    %cst_176 = arith.constant dense<0.000000e+00> : vector<2x4xf32>
    %426 = tpu.matmul %425, %424, %cst_176 {dimension_numbers = #tpu.dot_dimension_numbers<[1], [0], [0], [1], [0, 0, 1, 1], [], []>} : vector<2x32xf32>, vector<32x4xf32>, vector<2x4xf32> -> vector<2x4xf32>
    %c0_177 = arith.constant 0 : index
    %c0_178 = arith.constant 0 : index
    %427 = vector.load %arg12[%c0_177, %c0_178] : memref<1x4xf32, #tpu.memory_space<vmem>>, vector<1x4xf32>
    %428 = vector.broadcast %427 : vector<1x4xf32> to vector<2x4xf32>
    %429 = arith.addf %426, %428 : vector<2x4xf32>
    %cst_179 = arith.constant dense<0xFF800000> : vector<2xf32>
    %430 = vector.multi_reduction <maximumf>, %429, %cst_179 [1] : vector<2x4xf32> to vector<2xf32>
    %431 = vector.shape_cast %430 : vector<2xf32> to vector<2x1xf32>
    %432 = vector.broadcast %431 : vector<2x1xf32> to vector<2x4xf32>
    %433 = arith.subf %429, %432 : vector<2x4xf32>
    %434 = math.exp %433 : vector<2x4xf32>
    %cst_180 = arith.constant dense<0.000000e+00> : vector<2xf32>
    %435 = vector.multi_reduction <add>, %434, %cst_180 [1] : vector<2x4xf32> to vector<2xf32>
    %436 = vector.shape_cast %435 : vector<2xf32> to vector<2x1xf32>
    %437 = math.log %436 : vector<2x1xf32>
    %438 = arith.addf %437, %431 : vector<2x1xf32>
    %439 = vector.broadcast %438 : vector<2x1xf32> to vector<2x4xf32>
    %440 = arith.subf %429, %439 : vector<2x4xf32>
    %c0_181 = arith.constant 0 : index
    %c0_182 = arith.constant 0 : index
    %441 = vector.load %arg14[%c0_181, %c0_182] : memref<2x4xf32, #tpu.memory_space<vmem>>, vector<2x4xf32>
    tpu.vector_store %arg14[%c0_181, %c0_182], %440 {strides = array<i32>} : memref<2x4xf32, #tpu.memory_space<vmem>>, vector<2x4xf32>,
    return
  }
}

</mosaic_0001>

<bundles_post_ra>
// kernel: tpu_custom_call.1
= control target key start
LH: loop header
LB: loop body
LE: loop exit
PB: predicated region body
PF: predicated region fallthrough
CT: control target
= control target key end

     0   :  { %vm56_vm0 = vcmask 261120   ;;  %s8444_s0 = inlined_call_operand.vmem [shape: f32[32,8], index: 0, kind: input, shape index: {}]   ;;  %s8445_s1 = inlined_call_operand.vmem [shape: f32[32,32], index: 1, kind: input, shape index: {}]   ;;  %s8446_s2 = inlined_call_operand.vmem [shape: f32[32,32], index: 2, kind: input, shape index: {}]   ;;  %s8447_s3 = inlined_call_operand.vmem [shape: f32[4,8], index: 3, kind: input, shape index: {}]   ;;  %s8448_s4 = inlined_call_operand.vmem [shape: f32[1,8], index: 4, kind: input, shape index: {}]   ;;  %s8449_s5 = inlined_call_operand.vmem [shape: f32[32,8], index: 5, kind: input, shape index: {}]   ;;  %s8450_s6 = inlined_call_operand.vmem [shape: f32[1,8], index: 6, kind: input, shape index: {}]   ;;  %s8451_s7 = inlined_call_operand.vmem [shape: f32[8,8], index: 7, kind: input, shape index: {}]   ;;  %s8452_s8 = inlined_call_operand.vmem [shape: f32[1,8], index: 8, kind: input, shape index: {}]   ;;  %s8453_s9 = inlined_call_operand.vmem [shape: f32[8,4], index: 9, kind: input, shape index: {}]   ;;  %s8454_s10 = inlined_call_operand.vmem [shape: f32[1,4], index: 10, kind: input, shape index: {}]   ;;  %s8455_s11 = inlined_call_operand.vmem [shape: f32[4,32,4], index: 11, kind: input, shape index: {}]   ;;  %s8456_s12 = inlined_call_operand.vmem [shape: f32[1,4], index: 12, kind: input, shape index: {}]   ;;  %s8457_s13 = inlined_call_operand.vmem [shape: f32[2,32], index: 13, kind: input, shape index: {}]   ;;  %s8458_s14 = inlined_call_operand.hbm [shape: f32[2,4], index: 14, kind: output, shape index: {}]  }
   0x1   :  { %v7153_v0 = vld [vmem:[%s8444_s0] sm:$0xff]  ;;  %v7158_v1 = vld [vmem:[%s8444_s0 + $0x8] sm:$0xff]  ;;  %v7163_v2 = vld [vmem:[%s8444_s0 + $0x10] sm:$0xff] }
   0x2   :  { %v6546_v3 = vpack.c.bf16 %v7158_v1, %v7153_v0  ;;  %v7170_v4 = vld [vmem:[%s8444_s0 + $0x18] sm:$0xff]  ;;  %v7175_v5 = vld [vmem:[%s8445_s1] sm:$0xff] }
   0x3   :  { %v6550_v6 = vpack.c.bf16 %v7170_v4, %v7163_v2  ;;  %6015 = vmatprep.mubr.msk.f32.mxu0 %vm56_vm0, %v7175_v5  ;;  %6029 = vmatprep.mubr.msk.f32.mxu1 %vm56_vm0, %v7175_v5 }
   0x4   :  { %19 = vsyncpa [#allocation4], 0  ;;  %6547 = vmatprep.subr.bf16.mxu0 %v6546_v3  ;;  %v7186_v7 = vld [vmem:[%s8445_s1 + $0x8] sm:$0xff]  ;;  %v7191_v8 = vld [vmem:[%s8445_s1 + $0x10] sm:$0xff]  ;;  %v7060_v16 = vmov 0.0   ;;  %vm739_vm1 = vcmask 64512  }
   0x5   :  { %6549 = vmatpush3.bf16.msra.mxu0 %v6546_v3  ;;  %v7200_v9 = vld [vmem:[%s8445_s1 + $0x18] sm:$0xff]  ;;  %741 = vst.msk [vmem:[#allocation2 + $0x8] sm:$0xff] %vm739_vm1, %v7060_v16  ;;  %740 = vst.msk [vmem:[#allocation2] sm:$0xff] %vm739_vm1, %v7060_v16  ;;  %s7061_s29 = smov 8   ;;  %vm760_vm2 = vcmask 130112   ;;  %s7062_s30 = smov 16  }
   0x6   :  { %6551 = vmatprep.subr.bf16.mxu0 %v6550_v6  ;;  %742 = vst.msk [vmem:[#allocation2 + $0x10] sm:$0xff] %vm739_vm1, %v7060_v16  ;;  %743 = vst.msk [vmem:[#allocation2 + $0x18] sm:$0xff] %vm739_vm1, %v7060_v16  ;;  %v7063_v63 = vmov 0   ;;  %vm781_vm3 = vcmask 195712   ;;  %s7064_s23 = smov 24   ;;  %vm802_vm4 = vcmask 261312  }
   0x7   :  { %6856 = vset.pattern.permute.xlu1 %v7063_v63  ;;  %6855 = vset.pattern.permute.xlu0 %v7063_v63  ;;  %vm7073_vm5 = vmmov 0   ;;  %vm5466_vm6 = vcmask 25600  }
   0x9   :  { %6553 = vmatpush3.bf16.msra.mxu0 %v6550_v6 }
   0xc   :  { %6016 = vmatmul.mubr.msk.f32.vlgmr.msra.gmra.mrb[0].mxu0 %vm56_vm0, %v7186_v7 }
   0xd   :  { %6018 = vmatprep.mubr.msk.f32.mxu0 %vm56_vm0, %v7191_v8 }
  0x10   :  { %6019 = vmatmul.mubr.msk.f32.gmra.mrb[2].mxu0 %vm56_vm0, %v7200_v9 }
  0x11   :  { %6043 = vmatprep.mubr.msk.f32.mxu0 %vm56_vm0, %v7175_v5 }
  0xdf   :  { %v7206_v10 = vpop.f32.mrb[0].mxu0 }
  0xe0   :  { %v7208_v11 = vpop.f32.mrb[1].mxu0 }
  0xe1   :  { %v6554_v12 = vpack.c.bf16 %v7206_v10, %v7208_v11 }
  0xe3   :  { %v7212_v13 = vpop.f32.mrb[2].mxu0  ;;  %6555 = vmatprep.subr.bf16.mxu1 %v6554_v12 }
  0xe4   :  { %v7214_v14 = vpop.f32.mrb[3].mxu0  ;;  %6557 = vmatpush3.bf16.msra.mxu1 %v6554_v12 }
  0xe5   :  { %v6558_v15 = vpack.c.bf16 %v7212_v13, %v7214_v14 }
  0xe7   :  { %6559 = vmatprep.subr.bf16.mxu1 %v6558_v15 }
  0xe8   :  { %6561 = vmatpush3.bf16.msra.mxu1 %v6558_v15 }
  0xe9   :  { %6049 = vmatprep.subr.mxu1 %v7060_v16 }
  0xeb   :  { %6030 = vmatmul.mubr.msk.f32.vlgmr.msra.gmra.mrb[0].mxu1 %vm56_vm0, %v7186_v7 }
  0xec   :  { %6032 = vmatprep.mubr.msk.f32.mxu1 %vm56_vm0, %v7191_v8  ;;  %6050 = vmatpush3.msra.mxu1 %v7060_v16 }
  0xef   :  { %6033 = vmatmul.mubr.msk.f32.gmra.mrb[2].mxu1 %vm56_vm0, %v7200_v9 }
  0xf0   :  { %6051 = vmatprep.mubr.msk.f32.mxu1 %vm56_vm0, %v7175_v5 }
  0xf3   :  { %6052 = vmatmul.mubr.msk.f32.vlgmr.msra.gmra.mrb[4].mxu1 %vm56_vm0, %v7186_v7 }
  0xf4   :  { %6054 = vmatprep.mubr.msk.f32.mxu1 %vm56_vm0, %v7191_v8 }
  0xf7   :  { %6055 = vmatmul.mubr.msk.f32.gmra.mrb[6].mxu1 %vm56_vm0, %v7200_v9 }
  0xf8   :  { %6079 = vmatprep.mubr.msk.f32.mxu1 %vm56_vm0, %v7175_v5 }
 0x1be   :  { %v6031_v17 = vpop.f32.mrb[0].mxu1 }
 0x1bf   :  { %v240_v18 = vmul.f32 2.0, %v6031_v17  ;;  %v220_v19 = vpop.f32.mrb[1].mxu1  ;;  %v341_v17 = vld [vmem:[%s8449_s5] sm:$0xff] }
 0x1c0   :  { %v239_v20 = vmul.f32 2.0, %v220_v19 }
 0x1c1   :  { %v7245_v21 = vsub.f32 %v240_v18, %v7158_v1  ;;  %v342_v18 = vld [vmem:[%s8449_s5 + $0x8] sm:$0xff] }
 0x1c2   :  { %v7248_v22 = vsub.f32 %v239_v20, %v7153_v0  ;;  %v6034_v23 = vpop.f32.mrb[2].mxu1  ;;  %v7334_v19 = vpack.c.bf16 %v342_v18, %v341_v17  ;;  %v343_v20 = vld [vmem:[%s8449_s5 + $0x10] sm:$0xff] }
 0x1c3   :  { %v242_v24 = vmul.f32 2.0, %v6034_v23  ;;  %v230_v25 = vpop.f32.mrb[3].mxu1  ;;  %v344_v23 = vld [vmem:[%s8449_s5 + $0x18] sm:$0xff] }
 0x1c4   :  { %v241_v26 = vmul.f32 2.0, %v230_v25  ;;  %v6562_v27 = vpack.c.bf16 %v7245_v21, %v7248_v22 }
 0x1c5   :  { %v7253_v28 = vsub.f32 %v242_v24, %v7170_v4  ;;  %v7344_v24 = vpack.c.bf16 %v344_v23, %v343_v20 }
 0x1c6   :  { %v7256_v29 = vsub.f32 %v241_v26, %v7163_v2  ;;  %6563 = vmatprep.subr.bf16.mxu0 %v6562_v27  ;;  %v7258_v30 = vpop.f32.mrb[4].mxu1 }
 0x1c7   :  { %6565 = vmatpush3.bf16.msra.mxu0 %v6562_v27  ;;  %750 = vrot.lane.b32.xlu0 %v7258_v30, %s7061_s29  ;;  %v7262_v31 = vpop.f32.mrb[5].mxu1 }
 0x1c8   :  { %v6566_v32 = vpack.c.bf16 %v7253_v28, %v7256_v29  ;;  %v6570_v33 = vpack.c.bf16 %v7258_v30, %v7262_v31 }
 0x1ca   :  { %6567 = vmatprep.subr.bf16.mxu0 %v6566_v32  ;;  %v7268_v34 = vpop.f32.mrb[6].mxu1 }
 0x1cb   :  { %748 = vrot.lane.b32.xlu0 %v7262_v31, %s7061_s29  ;;  %6569 = vmatpush3.bf16.msra.mxu0 %v6566_v32  ;;  %v7272_v35 = vpop.f32.mrb[7].mxu1 }
 0x1cc   :  { %6571 = vmatprep.subr.bf16.mxu0 %v6570_v33  ;;  %v6574_v36 = vpack.c.bf16 %v7268_v34, %v7272_v35  ;;  %754 = vrot.lane.b32.xlu1 %v7268_v34, %s7061_s29 }
 0x1ce   :  { %6044 = vmatmul.mubr.msk.f32.vlgmr.msra.gmra.mrb[4].mxu0 %vm56_vm0, %v7186_v7 }
 0x1cf   :  { %752 = vrot.lane.b32.xlu0 %v7272_v35, %s7061_s29  ;;  %6573 = vmatpush3.bf16.msra.mxu0 %v6570_v33 }
 0x1d0   :  { %6046 = vmatprep.mubr.msk.f32.mxu0 %vm56_vm0, %v7191_v8  ;;  %6575 = vmatprep.subr.bf16.mxu0 %v6574_v36 }
 0x1d2   :  { %6047 = vmatmul.mubr.msk.f32.gmra.mrb[6].mxu0 %vm56_vm0, %v7200_v9 }
 0x1d3   :  { %6577 = vmatpush3.bf16.msra.mxu0 %v6574_v36  ;;  %6065 = vmatprep.mubr.msk.f32.mxu0 %vm56_vm0, %v7175_v5 }
 0x1d4   :  { %6587 = vmatprep.subr.bf16.mxu0 %v7334_v19 }
 0x1d6   :  { %6066 = vmatmul.mubr.msk.f32.vlgmr.msra.gmra.mrb[8].mxu0 %vm56_vm0, %v7186_v7 }
 0x1d7   :  { %6068 = vmatprep.mubr.msk.f32.mxu0 %vm56_vm0, %v7191_v8  ;;  %6589 = vmatpush3.bf16.msra.mxu0 %v7334_v19 }
 0x1d8   :  { %6591 = vmatprep.subr.bf16.mxu0 %v7344_v24 }
 0x1da   :  { %6069 = vmatmul.mubr.msk.f32.gmra.mrb[10].mxu0 %vm56_vm0, %v7200_v9 }
 0x1db   :  { %6593 = vmatpush3.bf16.msra.mxu0 %v7344_v24 }
 0x239   :  { %v751_v37 = vpop.permute.xlu0 %750 }
 0x23a   :  { %762 = vst.msk [vmem:[#allocation2 + $0x8] sm:$0xff] %vm760_vm2, %v751_v37 }
 0x23d   :  { %v749_v38 = vpop.permute.xlu0 %748 }
 0x23e   :  { %761 = vst.msk [vmem:[#allocation2] sm:$0xff] %vm760_vm2, %v749_v38  ;;  %v755_v39 = vpop.permute.xlu1 %754 }
 0x23f   :  { %764 = vst.msk [vmem:[#allocation2 + $0x18] sm:$0xff] %vm760_vm2, %v755_v39 }
 0x241   :  { %v753_v40 = vpop.permute.xlu0 %752 }
 0x242   :  { %763 = vst.msk [vmem:[#allocation2 + $0x10] sm:$0xff] %vm760_vm2, %v753_v40 }
 0x2a1   :  { %v6045_v41 = vpop.f32.mrb[4].mxu0 }
 0x2a2   :  { %v333_v42 = vmul.f32 2.0, %v6045_v41  ;;  %v313_v43 = vpop.f32.mrb[5].mxu0 }
 0x2a3   :  { %v332_v44 = vmul.f32 2.0, %v313_v43 }
 0x2a4   :  { %v7299_v45 = vsub.f32 %v333_v42, %v7206_v10 }
 0x2a5   :  { %v7302_v46 = vsub.f32 %v332_v44, %v7208_v11  ;;  %v6048_v47 = vpop.f32.mrb[6].mxu0 }
 0x2a6   :  { %v335_v48 = vmul.f32 2.0, %v6048_v47  ;;  %v323_v49 = vpop.f32.mrb[7].mxu0 }
 0x2a7   :  { %v334_v50 = vmul.f32 2.0, %v323_v49 }
 0x2a8   :  { %v7305_v51 = vsub.f32 %v335_v48, %v7212_v13 }
 0x2a9   :  { %v7308_v52 = vsub.f32 %v334_v50, %v7214_v14  ;;  %v6067_v53 = vpop.f32.mrb[8].mxu0 }
 0x2aa   :  { %v643_v54 = vmul.f32 2.0, %v6067_v53  ;;  %v623_v55 = vpop.f32.mrb[9].mxu0 }
 0x2ab   :  { %v642_v56 = vmul.f32 2.0, %v623_v55 }
 0x2ac   :  { %771 = vrot.lane.b32.xlu1 %v643_v54, %s7062_s30 }
 0x2ad   :  { %v6578_v57 = vpack.c.bf16 %v643_v54, %v642_v56  ;;  %v6070_v58 = vpop.f32.mrb[10].mxu0 }
 0x2ae   :  { %v645_v59 = vmul.f32 2.0, %v6070_v58  ;;  %v633_v60 = vpop.f32.mrb[11].mxu0 }
 0x2af   :  { %v644_v61 = vmul.f32 2.0, %v633_v60  ;;  %6579 = vmatprep.subr.bf16.mxu1 %v6578_v57 }
 0x2b0   :  { %769 = vrot.lane.b32.xlu1 %v642_v56, %s7062_s30  ;;  %6581 = vmatpush3.bf16.msra.mxu1 %v6578_v57 }
 0x2b1   :  { %v6582_v62 = vpack.c.bf16 %v645_v59, %v644_v61  ;;  %773 = vrot.lane.b32.xlu0 %v644_v61, %s7062_s30 }
 0x2b3   :  { %6583 = vmatprep.subr.bf16.mxu1 %v6582_v62 }
 0x2b4   :  { %775 = vrot.lane.b32.xlu1 %v645_v59, %s7062_s30  ;;  %6585 = vmatpush3.bf16.msra.mxu1 %v6582_v62  ;;  %v368_v59 = vlaneseq }
 0x2b6   :  { %v369_v61 = vshrl.u32 %v368_v59, 7 }
 0x2b7   :  { %6080 = vmatmul.mubr.msk.f32.vlgmr.msra.gmra.mrb[8].mxu1 %vm56_vm0, %v7186_v7 }
 0x2b8   :  { %6082 = vmatprep.mubr.msk.f32.mxu1 %vm56_vm0, %v7191_v8  ;;  %v430_v17 = vsub.s32 2, %v369_v61 }
 0x2bb   :  { %6083 = vmatmul.mubr.msk.f32.gmra.mrb[10].mxu1 %vm56_vm0, %v7200_v9 }
 0x2bc   :  { %6107 = vmatprep.mubr.msk.f32.mxu1 %vm56_vm0, %v7175_v5 }
 0x31e   :  { %v772_v3 = vpop.permute.xlu1 %771 }
 0x31f   :  { %783 = vst.msk [vmem:[#allocation2 + $0x8] sm:$0xff] %vm781_vm3, %v772_v3  ;;  %v370_v3 = vsub.s32 0, %v369_v61 }
 0x322   :  { %v770_v6 = vpop.permute.xlu1 %769 }
 0x323   :  { %782 = vst.msk [vmem:[#allocation2] sm:$0xff] %vm781_vm3, %v770_v6  ;;  %v774_v12 = vpop.permute.xlu0 %773  ;;  %v398_v6 = vsub.s32 1, %v369_v61 }
 0x324   :  { %784 = vst.msk [vmem:[#allocation2 + $0x10] sm:$0xff] %vm781_vm3, %v774_v12  ;;  %v340_v12 = vld [vmem:[%s8447_s3] sm:$0xf] }
 0x325   :  { %v7385_v20 = vrot.slane %v340_v12, %v370_v3  ;;  %v7387_v23 = vrot.slane %v340_v12, %v398_v6 }
 0x326   :  { %v776_v15 = vpop.permute.xlu1 %775 }
 0x327   :  { %785 = vst.msk [vmem:[#allocation2 + $0x18] sm:$0xff] %vm781_vm3, %v776_v15 }
 0x38a   :  { %v6081_v25 = vpop.f32.mrb[8].mxu1 }
 0x38b   :  { %v732_v26 = vmul.f32 2.0, %v6081_v25  ;;  %v712_v27 = vpop.f32.mrb[9].mxu1  ;;  %v462_v25 = vsub.s32 3, %v369_v61 }
 0x38c   :  { %v731_v32 = vmul.f32 2.0, %v712_v27 }
 0x38d   :  { %v736_v33 = vsub.f32 %v732_v26, %v7258_v30  ;;  %v7389_v26 = vrot.slane %v340_v12, %v430_v17 }
 0x38e   :  { %v735_v36 = vsub.f32 %v731_v32, %v7262_v31  ;;  %v6084_v37 = vpop.f32.mrb[10].mxu1 }
 0x38f   :  { %v734_v38 = vmul.f32 2.0, %v6084_v37  ;;  %792 = vrot.lane.b32.xlu1 %v736_v33, %s7064_s23  ;;  %v722_v39 = vpop.f32.mrb[11].mxu1 }
 0x390   :  { %v733_v40 = vmul.f32 2.0, %v722_v39  ;;  %790 = vrot.lane.b32.xlu0 %v735_v36, %s7064_s23  ;;  %v7393_v36 = vrot.slane %v340_v12, %v462_v25  ;;  %v346_v39 = vld [vmem:[%s8450_s6] sm:$0x1] }
 0x391   :  { %v738_v41 = vsub.f32 %v734_v38, %v7268_v34  ;;  %v345_v38 = vld [vmem:[%s8448_s4] sm:$0x1] }
 0x392   :  { %v737_v42 = vsub.f32 %v733_v40, %v7272_v35 }
 0x393   :  { %796 = vrot.lane.b32.xlu1 %v738_v41, %s7064_s23 }
 0x394   :  { %794 = vrot.lane.b32.xlu0 %v737_v42, %s7064_s23 }
 0x397   :  { %355 = vperm.xlu1 %6856, %v7158_v1  }
 0x398   :  { %350 = vperm.xlu0 %6855, %v7153_v0  }
 0x39b   :  { %378 = vperm.xlu1 %6856, %v7208_v11  }
 0x39c   :  { %383 = vperm.xlu0 %6855, %v7206_v10  }
 0x39f   :  { %410 = vperm.xlu1 %6856, %v7248_v22  }
 0x3a0   :  { %415 = vperm.xlu0 %6855, %v7245_v21  }
 0x3a3   :  { %360 = vperm.xlu1 %6856, %v7163_v2  }
 0x3a4   :  { %365 = vperm.xlu0 %6855, %v7170_v4  }
 0x3a7   :  { %388 = vperm.xlu1 %6856, %v7214_v14  }
 0x3a8   :  { %393 = vperm.xlu0 %6855, %v7212_v13  }
 0x3ab   :  { %442 = vperm.xlu1 %6856, %v7302_v46  }
 0x3ac   :  { %447 = vperm.xlu0 %6855, %v7299_v45  }
 0x3af   :  { %420 = vperm.xlu1 %6856, %v7256_v29  }
 0x3b0   :  { %425 = vperm.xlu0 %6855, %v7253_v28  }
 0x3b3   :  { %452 = vperm.xlu1 %6856, %v7308_v52  }
 0x3b4   :  { %457 = vperm.xlu0 %6855, %v7305_v51  }
 0x401   :  { %v793_v30 = vpop.permute.xlu1 %792 }
 0x402   :  { %804 = vst.msk [vmem:[#allocation2 + $0x8] sm:$0xff] %vm802_vm4, %v793_v30  ;;  %v791_v31 = vpop.permute.xlu0 %790 }
 0x403   :  { %803 = vst.msk [vmem:[#allocation2] sm:$0xff] %vm802_vm4, %v791_v31  ;;  %v347_v31 = vadd.f32 %v346_v39, %v345_v38 }
 0x405   :  { %v797_v34 = vpop.permute.xlu1 %796  ;;  %v7414_v12 = vrot.slane %v347_v31, %v370_v3 }
 0x406   :  { %806 = vst.msk [vmem:[#allocation2 + $0x18] sm:$0xff] %vm802_vm4, %v797_v34  ;;  %v795_v35 = vpop.permute.xlu0 %794 }
 0x407   :  { %805 = vst.msk [vmem:[#allocation2 + $0x10] sm:$0xff] %vm802_vm4, %v795_v35 }
 0x409   :  { %v808_v44 = vld [vmem:[#allocation2 + $0x8] sm:$0xff] }
 0x40a   :  { %v807_v43 = vld [vmem:[#allocation2] sm:$0xff] }
 0x40b   :  { %6093 = vmatprep.mubr.msk.f32.mxu0 %vm56_vm0, %v807_v43 }
 0x40c   :  { %6094 = vmatmul.mubr.msk.f32.vlgmr.msra.gmra.mrb[12].mxu0 %vm56_vm0, %v808_v44 }
 0x40d   :  { %v810_v48 = vld [vmem:[#allocation2 + $0x18] sm:$0xff] }
 0x40e   :  { %v809_v47 = vld [vmem:[#allocation2 + $0x10] sm:$0xff] }
 0x40f   :  { %6096 = vmatprep.mubr.msk.f32.mxu0 %vm56_vm0, %v809_v47 }
 0x410   :  { %6097 = vmatmul.mubr.msk.f32.gmra.mrb[14].mxu0 %vm56_vm0, %v810_v48 }
 0x411   :  { %6121 = vmatprep.mubr.msk.f32.mxu0 %vm56_vm0, %v7175_v5 }
 0x416   :  { %v356_v50 = vpop.permute.xlu1 %355 }
 0x417   :  { %v351_v49 = vpop.permute.xlu0 %350  ;;  %v373_v32 = vmul.f32 %v7385_v20, %v356_v50 }
 0x418   :  { %v372_v40 = vmul.f32 %v7385_v20, %v351_v49 }
 0x41a   :  { %v379_v54 = vpop.permute.xlu1 %378 }
 0x41b   :  { %v384_v53 = vpop.permute.xlu0 %383  ;;  %v400_v41 = vmul.f32 %v7387_v23, %v379_v54 }
 0x41c   :  { %v401_v33 = vmul.f32 %v7387_v23, %v384_v53 }
 0x41d   :  { %v404_v47 = vadd.f32 %v400_v41, %v372_v40 }
 0x41e   :  { %v411_v56 = vpop.permute.xlu1 %410  ;;  %v405_v34 = vadd.f32 %v401_v33, %v373_v32 }
 0x41f   :  { %v416_v55 = vpop.permute.xlu0 %415  ;;  %v432_v30 = vmul.f32 %v7389_v26, %v411_v56 }
 0x420   :  { %v433_v42 = vmul.f32 %v7389_v26, %v416_v55 }
 0x421   :  { %v436_v59 = vadd.f32 %v432_v30, %v404_v47 }
 0x422   :  { %v361_v58 = vpop.permute.xlu1 %360  ;;  %v437_v54 = vadd.f32 %v433_v42, %v405_v34 }
 0x423   :  { %v366_v57 = vpop.permute.xlu0 %365  ;;  %v374_v48 = vmul.f32 %v7385_v20, %v361_v58 }
 0x424   :  { %v375_v35 = vmul.f32 %v7385_v20, %v366_v57 }
 0x426   :  { %v389_v62 = vpop.permute.xlu1 %388 }
 0x427   :  { %v394_v60 = vpop.permute.xlu0 %393  ;;  %v402_v50 = vmul.f32 %v7387_v23, %v389_v62 }
 0x428   :  { %v403_v43 = vmul.f32 %v7387_v23, %v394_v60 }
 0x42a   :  { %v443_v18 = vpop.permute.xlu1 %442  ;;  %v407_v57 = vadd.f32 %v403_v43, %v375_v35 }
 0x42b   :  { %v448_v15 = vpop.permute.xlu0 %447  ;;  %v464_v49 = vmul.f32 %v7393_v36, %v443_v18 }
 0x42c   :  { %v465_v44 = vmul.f32 %v7393_v36, %v448_v15  ;;  %v406_v15 = vadd.f32 %v402_v50, %v374_v48 }
 0x42d   :  { %v468_v17 = vadd.f32 %v464_v49, %v436_v59 }
 0x42e   :  { %v421_v37 = vpop.permute.xlu1 %420  ;;  %v469_v6 = vadd.f32 %v465_v44, %v437_v54 }
 0x42f   :  { %v426_v27 = vpop.permute.xlu0 %425  ;;  %v434_v61 = vmul.f32 %v7389_v26, %v421_v37 }
 0x430   :  { %v435_v55 = vmul.f32 %v7389_v26, %v426_v27 }
 0x431   :  { %v438_v33 = vadd.f32 %v434_v61, %v406_v15 }
 0x432   :  { %v453_v56 = vpop.permute.xlu1 %452  ;;  %v439_v18 = vadd.f32 %v435_v55, %v407_v57 }
 0x433   :  { %v458_v53 = vpop.permute.xlu0 %457  ;;  %v466_v58 = vmul.f32 %v7393_v36, %v453_v56 }
 0x434   :  { %v467_v60 = vmul.f32 %v7393_v36, %v458_v53 }
 0x435   :  { %v470_v41 = vadd.f32 %v466_v58, %v438_v33 }
 0x436   :  { %v471_v39 = vadd.f32 %v467_v60, %v439_v18 }
 0x4df   :  { %v6095_v62 = vpop.f32.mrb[12].mxu0 }
 0x4e0   :  { %v909_v25 = vadd.f32 %v6095_v62, %v469_v6  ;;  %v889_v32 = vpop.f32.mrb[13].mxu0 }
 0x4e1   :  { %v908_v27 = vadd.f32 %v889_v32, %v468_v17 }
 0x4e2   :  { %v919_v38 = vadd.f32 %v7414_v12, %v909_v25 }
 0x4e3   :  { %v918_v37 = vadd.f32 %v7414_v12, %v908_v27  ;;  %v6098_v40 = vpop.f32.mrb[14].mxu0 }
 0x4e4   :  { %v5524_v42 = vmul.f32 -1.442695, %v919_v38  ;;  %v911_v3 = vadd.f32 %v6098_v40, %v471_v39  ;;  %v899_v30 = vpop.f32.mrb[15].mxu0 }
 0x4e5   :  { %v5523_v31 = vmul.f32 -1.442695, %v918_v37  ;;  %v910_v34 = vadd.f32 %v899_v30, %v470_v41 }
 0x4e6   :  { %6887 = vpow2.f32 %v5524_v42  ;;  %v921_v35 = vadd.f32 %v7414_v12, %v911_v3 }
 0x4e7   :  { %6889 = vpow2.f32 %v5523_v31  ;;  %v920_v43 = vadd.f32 %v7414_v12, %v910_v34 }
 0x4e8   :  { %v5526_v44 = vmul.f32 -1.442695, %v921_v35 }
 0x4e9   :  { %v5525_v47 = vmul.f32 -1.442695, %v920_v43 }
 0x4ea   :  { %6891 = vpow2.f32 %v5526_v44 }
 0x4eb   :  { %6893 = vpow2.f32 %v5525_v47 }
 0x4f0   :  { %v6888_v48 = vpop.eup %6887 }
 0x4f1   :  { %v6890_v50 = vpop.eup %6889  ;;  %v935_v49 = vadd.f32 1.0, %v6888_v48 }
 0x4f2   :  { %v934_v53 = vadd.f32 1.0, %v6890_v50 }
 0x4f3   :  { %6895 = vrcp.f32 %v935_v49 }
 0x4f4   :  { %v6892_v54 = vpop.eup %6891  ;;  %6897 = vrcp.f32 %v934_v53  ;;  %v7065_v53 = vmov 1  }
 0x4f5   :  { %v6894_v55 = vpop.eup %6893  ;;  %v937_v56 = vadd.f32 1.0, %v6892_v54  ;;  %6858 = vset.pattern.permute.xlu0 %v7065_v53  ;;  %6857 = vset.pattern.permute.xlu1 %v7065_v53 }
 0x4f6   :  { %v936_v59 = vadd.f32 1.0, %v6894_v55 }
 0x4f7   :  { %6899 = vrcp.f32 %v937_v56 }
 0x4f8   :  { %6901 = vrcp.f32 %v936_v59 }
 0x4fd   :  { %v6896_v61 = vpop.eup %6895 }
 0x4fe   :  { %v6898_v57 = vpop.eup %6897  ;;  %1310 = vst.msk [vmem:[#allocation2 + $0x8] sm:$0xff] %vm739_vm1, %v6896_v61 }
 0x4ff   :  { %1309 = vst.msk [vmem:[#allocation2] sm:$0xff] %vm739_vm1, %v6898_v57  ;;  %v6594_v60 = vpack.c.bf16 %v6896_v61, %v6898_v57 }
 0x501   :  { %v6900_v6 = vpop.eup %6899  ;;  %6595 = vmatprep.subr.bf16.mxu1 %v6594_v60 }
 0x502   :  { %v6902_v15 = vpop.eup %6901  ;;  %1312 = vst.msk [vmem:[#allocation2 + $0x18] sm:$0xff] %vm739_vm1, %v6900_v6  ;;  %6597 = vmatpush3.bf16.msra.mxu1 %v6594_v60 }
 0x503   :  { %1311 = vst.msk [vmem:[#allocation2 + $0x10] sm:$0xff] %vm739_vm1, %v6902_v15  ;;  %v6598_v58 = vpack.c.bf16 %v6900_v6, %v6902_v15 }
 0x505   :  { %6599 = vmatprep.subr.bf16.mxu1 %v6598_v58 }
 0x506   :  { %6601 = vmatpush3.bf16.msra.mxu1 %v6598_v58 }
 0x509   :  { %6108 = vmatmul.mubr.msk.f32.vlgmr.msra.gmra.mrb[12].mxu1 %vm56_vm0, %v7186_v7 }
 0x50a   :  { %6110 = vmatprep.mubr.msk.f32.mxu1 %vm56_vm0, %v7191_v8 }
 0x50d   :  { %6111 = vmatmul.mubr.msk.f32.gmra.mrb[14].mxu1 %vm56_vm0, %v7200_v9 }
 0x50e   :  { %6135 = vmatprep.mubr.msk.f32.mxu1 %vm56_vm0, %v7175_v5 }
 0x5dc   :  { %v7433_v62 = vpop.f32.mrb[12].mxu1 }
 0x5dd   :  { %1319 = vrot.lane.b32.xlu0 %v7433_v62, %s7061_s29  ;;  %v7437_v17 = vpop.f32.mrb[13].mxu1 }
 0x5de   :  { %v6602_v18 = vpack.c.bf16 %v7433_v62, %v7437_v17  ;;  %1317 = vrot.lane.b32.xlu1 %v7437_v17, %s7061_s29 }
 0x5e0   :  { %v7443_v25 = vpop.f32.mrb[14].mxu1  ;;  %6603 = vmatprep.subr.bf16.mxu0 %v6602_v18 }
 0x5e1   :  { %6605 = vmatpush3.bf16.msra.mxu0 %v6602_v18  ;;  %1323 = vrot.lane.b32.xlu0 %v7443_v25, %s7061_s29  ;;  %v7447_v32 = vpop.f32.mrb[15].mxu1 }
 0x5e2   :  { %v6606_v33 = vpack.c.bf16 %v7443_v25, %v7447_v32  ;;  %1321 = vrot.lane.b32.xlu1 %v7447_v32, %s7061_s29 }
 0x5e4   :  { %6607 = vmatprep.subr.bf16.mxu0 %v6606_v33 }
 0x5e5   :  { %6609 = vmatpush3.bf16.msra.mxu0 %v6606_v33 }
 0x5e6   :  { %6619 = vmatprep.subr.bf16.mxu0 %v7334_v19 }
 0x5e8   :  { %6122 = vmatmul.mubr.msk.f32.vlgmr.msra.gmra.mrb[16].mxu0 %vm56_vm0, %v7186_v7 }
 0x5e9   :  { %6124 = vmatprep.mubr.msk.f32.mxu0 %vm56_vm0, %v7191_v8  ;;  %6621 = vmatpush3.bf16.msra.mxu0 %v7334_v19 }
 0x5ea   :  { %6623 = vmatprep.subr.bf16.mxu0 %v7344_v24 }
 0x5ec   :  { %6125 = vmatmul.mubr.msk.f32.gmra.mrb[18].mxu0 %vm56_vm0, %v7200_v9 }
 0x5ed   :  { %6625 = vmatpush3.bf16.msra.mxu0 %v7344_v24 }
 0x64f   :  { %v1320_v27 = vpop.permute.xlu0 %1319 }
 0x650   :  { %1330 = vst.msk [vmem:[#allocation2 + $0x8] sm:$0xff] %vm760_vm2, %v1320_v27  ;;  %v1318_v38 = vpop.permute.xlu1 %1317 }
 0x651   :  { %1329 = vst.msk [vmem:[#allocation2] sm:$0xff] %vm760_vm2, %v1318_v38 }
 0x653   :  { %v1324_v39 = vpop.permute.xlu0 %1323 }
 0x654   :  { %1332 = vst.msk [vmem:[#allocation2 + $0x18] sm:$0xff] %vm760_vm2, %v1324_v39  ;;  %v1322_v37 = vpop.permute.xlu1 %1321 }
 0x655   :  { %1331 = vst.msk [vmem:[#allocation2 + $0x10] sm:$0xff] %vm760_vm2, %v1322_v37 }
 0x6bb   :  { %v6123_v40 = vpop.f32.mrb[16].mxu0 }
 0x6bc   :  { %v1209_v41 = vmul.f32 2.0, %v6123_v40  ;;  %v1189_v42 = vpop.f32.mrb[17].mxu0 }
 0x6bd   :  { %v1208_v3 = vmul.f32 2.0, %v1189_v42 }
 0x6be   :  { %v1213_v30 = vsub.f32 %v1209_v41, %v6896_v61 }
 0x6bf   :  { %v1212_v31 = vsub.f32 %v1208_v3, %v6898_v57  ;;  %v6126_v34 = vpop.f32.mrb[18].mxu0 }
 0x6c0   :  { %v1211_v35 = vmul.f32 2.0, %v6126_v34  ;;  %1339 = vrot.lane.b32.xlu0 %v1213_v30, %s7062_s30  ;;  %v1199_v43 = vpop.f32.mrb[19].mxu0 }
 0x6c1   :  { %v1210_v44 = vmul.f32 2.0, %v1199_v43  ;;  %1337 = vrot.lane.b32.xlu1 %v1212_v31, %s7062_s30  ;;  %v6610_v47 = vpack.c.bf16 %v1213_v30, %v1212_v31 }
 0x6c2   :  { %v1215_v48 = vsub.f32 %v1211_v35, %v6900_v6 }
 0x6c3   :  { %v1214_v50 = vsub.f32 %v1210_v44, %v6902_v15  ;;  %6611 = vmatprep.subr.bf16.mxu1 %v6610_v47 }
 0x6c4   :  { %6613 = vmatpush3.bf16.msra.mxu1 %v6610_v47  ;;  %1343 = vrot.lane.b32.xlu0 %v1215_v48, %s7062_s30 }
 0x6c5   :  { %1341 = vrot.lane.b32.xlu1 %v1214_v50, %s7062_s30  ;;  %v6614_v49 = vpack.c.bf16 %v1215_v48, %v1214_v50 }
 0x6c7   :  { %6615 = vmatprep.subr.bf16.mxu1 %v6614_v49 }
 0x6c8   :  { %6617 = vmatpush3.bf16.msra.mxu1 %v6614_v49 }
 0x6cb   :  { %6136 = vmatmul.mubr.msk.f32.vlgmr.msra.gmra.mrb[16].mxu1 %vm56_vm0, %v7186_v7 }
 0x6cc   :  { %6138 = vmatprep.mubr.msk.f32.mxu1 %vm56_vm0, %v7191_v8 }
 0x6cf   :  { %6139 = vmatmul.mubr.msk.f32.gmra.mrb[18].mxu1 %vm56_vm0, %v7200_v9 }
 0x6d0   :  { %6163 = vmatprep.mubr.msk.f32.mxu1 %vm56_vm0, %v7175_v5 }
 0x732   :  { %v1340_v54 = vpop.permute.xlu0 %1339 }
 0x733   :  { %1350 = vst.msk [vmem:[#allocation2 + $0x8] sm:$0xff] %vm781_vm3, %v1340_v54  ;;  %v1338_v55 = vpop.permute.xlu1 %1337 }
 0x734   :  { %1349 = vst.msk [vmem:[#allocation2] sm:$0xff] %vm781_vm3, %v1338_v55 }
 0x736   :  { %v1344_v56 = vpop.permute.xlu0 %1343 }
 0x737   :  { %1352 = vst.msk [vmem:[#allocation2 + $0x18] sm:$0xff] %vm781_vm3, %v1344_v56  ;;  %v1342_v59 = vpop.permute.xlu1 %1341 }
 0x738   :  { %1351 = vst.msk [vmem:[#allocation2 + $0x10] sm:$0xff] %vm781_vm3, %v1342_v59 }
 0x79e   :  { %v6137_v61 = vpop.f32.mrb[16].mxu1 }
 0x79f   :  { %v1302_v57 = vmul.f32 2.0, %v6137_v61  ;;  %v1282_v60 = vpop.f32.mrb[17].mxu1 }
 0x7a0   :  { %v1301_v6 = vmul.f32 2.0, %v1282_v60 }
 0x7a1   :  { %v1306_v15 = vsub.f32 %v1302_v57, %v7433_v62 }
 0x7a2   :  { %v1305_v58 = vsub.f32 %v1301_v6, %v7437_v17  ;;  %v6140_v18 = vpop.f32.mrb[18].mxu1 }
 0x7a3   :  { %v1304_v33 = vmul.f32 2.0, %v6140_v18  ;;  %1359 = vrot.lane.b32.xlu0 %v1306_v15, %s7064_s23  ;;  %v1292_v27 = vpop.f32.mrb[19].mxu1 }
 0x7a4   :  { %v1303_v38 = vmul.f32 2.0, %v1292_v27  ;;  %1357 = vrot.lane.b32.xlu1 %v1305_v58, %s7064_s23 }
 0x7a5   :  { %v1308_v39 = vsub.f32 %v1304_v33, %v7443_v25 }
 0x7a6   :  { %v1307_v37 = vsub.f32 %v1303_v38, %v7447_v32 }
 0x7a7   :  { %1363 = vrot.lane.b32.xlu0 %v1308_v39, %s7064_s23 }
 0x7a8   :  { %1361 = vrot.lane.b32.xlu1 %v1307_v37, %s7064_s23 }
 0x7ab   :  { %951 = vperm.xlu0 %6858, %v7158_v1  }
 0x7ac   :  { %947 = vperm.xlu1 %6857, %v7153_v0  }
 0x7af   :  { %991 = vperm.xlu0 %6858, %v7248_v22  }
 0x7b0   :  { %967 = vperm.xlu1 %6857, %v7208_v11  }
 0x7b3   :  { %955 = vperm.xlu0 %6858, %v7163_v2  }
 0x7b4   :  { %971 = vperm.xlu1 %6857, %v7206_v10  }
 0x7b7   :  { %975 = vperm.xlu0 %6858, %v7214_v14  }
 0x7b8   :  { %995 = vperm.xlu1 %6857, %v7245_v21  }
 0x7bb   :  { %1015 = vperm.xlu0 %6858, %v7302_v46  }
 0x7bc   :  { %959 = vperm.xlu1 %6857, %v7170_v4  }
 0x7bf   :  { %999 = vperm.xlu0 %6858, %v7256_v29  }
 0x7c0   :  { %979 = vperm.xlu1 %6857, %v7212_v13  }
 0x7c3   :  { %1023 = vperm.xlu0 %6858, %v7308_v52  }
 0x7c4   :  { %1019 = vperm.xlu1 %6857, %v7299_v45  }
 0x7c8   :  { %1003 = vperm.xlu1 %6857, %v7253_v28  }
 0x7cc   :  { %1027 = vperm.xlu1 %6857, %v7305_v51  }
 0x815   :  { %v1360_v0 = vpop.permute.xlu0 %1359 }
 0x816   :  { %1370 = vst.msk [vmem:[#allocation2 + $0x8] sm:$0xff] %vm802_vm4, %v1360_v0  ;;  %v1358_v1 = vpop.permute.xlu1 %1357 }
 0x817   :  { %1369 = vst.msk [vmem:[#allocation2] sm:$0xff] %vm802_vm4, %v1358_v1 }
 0x819   :  { %v1364_v2 = vpop.permute.xlu0 %1363 }
 0x81a   :  { %1372 = vst.msk [vmem:[#allocation2 + $0x18] sm:$0xff] %vm802_vm4, %v1364_v2  ;;  %v1362_v4 = vpop.permute.xlu1 %1361 }
 0x81b   :  { %1371 = vst.msk [vmem:[#allocation2 + $0x10] sm:$0xff] %vm802_vm4, %v1362_v4 }
 0x81d   :  { %v1374_v17 = vld [vmem:[#allocation2 + $0x8] sm:$0xff] }
 0x81e   :  { %v1373_v62 = vld [vmem:[#allocation2] sm:$0xff] }
 0x81f   :  { %6149 = vmatprep.mubr.msk.f32.mxu0 %vm56_vm0, %v1373_v62 }
 0x820   :  { %6150 = vmatmul.mubr.msk.f32.vlgmr.msra.gmra.mrb[20].mxu0 %vm56_vm0, %v1374_v17 }
 0x821   :  { %v1376_v32 = vld [vmem:[#allocation2 + $0x18] sm:$0xff] }
 0x822   :  { %v1375_v25 = vld [vmem:[#allocation2 + $0x10] sm:$0xff] }
 0x823   :  { %6152 = vmatprep.mubr.msk.f32.mxu0 %vm56_vm0, %v1375_v25 }
 0x824   :  { %6153 = vmatmul.mubr.msk.f32.gmra.mrb[22].mxu0 %vm56_vm0, %v1376_v32 }
 0x825   :  { %6177 = vmatprep.mubr.msk.f32.mxu0 %vm56_vm0, %v7175_v5 }
 0x82a   :  { %v952_v3 = vpop.permute.xlu0 %951 }
 0x82b   :  { %v948_v40 = vpop.permute.xlu1 %947  ;;  %v963_v55 = vmul.f32 %v952_v3, %v7385_v20 }
 0x82c   :  { %v962_v50 = vmul.f32 %v948_v40, %v7385_v20 }
 0x82e   :  { %v992_v31 = vpop.permute.xlu0 %991 }
 0x82f   :  { %v968_v41 = vpop.permute.xlu1 %967  ;;  %v1006_v58 = vmul.f32 %v992_v31, %v7389_v26 }
 0x830   :  { %v982_v49 = vmul.f32 %v968_v41, %v7387_v23 }
 0x832   :  { %v956_v35 = vpop.permute.xlu0 %955  ;;  %v986_v61 = vadd.f32 %v982_v49, %v962_v50 }
 0x833   :  { %v972_v42 = vpop.permute.xlu1 %971  ;;  %v964_v18 = vmul.f32 %v956_v35, %v7385_v20 }
 0x834   :  { %v983_v5 = vmul.f32 %v972_v42, %v7387_v23  ;;  %v1010_v2 = vadd.f32 %v1006_v58, %v986_v61 }
 0x836   :  { %v976_v44 = vpop.permute.xlu0 %975  ;;  %v987_v57 = vadd.f32 %v983_v5, %v963_v55 }
 0x837   :  { %v996_v30 = vpop.permute.xlu1 %995  ;;  %v984_v33 = vmul.f32 %v976_v44, %v7387_v23 }
 0x838   :  { %v1007_v59 = vmul.f32 %v996_v30, %v7389_v26 }
 0x839   :  { %v988_v25 = vadd.f32 %v984_v33, %v964_v18 }
 0x83a   :  { %v1016_v48 = vpop.permute.xlu0 %1015  ;;  %v1011_v39 = vadd.f32 %v1007_v59, %v987_v57 }
 0x83b   :  { %v960_v34 = vpop.permute.xlu1 %959  ;;  %v1030_v27 = vmul.f32 %v1016_v48, %v7393_v36 }
 0x83c   :  { %v965_v60 = vmul.f32 %v960_v34, %v7385_v20 }
 0x83d   :  { %v1034_v41 = vadd.f32 %v1030_v27, %v1010_v2 }
 0x83e   :  { %v1000_v56 = vpop.permute.xlu0 %999 }
 0x83f   :  { %v980_v43 = vpop.permute.xlu1 %979  ;;  %v1008_v1 = vmul.f32 %v1000_v56, %v7389_v26 }
 0x840   :  { %v985_v6 = vmul.f32 %v980_v43, %v7387_v23 }
 0x841   :  { %v1012_v31 = vadd.f32 %v1008_v1, %v988_v25 }
 0x842   :  { %v1024_v37 = vpop.permute.xlu0 %1023  ;;  %v989_v4 = vadd.f32 %v985_v6, %v965_v60 }
 0x843   :  { %v1020_v47 = vpop.permute.xlu1 %1019  ;;  %v1032_v32 = vmul.f32 %v1024_v37, %v7393_v36 }
 0x844   :  { %v1031_v15 = vmul.f32 %v1020_v47, %v7393_v36 }
 0x845   :  { %v1036_v48 = vadd.f32 %v1032_v32, %v1012_v31 }
 0x846   :  { %v1035_v17 = vadd.f32 %v1031_v15, %v1011_v39 }
 0x847   :  { %v1004_v54 = vpop.permute.xlu1 %1003 }
 0x848   :  { %v1009_v0 = vmul.f32 %v1004_v54, %v7389_v26 }
 0x84a   :  { %v1013_v42 = vadd.f32 %v1009_v0, %v989_v4 }
 0x84b   :  { %v1028_v38 = vpop.permute.xlu1 %1027 }
 0x84c   :  { %v1033_v62 = vmul.f32 %v1028_v38, %v7393_v36 }
 0x84e   :  { %v1037_v43 = vadd.f32 %v1033_v62, %v1013_v42  ;;  %v7552_v62 = vld [vmem:[%s8445_s1] sm:$0xff]  ;;  %v7596_v42 = vld [vmem:[%s8445_s1 + $0x18] sm:$0xff] }
 0x8f3   :  { %v6151_v40 = vpop.f32.mrb[20].mxu0 }
 0x8f4   :  { %v1475_v3 = vadd.f32 %v6151_v40, %v1035_v17  ;;  %v1455_v30 = vpop.f32.mrb[21].mxu0  ;;  %v7580_v40 = vld [vmem:[%s8445_s1 + $0x8] sm:$0xff] }
 0x8f5   :  { %v1474_v34 = vadd.f32 %v1455_v30, %v1034_v41  ;;  %v7587_v41 = vld [vmem:[%s8445_s1 + $0x10] sm:$0xff] }
 0x8f6   :  { %v1479_v35 = vadd.f32 %v1475_v3, %v7414_v12 }
 0x8f7   :  { %v1478_v44 = vadd.f32 %v1474_v34, %v7414_v12  ;;  %v6154_v47 = vpop.f32.mrb[22].mxu0 }
 0x8f8   :  { %v5544_v50 = vmul.f32 -1.442695, %v1479_v35  ;;  %v1477_v49 = vadd.f32 %v6154_v47, %v1037_v43  ;;  %v1465_v54 = vpop.f32.mrb[23].mxu0 }
 0x8f9   :  { %v5543_v55 = vmul.f32 -1.442695, %v1478_v44  ;;  %v1476_v5 = vadd.f32 %v1465_v54, %v1036_v48 }
 0x8fa   :  { %6903 = vpow2.f32 %v5544_v50  ;;  %v1481_v56 = vadd.f32 %v1477_v49, %v7414_v12 }
 0x8fb   :  { %6905 = vpow2.f32 %v5543_v55  ;;  %v1480_v59 = vadd.f32 %v1476_v5, %v7414_v12 }
 0x8fc   :  { %v5546_v61 = vmul.f32 -1.442695, %v1481_v56 }
 0x8fd   :  { %v5545_v57 = vmul.f32 -1.442695, %v1480_v59 }
 0x8fe   :  { %6907 = vpow2.f32 %v5546_v61 }
 0x8ff   :  { %6909 = vpow2.f32 %v5545_v57 }
 0x904   :  { %v6904_v60 = vpop.eup %6903 }
 0x905   :  { %v6906_v6 = vpop.eup %6905  ;;  %v1495_v15 = vadd.f32 1.0, %v6904_v60  ;;  %v7066_v60 = vmov 2  }
 0x906   :  { %v1494_v58 = vadd.f32 1.0, %v6906_v6  ;;  %6860 = vset.pattern.permute.xlu1 %v7066_v60  ;;  %6859 = vset.pattern.permute.xlu0 %v7066_v60 }
 0x907   :  { %6911 = vrcp.f32 %v1495_v15 }
 0x908   :  { %v6908_v18 = vpop.eup %6907  ;;  %6913 = vrcp.f32 %v1494_v58 }
 0x909   :  { %v6910_v33 = vpop.eup %6909  ;;  %v1497_v27 = vadd.f32 1.0, %v6908_v18 }
 0x90a   :  { %v1496_v38 = vadd.f32 1.0, %v6910_v33 }
 0x90b   :  { %6915 = vrcp.f32 %v1497_v27 }
 0x90c   :  { %6917 = vrcp.f32 %v1496_v38 }
 0x911   :  { %v6912_v39 = vpop.eup %6911 }
 0x912   :  { %v6914_v37 = vpop.eup %6913  ;;  %1870 = vst.msk [vmem:[#allocation2 + $0x8] sm:$0xff] %vm739_vm1, %v6912_v39 }
 0x913   :  { %1869 = vst.msk [vmem:[#allocation2] sm:$0xff] %vm739_vm1, %v6914_v37  ;;  %v6626_v0 = vpack.c.bf16 %v6912_v39, %v6914_v37 }
 0x915   :  { %v6916_v1 = vpop.eup %6915  ;;  %6627 = vmatprep.subr.bf16.mxu1 %v6626_v0 }
 0x916   :  { %v6918_v2 = vpop.eup %6917  ;;  %1872 = vst.msk [vmem:[#allocation2 + $0x18] sm:$0xff] %vm739_vm1, %v6916_v1  ;;  %6629 = vmatpush3.bf16.msra.mxu1 %v6626_v0 }
 0x917   :  { %1871 = vst.msk [vmem:[#allocation2 + $0x10] sm:$0xff] %vm739_vm1, %v6918_v2  ;;  %v6630_v4 = vpack.c.bf16 %v6916_v1, %v6918_v2 }
 0x919   :  { %6631 = vmatprep.subr.bf16.mxu1 %v6630_v4 }
 0x91a   :  { %6633 = vmatpush3.bf16.msra.mxu1 %v6630_v4 }
 0x91d   :  { %6164 = vmatmul.mubr.msk.f32.vlgmr.msra.gmra.mrb[20].mxu1 %vm56_vm0, %v7186_v7 }
 0x91e   :  { %6166 = vmatprep.mubr.msk.f32.mxu1 %vm56_vm0, %v7191_v8 }
 0x921   :  { %6167 = vmatmul.mubr.msk.f32.gmra.mrb[22].mxu1 %vm56_vm0, %v7200_v9 }
 0x922   :  { %6191 = vmatprep.mubr.msk.f32.mxu1 %vm56_vm0, %v7552_v62 }
 0x9f0   :  { %v7556_v17 = vpop.f32.mrb[20].mxu1 }
 0x9f1   :  { %1879 = vrot.lane.b32.xlu1 %v7556_v17, %s7061_s29  ;;  %v7560_v7 = vpop.f32.mrb[21].mxu1 }
 0x9f2   :  { %v6634_v8 = vpack.c.bf16 %v7556_v17, %v7560_v7  ;;  %1877 = vrot.lane.b32.xlu0 %v7560_v7, %s7061_s29 }
 0x9f4   :  { %v7566_v9 = vpop.f32.mrb[22].mxu1  ;;  %6635 = vmatprep.subr.bf16.mxu0 %v6634_v8 }
 0x9f5   :  { %6637 = vmatpush3.bf16.msra.mxu0 %v6634_v8  ;;  %1883 = vrot.lane.b32.xlu1 %v7566_v9, %s7061_s29  ;;  %v7570_v25 = vpop.f32.mrb[23].mxu1 }
 0x9f6   :  { %v6638_v32 = vpack.c.bf16 %v7566_v9, %v7570_v25  ;;  %1881 = vrot.lane.b32.xlu0 %v7570_v25, %s7061_s29 }
 0x9f8   :  { %6639 = vmatprep.subr.bf16.mxu0 %v6638_v32 }
 0x9f9   :  { %6641 = vmatpush3.bf16.msra.mxu0 %v6638_v32 }
 0x9fa   :  { %6651 = vmatprep.subr.bf16.mxu0 %v7334_v19 }
 0x9fc   :  { %6178 = vmatmul.mubr.msk.f32.vlgmr.msra.gmra.mrb[24].mxu0 %vm56_vm0, %v7580_v40 }
 0x9fd   :  { %6180 = vmatprep.mubr.msk.f32.mxu0 %vm56_vm0, %v7587_v41  ;;  %6653 = vmatpush3.bf16.msra.mxu0 %v7334_v19 }
 0x9fe   :  { %6655 = vmatprep.subr.bf16.mxu0 %v7344_v24 }
 0xa00   :  { %6181 = vmatmul.mubr.msk.f32.gmra.mrb[26].mxu0 %vm56_vm0, %v7596_v42 }
 0xa01   :  { %6657 = vmatpush3.bf16.msra.mxu0 %v7344_v24 }
 0xa63   :  { %v1880_v3 = vpop.permute.xlu1 %1879 }
 0xa64   :  { %1890 = vst.msk [vmem:[#allocation2 + $0x8] sm:$0xff] %vm760_vm2, %v1880_v3  ;;  %v1878_v30 = vpop.permute.xlu0 %1877 }
 0xa65   :  { %1889 = vst.msk [vmem:[#allocation2] sm:$0xff] %vm760_vm2, %v1878_v30 }
 0xa67   :  { %v1884_v31 = vpop.permute.xlu1 %1883 }
 0xa68   :  { %1892 = vst.msk [vmem:[#allocation2 + $0x18] sm:$0xff] %vm760_vm2, %v1884_v31  ;;  %v1882_v34 = vpop.permute.xlu0 %1881 }
 0xa69   :  { %1891 = vst.msk [vmem:[#allocation2 + $0x10] sm:$0xff] %vm760_vm2, %v1882_v34 }
 0xacf   :  { %v6179_v35 = vpop.f32.mrb[24].mxu0 }
 0xad0   :  { %v1769_v43 = vmul.f32 2.0, %v6179_v35  ;;  %v1749_v44 = vpop.f32.mrb[25].mxu0 }
 0xad1   :  { %v1768_v47 = vmul.f32 2.0, %v1749_v44 }
 0xad2   :  { %v1773_v48 = vsub.f32 %v1769_v43, %v6912_v39 }
 0xad3   :  { %v1772_v50 = vsub.f32 %v1768_v47, %v6914_v37  ;;  %v6182_v49 = vpop.f32.mrb[26].mxu0 }
 0xad4   :  { %v1771_v54 = vmul.f32 2.0, %v6182_v49  ;;  %1899 = vrot.lane.b32.xlu1 %v1773_v48, %s7062_s30  ;;  %v1759_v55 = vpop.f32.mrb[27].mxu0 }
 0xad5   :  { %v1770_v5 = vmul.f32 2.0, %v1759_v55  ;;  %1897 = vrot.lane.b32.xlu0 %v1772_v50, %s7062_s30  ;;  %v6642_v56 = vpack.c.bf16 %v1773_v48, %v1772_v50 }
 0xad6   :  { %v1775_v59 = vsub.f32 %v1771_v54, %v6916_v1 }
 0xad7   :  { %v1774_v61 = vsub.f32 %v1770_v5, %v6918_v2  ;;  %6643 = vmatprep.subr.bf16.mxu1 %v6642_v56 }
 0xad8   :  { %6645 = vmatpush3.bf16.msra.mxu1 %v6642_v56  ;;  %1903 = vrot.lane.b32.xlu1 %v1775_v59, %s7062_s30 }
 0xad9   :  { %1901 = vrot.lane.b32.xlu0 %v1774_v61, %s7062_s30  ;;  %v6646_v57 = vpack.c.bf16 %v1775_v59, %v1774_v61 }
 0xadb   :  { %6647 = vmatprep.subr.bf16.mxu1 %v6646_v57 }
 0xadc   :  { %6649 = vmatpush3.bf16.msra.mxu1 %v6646_v57 }
 0xadf   :  { %6192 = vmatmul.mubr.msk.f32.vlgmr.msra.gmra.mrb[24].mxu1 %vm56_vm0, %v7580_v40 }
 0xae0   :  { %6194 = vmatprep.mubr.msk.f32.mxu1 %vm56_vm0, %v7587_v41 }
 0xae3   :  { %6195 = vmatmul.mubr.msk.f32.gmra.mrb[26].mxu1 %vm56_vm0, %v7596_v42 }
 0xae4   :  { %6219 = vmatprep.mubr.msk.f32.mxu1 %vm56_vm0, %v7552_v62 }
 0xb46   :  { %v1900_v6 = vpop.permute.xlu1 %1899 }
 0xb47   :  { %1910 = vst.msk [vmem:[#allocation2 + $0x8] sm:$0xff] %vm781_vm3, %v1900_v6  ;;  %v1898_v15 = vpop.permute.xlu0 %1897 }
 0xb48   :  { %1909 = vst.msk [vmem:[#allocation2] sm:$0xff] %vm781_vm3, %v1898_v15 }
 0xb4a   :  { %v1904_v58 = vpop.permute.xlu1 %1903 }
 0xb4b   :  { %1912 = vst.msk [vmem:[#allocation2 + $0x18] sm:$0xff] %vm781_vm3, %v1904_v58  ;;  %v1902_v18 = vpop.permute.xlu0 %1901 }
 0xb4c   :  { %1911 = vst.msk [vmem:[#allocation2 + $0x10] sm:$0xff] %vm781_vm3, %v1902_v18 }
 0xbb2   :  { %v6193_v33 = vpop.f32.mrb[24].mxu1 }
 0xbb3   :  { %v1862_v27 = vmul.f32 2.0, %v6193_v33  ;;  %v1842_v38 = vpop.f32.mrb[25].mxu1 }
 0xbb4   :  { %v1861_v39 = vmul.f32 2.0, %v1842_v38 }
 0xbb5   :  { %v1866_v37 = vsub.f32 %v1862_v27, %v7556_v17  ;;  %v7634_v17 = vld [vmem:[%s8444_s0 + $0x8] sm:$0xff] }
 0xbb6   :  { %v1865_v0 = vsub.f32 %v1861_v39, %v7560_v7  ;;  %v6196_v1 = vpop.f32.mrb[26].mxu1  ;;  %v7640_v7 = vld [vmem:[%s8444_s0] sm:$0xff] }
 0xbb7   :  { %v1864_v2 = vmul.f32 2.0, %v6196_v1  ;;  %1919 = vrot.lane.b32.xlu1 %v1866_v37, %s7064_s23  ;;  %v1852_v4 = vpop.f32.mrb[27].mxu1 }
 0xbb8   :  { %v1863_v8 = vmul.f32 2.0, %v1852_v4  ;;  %1917 = vrot.lane.b32.xlu0 %v1865_v0, %s7064_s23 }
 0xbb9   :  { %v1868_v32 = vsub.f32 %v1864_v2, %v7566_v9  ;;  %v7650_v9 = vld [vmem:[%s8444_s0 + $0x10] sm:$0xff] }
 0xbba   :  { %v1867_v3 = vsub.f32 %v1863_v8, %v7570_v25  ;;  %v7656_v25 = vld [vmem:[%s8444_s0 + $0x18] sm:$0xff] }
 0xbbb   :  { %1923 = vrot.lane.b32.xlu1 %v1868_v32, %s7064_s23 }
 0xbbc   :  { %1921 = vrot.lane.b32.xlu0 %v1867_v3, %s7064_s23 }
 0xbbf   :  { %1511 = vperm.xlu1 %6860, %v7634_v17  }
 0xbc0   :  { %1507 = vperm.xlu0 %6859, %v7640_v7  }
 0xbc3   :  { %1527 = vperm.xlu1 %6860, %v7208_v11  }
 0xbc4   :  { %1531 = vperm.xlu0 %6859, %v7206_v10  }
 0xbc7   :  { %1551 = vperm.xlu1 %6860, %v7248_v22  }
 0xbc8   :  { %1555 = vperm.xlu0 %6859, %v7245_v21  }
 0xbcb   :  { %1515 = vperm.xlu1 %6860, %v7650_v9  }
 0xbcc   :  { %1519 = vperm.xlu0 %6859, %v7656_v25  }
 0xbcf   :  { %1535 = vperm.xlu1 %6860, %v7214_v14  }
 0xbd0   :  { %1539 = vperm.xlu0 %6859, %v7212_v13  }
 0xbd3   :  { %1575 = vperm.xlu1 %6860, %v7302_v46  }
 0xbd4   :  { %1579 = vperm.xlu0 %6859, %v7299_v45  }
 0xbd7   :  { %1559 = vperm.xlu1 %6860, %v7256_v29  }
 0xbd8   :  { %1563 = vperm.xlu0 %6859, %v7253_v28  }
 0xbdb   :  { %1583 = vperm.xlu1 %6860, %v7308_v52  }
 0xbdc   :  { %1587 = vperm.xlu0 %6859, %v7305_v51  }
 0xc29   :  { %v1920_v30 = vpop.permute.xlu1 %1919 }
 0xc2a   :  { %1930 = vst.msk [vmem:[#allocation2 + $0x8] sm:$0xff] %vm802_vm4, %v1920_v30  ;;  %v1918_v31 = vpop.permute.xlu0 %1917 }
 0xc2b   :  { %1929 = vst.msk [vmem:[#allocation2] sm:$0xff] %vm802_vm4, %v1918_v31 }
 0xc2d   :  { %v1924_v34 = vpop.permute.xlu1 %1923 }
 0xc2e   :  { %1932 = vst.msk [vmem:[#allocation2 + $0x18] sm:$0xff] %vm802_vm4, %v1924_v34  ;;  %v1922_v35 = vpop.permute.xlu0 %1921 }
 0xc2f   :  { %1931 = vst.msk [vmem:[#allocation2 + $0x10] sm:$0xff] %vm802_vm4, %v1922_v35 }
 0xc31   :  { %v1934_v44 = vld [vmem:[#allocation2 + $0x8] sm:$0xff] }
 0xc32   :  { %v1933_v43 = vld [vmem:[#allocation2] sm:$0xff] }
 0xc33   :  { %6205 = vmatprep.mubr.msk.f32.mxu0 %vm56_vm0, %v1933_v43 }
 0xc34   :  { %6206 = vmatmul.mubr.msk.f32.vlgmr.msra.gmra.mrb[28].mxu0 %vm56_vm0, %v1934_v44 }
 0xc35   :  { %v1936_v48 = vld [vmem:[#allocation2 + $0x18] sm:$0xff] }
 0xc36   :  { %v1935_v47 = vld [vmem:[#allocation2 + $0x10] sm:$0xff] }
 0xc37   :  { %6208 = vmatprep.mubr.msk.f32.mxu0 %vm56_vm0, %v1935_v47 }
 0xc38   :  { %6209 = vmatmul.mubr.msk.f32.gmra.mrb[30].mxu0 %vm56_vm0, %v1936_v48 }
 0xc39   :  { %6233 = vmatprep.mubr.msk.f32.mxu0 %vm56_vm0, %v7552_v62 }
 0xc3e   :  { %v1512_v49 = vpop.permute.xlu1 %1511 }
 0xc3f   :  { %v1508_v50 = vpop.permute.xlu0 %1507  ;;  %v1523_v33 = vmul.f32 %v1512_v49, %v7385_v20 }
 0xc40   :  { %v1522_v39 = vmul.f32 %v1508_v50, %v7385_v20 }
 0xc42   :  { %v1528_v55 = vpop.permute.xlu1 %1527 }
 0xc43   :  { %v1532_v54 = vpop.permute.xlu0 %1531  ;;  %v1542_v37 = vmul.f32 %v1528_v55, %v7387_v23 }
 0xc44   :  { %v1543_v27 = vmul.f32 %v1532_v54, %v7387_v23 }
 0xc45   :  { %v1546_v3 = vadd.f32 %v1542_v37, %v1522_v39 }
 0xc46   :  { %v1552_v56 = vpop.permute.xlu1 %1551  ;;  %v1547_v2 = vadd.f32 %v1543_v27, %v1523_v33 }
 0xc47   :  { %v1556_v5 = vpop.permute.xlu0 %1555  ;;  %v1566_v1 = vmul.f32 %v1552_v56, %v7389_v26 }
 0xc48   :  { %v1567_v0 = vmul.f32 %v1556_v5, %v7389_v26 }
 0xc49   :  { %v1570_v48 = vadd.f32 %v1566_v1, %v1546_v3 }
 0xc4a   :  { %v1516_v61 = vpop.permute.xlu1 %1515  ;;  %v1571_v43 = vadd.f32 %v1567_v0, %v1547_v2 }
 0xc4b   :  { %v1520_v59 = vpop.permute.xlu0 %1519  ;;  %v1524_v30 = vmul.f32 %v1516_v61, %v7385_v20 }
 0xc4c   :  { %v1525_v4 = vmul.f32 %v1520_v59, %v7385_v20 }
 0xc4e   :  { %v1536_v6 = vpop.permute.xlu1 %1535 }
 0xc4f   :  { %v1540_v57 = vpop.permute.xlu0 %1539  ;;  %v1544_v31 = vmul.f32 %v1536_v6, %v7387_v23 }
 0xc50   :  { %v1545_v8 = vmul.f32 %v1540_v57, %v7387_v23 }
 0xc51   :  { %v1548_v5 = vadd.f32 %v1544_v31, %v1524_v30 }
 0xc52   :  { %v1576_v58 = vpop.permute.xlu1 %1575  ;;  %v1549_v49 = vadd.f32 %v1545_v8, %v1525_v4 }
 0xc53   :  { %v1580_v15 = vpop.permute.xlu0 %1579  ;;  %v1590_v34 = vmul.f32 %v1576_v58, %v7393_v36 }
 0xc54   :  { %v1591_v32 = vmul.f32 %v1580_v15, %v7393_v36 }
 0xc55   :  { %v1594_v61 = vadd.f32 %v1590_v34, %v1570_v48 }
 0xc56   :  { %v1560_v38 = vpop.permute.xlu1 %1559  ;;  %v1595_v55 = vadd.f32 %v1591_v32, %v1571_v43 }
 0xc57   :  { %v1564_v18 = vpop.permute.xlu0 %1563  ;;  %v1568_v50 = vmul.f32 %v1560_v38, %v7389_v26 }
 0xc58   :  { %v1569_v44 = vmul.f32 %v1564_v18, %v7389_v26 }
 0xc59   :  { %v1572_v58 = vadd.f32 %v1568_v50, %v1548_v5 }
 0xc5a   :  { %v1584_v47 = vpop.permute.xlu1 %1583  ;;  %v1573_v57 = vadd.f32 %v1569_v44, %v1549_v49 }
 0xc5b   :  { %v1588_v35 = vpop.permute.xlu0 %1587  ;;  %v1592_v56 = vmul.f32 %v1584_v47, %v7393_v36 }
 0xc5c   :  { %v1593_v54 = vmul.f32 %v1588_v35, %v7393_v36 }
 0xc5d   :  { %v1596_v37 = vadd.f32 %v1592_v56, %v1572_v58 }
 0xc5e   :  { %v1597_v27 = vadd.f32 %v1593_v54, %v1573_v57 }
 0xd07   :  { %v6207_v59 = vpop.f32.mrb[28].mxu0 }
 0xd08   :  { %v2035_v6 = vadd.f32 %v6207_v59, %v1595_v55  ;;  %v2015_v15 = vpop.f32.mrb[29].mxu0 }
 0xd09   :  { %v2034_v33 = vadd.f32 %v2015_v15, %v1594_v61 }
 0xd0a   :  { %v2039_v18 = vadd.f32 %v2035_v6, %v7414_v12 }
 0xd0b   :  { %v2038_v39 = vadd.f32 %v2034_v33, %v7414_v12  ;;  %v6210_v38 = vpop.f32.mrb[30].mxu0 }
 0xd0c   :  { %v5564_v0 = vmul.f32 -1.442695, %v2039_v18  ;;  %v2037_v1 = vadd.f32 %v6210_v38, %v1597_v27  ;;  %v2025_v2 = vpop.f32.mrb[31].mxu0 }
 0xd0d   :  { %v5563_v4 = vmul.f32 -1.442695, %v2038_v39  ;;  %v2036_v8 = vadd.f32 %v2025_v2, %v1596_v37 }
 0xd0e   :  { %6919 = vpow2.f32 %v5564_v0  ;;  %v2041_v32 = vadd.f32 %v2037_v1, %v7414_v12 }
 0xd0f   :  { %6921 = vpow2.f32 %v5563_v4  ;;  %v2040_v3 = vadd.f32 %v2036_v8, %v7414_v12 }
 0xd10   :  { %v5566_v30 = vmul.f32 -1.442695, %v2041_v32 }
 0xd11   :  { %v5565_v31 = vmul.f32 -1.442695, %v2040_v3 }
 0xd12   :  { %6923 = vpow2.f32 %v5566_v30 }
 0xd13   :  { %6925 = vpow2.f32 %v5565_v31 }
 0xd18   :  { %v6920_v34 = vpop.eup %6919 }
 0xd19   :  { %v6922_v35 = vpop.eup %6921  ;;  %v2055_v43 = vadd.f32 1.0, %v6920_v34 }
 0xd1a   :  { %v2054_v44 = vadd.f32 1.0, %v6922_v35 }
 0xd1b   :  { %6927 = vrcp.f32 %v2055_v43 }
 0xd1c   :  { %v6924_v47 = vpop.eup %6923  ;;  %6929 = vrcp.f32 %v2054_v44 }
 0xd1d   :  { %v6926_v48 = vpop.eup %6925  ;;  %v2057_v50 = vadd.f32 1.0, %v6924_v47 }
 0xd1e   :  { %v2056_v49 = vadd.f32 1.0, %v6926_v48  ;;  %v7067_v48 = vmov 3  }
 0xd1f   :  { %6931 = vrcp.f32 %v2057_v50  ;;  %6862 = vset.pattern.permute.xlu0 %v7067_v48  ;;  %6861 = vset.pattern.permute.xlu1 %v7067_v48 }
 0xd20   :  { %6933 = vrcp.f32 %v2056_v49 }
 0xd25   :  { %v6928_v54 = vpop.eup %6927 }
 0xd26   :  { %v6930_v55 = vpop.eup %6929  ;;  %2430 = vst.msk [vmem:[#allocation2 + $0x8] sm:$0xff] %vm739_vm1, %v6928_v54 }
 0xd27   :  { %2429 = vst.msk [vmem:[#allocation2] sm:$0xff] %vm739_vm1, %v6930_v55  ;;  %v6658_v5 = vpack.c.bf16 %v6928_v54, %v6930_v55 }
 0xd29   :  { %v6932_v56 = vpop.eup %6931  ;;  %6659 = vmatprep.subr.bf16.mxu1 %v6658_v5 }
 0xd2a   :  { %v6934_v59 = vpop.eup %6933  ;;  %2432 = vst.msk [vmem:[#allocation2 + $0x18] sm:$0xff] %vm739_vm1, %v6932_v56  ;;  %6661 = vmatpush3.bf16.msra.mxu1 %v6658_v5 }
 0xd2b   :  { %2431 = vst.msk [vmem:[#allocation2 + $0x10] sm:$0xff] %vm739_vm1, %v6934_v59  ;;  %v6662_v61 = vpack.c.bf16 %v6932_v56, %v6934_v59 }
 0xd2d   :  { %6663 = vmatprep.subr.bf16.mxu1 %v6662_v61 }
 0xd2e   :  { %6665 = vmatpush3.bf16.msra.mxu1 %v6662_v61 }
 0xd31   :  { %6220 = vmatmul.mubr.msk.f32.vlgmr.msra.gmra.mrb[28].mxu1 %vm56_vm0, %v7580_v40 }
 0xd32   :  { %6222 = vmatprep.mubr.msk.f32.mxu1 %vm56_vm0, %v7587_v41 }
 0xd35   :  { %6223 = vmatmul.mubr.msk.f32.gmra.mrb[30].mxu1 %vm56_vm0, %v7596_v42 }
 0xd36   :  { %6247 = vmatprep.mubr.msk.f32.mxu1 %vm56_vm0, %v7552_v62 }
 0xe04   :  { %v7709_v57 = vpop.f32.mrb[28].mxu1 }
 0xe05   :  { %2439 = vrot.lane.b32.xlu0 %v7709_v57, %s7061_s29  ;;  %v7713_v6 = vpop.f32.mrb[29].mxu1 }
 0xe06   :  { %v6666_v15 = vpack.c.bf16 %v7709_v57, %v7713_v6  ;;  %2437 = vrot.lane.b32.xlu1 %v7713_v6, %s7061_s29 }
 0xe08   :  { %v7719_v58 = vpop.f32.mrb[30].mxu1  ;;  %6667 = vmatprep.subr.bf16.mxu0 %v6666_v15 }
 0xe09   :  { %6669 = vmatpush3.bf16.msra.mxu0 %v6666_v15  ;;  %2443 = vrot.lane.b32.xlu0 %v7719_v58, %s7061_s29  ;;  %v7723_v33 = vpop.f32.mrb[31].mxu1 }
 0xe0a   :  { %v6670_v18 = vpack.c.bf16 %v7719_v58, %v7723_v33  ;;  %2441 = vrot.lane.b32.xlu1 %v7723_v33, %s7061_s29 }
 0xe0c   :  { %6671 = vmatprep.subr.bf16.mxu0 %v6670_v18 }
 0xe0d   :  { %6673 = vmatpush3.bf16.msra.mxu0 %v6670_v18 }
 0xe0e   :  { %6683 = vmatprep.subr.bf16.mxu0 %v7334_v19 }
 0xe10   :  { %6234 = vmatmul.mubr.msk.f32.vlgmr.msra.gmra.mrb[32].mxu0 %vm56_vm0, %v7580_v40 }
 0xe11   :  { %6236 = vmatprep.mubr.msk.f32.mxu0 %vm56_vm0, %v7587_v41  ;;  %6685 = vmatpush3.bf16.msra.mxu0 %v7334_v19 }
 0xe12   :  { %6687 = vmatprep.subr.bf16.mxu0 %v7344_v24 }
 0xe14   :  { %6237 = vmatmul.mubr.msk.f32.gmra.mrb[34].mxu0 %vm56_vm0, %v7596_v42 }
 0xe15   :  { %6689 = vmatpush3.bf16.msra.mxu0 %v7344_v24 }
 0xe77   :  { %v2440_v27 = vpop.permute.xlu0 %2439 }
 0xe78   :  { %2450 = vst.msk [vmem:[#allocation2 + $0x8] sm:$0xff] %vm760_vm2, %v2440_v27  ;;  %v2438_v39 = vpop.permute.xlu1 %2437 }
 0xe79   :  { %2449 = vst.msk [vmem:[#allocation2] sm:$0xff] %vm760_vm2, %v2438_v39 }
 0xe7b   :  { %v2444_v38 = vpop.permute.xlu0 %2443 }
 0xe7c   :  { %2452 = vst.msk [vmem:[#allocation2 + $0x18] sm:$0xff] %vm760_vm2, %v2444_v38  ;;  %v2442_v37 = vpop.permute.xlu1 %2441 }
 0xe7d   :  { %2451 = vst.msk [vmem:[#allocation2 + $0x10] sm:$0xff] %vm760_vm2, %v2442_v37 }
 0xee3   :  { %v6235_v0 = vpop.f32.mrb[32].mxu0 }
 0xee4   :  { %v2329_v1 = vmul.f32 2.0, %v6235_v0  ;;  %v2309_v2 = vpop.f32.mrb[33].mxu0 }
 0xee5   :  { %v2328_v4 = vmul.f32 2.0, %v2309_v2 }
 0xee6   :  { %v2333_v8 = vsub.f32 %v2329_v1, %v6928_v54 }
 0xee7   :  { %v2332_v32 = vsub.f32 %v2328_v4, %v6930_v55  ;;  %v6238_v3 = vpop.f32.mrb[34].mxu0 }
 0xee8   :  { %v2331_v30 = vmul.f32 2.0, %v6238_v3  ;;  %2459 = vrot.lane.b32.xlu0 %v2333_v8, %s7062_s30  ;;  %v2319_v31 = vpop.f32.mrb[35].mxu0 }
 0xee9   :  { %v2330_v34 = vmul.f32 2.0, %v2319_v31  ;;  %2457 = vrot.lane.b32.xlu1 %v2332_v32, %s7062_s30  ;;  %v6674_v35 = vpack.c.bf16 %v2333_v8, %v2332_v32 }
 0xeea   :  { %v2335_v43 = vsub.f32 %v2331_v30, %v6932_v56 }
 0xeeb   :  { %v2334_v44 = vsub.f32 %v2330_v34, %v6934_v59  ;;  %6675 = vmatprep.subr.bf16.mxu1 %v6674_v35 }
 0xeec   :  { %6677 = vmatpush3.bf16.msra.mxu1 %v6674_v35  ;;  %2463 = vrot.lane.b32.xlu0 %v2335_v43, %s7062_s30 }
 0xeed   :  { %2461 = vrot.lane.b32.xlu1 %v2334_v44, %s7062_s30  ;;  %v6678_v47 = vpack.c.bf16 %v2335_v43, %v2334_v44 }
 0xeef   :  { %6679 = vmatprep.subr.bf16.mxu1 %v6678_v47 }
 0xef0   :  { %6681 = vmatpush3.bf16.msra.mxu1 %v6678_v47 }
 0xef3   :  { %6248 = vmatmul.mubr.msk.f32.vlgmr.msra.gmra.mrb[32].mxu1 %vm56_vm0, %v7580_v40 }
 0xef4   :  { %6250 = vmatprep.mubr.msk.f32.mxu1 %vm56_vm0, %v7587_v41 }
 0xef7   :  { %6251 = vmatmul.mubr.msk.f32.gmra.mrb[34].mxu1 %vm56_vm0, %v7596_v42 }
 0xef8   :  { %6275 = vmatprep.mubr.msk.f32.mxu1 %vm56_vm0, %v7552_v62 }
 0xf5a   :  { %v2460_v50 = vpop.permute.xlu0 %2459 }
 0xf5b   :  { %2470 = vst.msk [vmem:[#allocation2 + $0x8] sm:$0xff] %vm781_vm3, %v2460_v50  ;;  %v2458_v49 = vpop.permute.xlu1 %2457 }
 0xf5c   :  { %2469 = vst.msk [vmem:[#allocation2] sm:$0xff] %vm781_vm3, %v2458_v49 }
 0xf5e   :  { %v2464_v54 = vpop.permute.xlu0 %2463 }
 0xf5f   :  { %2472 = vst.msk [vmem:[#allocation2 + $0x18] sm:$0xff] %vm781_vm3, %v2464_v54  ;;  %v2462_v55 = vpop.permute.xlu1 %2461 }
 0xf60   :  { %2471 = vst.msk [vmem:[#allocation2 + $0x10] sm:$0xff] %vm781_vm3, %v2462_v55 }
 0xfc6   :  { %v6249_v5 = vpop.f32.mrb[32].mxu1 }
 0xfc7   :  { %v2422_v56 = vmul.f32 2.0, %v6249_v5  ;;  %v2402_v59 = vpop.f32.mrb[33].mxu1 }
 0xfc8   :  { %v2421_v61 = vmul.f32 2.0, %v2402_v59 }
 0xfc9   :  { %v2426_v15 = vsub.f32 %v2422_v56, %v7709_v57 }
 0xfca   :  { %v2425_v18 = vsub.f32 %v2421_v61, %v7713_v6  ;;  %v6252_v27 = vpop.f32.mrb[34].mxu1 }
 0xfcb   :  { %v2424_v39 = vmul.f32 2.0, %v6252_v27  ;;  %2479 = vrot.lane.b32.xlu0 %v2426_v15, %s7064_s23  ;;  %v2412_v38 = vpop.f32.mrb[35].mxu1 }
 0xfcc   :  { %v2423_v37 = vmul.f32 2.0, %v2412_v38  ;;  %2477 = vrot.lane.b32.xlu1 %v2425_v18, %s7064_s23 }
 0xfcd   :  { %v2428_v0 = vsub.f32 %v2424_v39, %v7719_v58 }
 0xfce   :  { %v2427_v1 = vsub.f32 %v2423_v37, %v7723_v33 }
 0xfcf   :  { %2483 = vrot.lane.b32.xlu0 %v2428_v0, %s7064_s23 }
 0xfd0   :  { %2481 = vrot.lane.b32.xlu1 %v2427_v1, %s7064_s23 }
 0xfd3   :  { %2071 = vperm.xlu0 %6862, %v7634_v17  }
 0xfd4   :  { %2067 = vperm.xlu1 %6861, %v7640_v7  }
 0xfd7   :  { %2111 = vperm.xlu0 %6862, %v7248_v22  }
 0xfd8   :  { %2087 = vperm.xlu1 %6861, %v7208_v11  }
 0xfdb   :  { %2075 = vperm.xlu0 %6862, %v7650_v9  }
 0xfdc   :  { %2091 = vperm.xlu1 %6861, %v7206_v10  }
 0xfdf   :  { %2095 = vperm.xlu0 %6862, %v7214_v14  }
 0xfe0   :  { %2115 = vperm.xlu1 %6861, %v7245_v21  }
 0xfe3   :  { %2135 = vperm.xlu0 %6862, %v7302_v46  }
 0xfe4   :  { %2079 = vperm.xlu1 %6861, %v7656_v25  }
 0xfe7   :  { %2119 = vperm.xlu0 %6862, %v7256_v29  }
 0xfe8   :  { %2099 = vperm.xlu1 %6861, %v7212_v13  }
 0xfeb   :  { %2143 = vperm.xlu0 %6862, %v7308_v52  }
 0xfec   :  { %2139 = vperm.xlu1 %6861, %v7299_v45  }
 0xff0   :  { %2123 = vperm.xlu1 %6861, %v7253_v28  }
 0xff4   :  { %2147 = vperm.xlu1 %6861, %v7305_v51  }
0x103d   :  { %v2480_v57 = vpop.permute.xlu0 %2479 }
0x103e   :  { %2490 = vst.msk [vmem:[#allocation2 + $0x8] sm:$0xff] %vm802_vm4, %v2480_v57  ;;  %v2478_v6 = vpop.permute.xlu1 %2477 }
0x103f   :  { %2489 = vst.msk [vmem:[#allocation2] sm:$0xff] %vm802_vm4, %v2478_v6 }
0x1041   :  { %v2484_v58 = vpop.permute.xlu0 %2483 }
0x1042   :  { %2492 = vst.msk [vmem:[#allocation2 + $0x18] sm:$0xff] %vm802_vm4, %v2484_v58  ;;  %v2482_v33 = vpop.permute.xlu1 %2481 }
0x1043   :  { %2491 = vst.msk [vmem:[#allocation2 + $0x10] sm:$0xff] %vm802_vm4, %v2482_v33 }
0x1045   :  { %v2494_v4 = vld [vmem:[#allocation2 + $0x8] sm:$0xff] }
0x1046   :  { %v2493_v2 = vld [vmem:[#allocation2] sm:$0xff] }
0x1047   :  { %6261 = vmatprep.mubr.msk.f32.mxu0 %vm56_vm0, %v2493_v2 }
0x1048   :  { %6262 = vmatmul.mubr.msk.f32.vlgmr.msra.gmra.mrb[36].mxu0 %vm56_vm0, %v2494_v4 }
0x1049   :  { %v2496_v32 = vld [vmem:[#allocation2 + $0x18] sm:$0xff] }
0x104a   :  { %v2495_v8 = vld [vmem:[#allocation2 + $0x10] sm:$0xff] }
0x104b   :  { %6264 = vmatprep.mubr.msk.f32.mxu0 %vm56_vm0, %v2495_v8 }
0x104c   :  { %6265 = vmatmul.mubr.msk.f32.gmra.mrb[38].mxu0 %vm56_vm0, %v2496_v32 }
0x104d   :  { %6289 = vmatprep.mubr.msk.f32.mxu0 %vm56_vm0, %v7552_v62 }
0x1052   :  { %v2072_v34 = vpop.permute.xlu0 %2071 }
0x1053   :  { %v2068_v3 = vpop.permute.xlu1 %2067  ;;  %v2083_v61 = vmul.f32 %v2072_v34, %v7385_v20 }
0x1054   :  { %v2082_v5 = vmul.f32 %v2068_v3, %v7385_v20 }
0x1056   :  { %v2112_v43 = vpop.permute.xlu0 %2111 }
0x1057   :  { %v2088_v30 = vpop.permute.xlu1 %2087  ;;  %v2126_v57 = vmul.f32 %v2112_v43, %v7389_v26 }
0x1058   :  { %v2102_v56 = vmul.f32 %v2088_v30, %v7387_v23 }
0x105a   :  { %v2076_v47 = vpop.permute.xlu0 %2075  ;;  %v2106_v39 = vadd.f32 %v2102_v56, %v2082_v5 }
0x105b   :  { %v2092_v31 = vpop.permute.xlu1 %2091  ;;  %v2084_v6 = vmul.f32 %v2076_v47, %v7385_v20 }
0x105c   :  { %v2103_v15 = vmul.f32 %v2092_v31, %v7387_v23  ;;  %v2130_v30 = vadd.f32 %v2126_v57, %v2106_v39 }
0x105e   :  { %v2096_v49 = vpop.permute.xlu0 %2095  ;;  %v2107_v38 = vadd.f32 %v2103_v15, %v2083_v61 }
0x105f   :  { %v2116_v35 = vpop.permute.xlu1 %2115  ;;  %v2104_v58 = vmul.f32 %v2096_v49, %v7387_v23 }
0x1060   :  { %v2127_v27 = vmul.f32 %v2116_v35, %v7389_v26 }
0x1062   :  { %v2136_v55 = vpop.permute.xlu0 %2135  ;;  %v2131_v4 = vadd.f32 %v2127_v27, %v2107_v38 }
0x1063   :  { %v2080_v44 = vpop.permute.xlu1 %2079  ;;  %v2150_v33 = vmul.f32 %v2136_v55, %v7393_v36 }
0x1064   :  { %v2085_v37 = vmul.f32 %v2080_v44, %v7385_v20  ;;  %v2108_v44 = vadd.f32 %v2104_v58, %v2084_v6 }
0x1066   :  { %v2120_v18 = vpop.permute.xlu0 %2119 }
0x1067   :  { %v2100_v50 = vpop.permute.xlu1 %2099  ;;  %v2128_v3 = vmul.f32 %v2120_v18, %v7389_v26 }
0x1068   :  { %v2105_v0 = vmul.f32 %v2100_v50, %v7387_v23  ;;  %v2154_v50 = vadd.f32 %v2150_v33, %v2130_v30 }
0x1069   :  { %v2132_v5 = vadd.f32 %v2128_v3, %v2108_v44 }
0x106a   :  { %v2144_v8 = vpop.permute.xlu0 %2143  ;;  %v2109_v31 = vadd.f32 %v2105_v0, %v2085_v37 }
0x106b   :  { %v2140_v54 = vpop.permute.xlu1 %2139  ;;  %v2152_v43 = vmul.f32 %v2144_v8, %v7393_v36 }
0x106c   :  { %v2151_v1 = vmul.f32 %v2140_v54, %v7393_v36 }
0x106d   :  { %v2156_v27 = vadd.f32 %v2152_v43, %v2132_v5 }
0x106e   :  { %v2155_v35 = vadd.f32 %v2151_v1, %v2131_v4 }
0x106f   :  { %v2124_v59 = vpop.permute.xlu1 %2123 }
0x1070   :  { %v2129_v32 = vmul.f32 %v2124_v59, %v7389_v26 }
0x1072   :  { %v2133_v49 = vadd.f32 %v2129_v32, %v2109_v31 }
0x1073   :  { %v2148_v2 = vpop.permute.xlu1 %2147 }
0x1074   :  { %v2153_v34 = vmul.f32 %v2148_v2, %v7393_v36 }
0x1076   :  { %v2157_v59 = vadd.f32 %v2153_v34, %v2133_v49 }
0x111b   :  { %v6263_v47 = vpop.f32.mrb[36].mxu0 }
0x111c   :  { %v2595_v54 = vadd.f32 %v6263_v47, %v2155_v35  ;;  %v2575_v55 = vpop.f32.mrb[37].mxu0 }
0x111d   :  { %v2594_v56 = vadd.f32 %v2575_v55, %v2154_v50 }
0x111e   :  { %v2599_v61 = vadd.f32 %v2595_v54, %v7414_v12 }
0x111f   :  { %v2598_v15 = vadd.f32 %v2594_v56, %v7414_v12  ;;  %v6266_v18 = vpop.f32.mrb[38].mxu0 }
0x1120   :  { %v5584_v39 = vmul.f32 -1.442695, %v2599_v61  ;;  %v2597_v38 = vadd.f32 %v6266_v18, %v2157_v59  ;;  %v2585_v37 = vpop.f32.mrb[39].mxu0 }
0x1121   :  { %v5583_v0 = vmul.f32 -1.442695, %v2598_v15  ;;  %v2596_v1 = vadd.f32 %v2585_v37, %v2156_v27 }
0x1122   :  { %6935 = vpow2.f32 %v5584_v39  ;;  %v2601_v57 = vadd.f32 %v2597_v38, %v7414_v12 }
0x1123   :  { %6937 = vpow2.f32 %v5583_v0  ;;  %v2600_v6 = vadd.f32 %v2596_v1, %v7414_v12 }
0x1124   :  { %v5586_v58 = vmul.f32 -1.442695, %v2601_v57 }
0x1125   :  { %v5585_v33 = vmul.f32 -1.442695, %v2600_v6 }
0x1126   :  { %6939 = vpow2.f32 %v5586_v58 }
0x1127   :  { %6941 = vpow2.f32 %v5585_v33 }
0x112c   :  { %v6936_v2 = vpop.eup %6935 }
0x112d   :  { %v6938_v4 = vpop.eup %6937  ;;  %v2615_v8 = vadd.f32 1.0, %v6936_v2 }
0x112e   :  { %v2614_v32 = vadd.f32 1.0, %v6938_v4 }
0x112f   :  { %6943 = vrcp.f32 %v2615_v8 }
0x1130   :  { %v6940_v3 = vpop.eup %6939  ;;  %6945 = vrcp.f32 %v2614_v32 }
0x1131   :  { %v6942_v30 = vpop.eup %6941  ;;  %v2617_v31 = vadd.f32 1.0, %v6940_v3 }
0x1132   :  { %v2616_v34 = vadd.f32 1.0, %v6942_v30 }
0x1133   :  { %6947 = vrcp.f32 %v2617_v31  ;;  %v7068_v31 = vmov 4  }
0x1134   :  { %6949 = vrcp.f32 %v2616_v34  ;;  %6864 = vset.pattern.permute.xlu1 %v7068_v31  ;;  %6863 = vset.pattern.permute.xlu0 %v7068_v31 }
0x1139   :  { %v6944_v35 = vpop.eup %6943 }
0x113a   :  { %v6946_v44 = vpop.eup %6945  ;;  %2990 = vst.msk [vmem:[#allocation2 + $0x8] sm:$0xff] %vm739_vm1, %v6944_v35 }
0x113b   :  { %2989 = vst.msk [vmem:[#allocation2] sm:$0xff] %vm739_vm1, %v6946_v44  ;;  %v6690_v43 = vpack.c.bf16 %v6944_v35, %v6946_v44 }
0x113d   :  { %v6948_v47 = vpop.eup %6947  ;;  %6691 = vmatprep.subr.bf16.mxu1 %v6690_v43 }
0x113e   :  { %v6950_v50 = vpop.eup %6949  ;;  %2992 = vst.msk [vmem:[#allocation2 + $0x18] sm:$0xff] %vm739_vm1, %v6948_v47  ;;  %6693 = vmatpush3.bf16.msra.mxu1 %v6690_v43 }
0x113f   :  { %2991 = vst.msk [vmem:[#allocation2 + $0x10] sm:$0xff] %vm739_vm1, %v6950_v50  ;;  %v6694_v49 = vpack.c.bf16 %v6948_v47, %v6950_v50 }
0x1141   :  { %6695 = vmatprep.subr.bf16.mxu1 %v6694_v49 }
0x1142   :  { %6697 = vmatpush3.bf16.msra.mxu1 %v6694_v49 }
0x1145   :  { %6276 = vmatmul.mubr.msk.f32.vlgmr.msra.gmra.mrb[36].mxu1 %vm56_vm0, %v7580_v40 }
0x1146   :  { %6278 = vmatprep.mubr.msk.f32.mxu1 %vm56_vm0, %v7587_v41 }
0x1149   :  { %6279 = vmatmul.mubr.msk.f32.gmra.mrb[38].mxu1 %vm56_vm0, %v7596_v42 }
0x114a   :  { %6303 = vmatprep.mubr.msk.f32.mxu1 %vm56_vm0, %v7552_v62 }
0x1218   :  { %v7827_v54 = vpop.f32.mrb[36].mxu1 }
0x1219   :  { %2999 = vrot.lane.b32.xlu1 %v7827_v54, %s7061_s29  ;;  %v7831_v55 = vpop.f32.mrb[37].mxu1 }
0x121a   :  { %v6698_v5 = vpack.c.bf16 %v7827_v54, %v7831_v55  ;;  %2997 = vrot.lane.b32.xlu0 %v7831_v55, %s7061_s29 }
0x121c   :  { %v7837_v56 = vpop.f32.mrb[38].mxu1  ;;  %6699 = vmatprep.subr.bf16.mxu0 %v6698_v5 }
0x121d   :  { %6701 = vmatpush3.bf16.msra.mxu0 %v6698_v5  ;;  %3003 = vrot.lane.b32.xlu1 %v7837_v56, %s7061_s29  ;;  %v7841_v61 = vpop.f32.mrb[39].mxu1 }
0x121e   :  { %v6702_v59 = vpack.c.bf16 %v7837_v56, %v7841_v61  ;;  %3001 = vrot.lane.b32.xlu0 %v7841_v61, %s7061_s29 }
0x1220   :  { %6703 = vmatprep.subr.bf16.mxu0 %v6702_v59 }
0x1221   :  { %6705 = vmatpush3.bf16.msra.mxu0 %v6702_v59 }
0x1222   :  { %6715 = vmatprep.subr.bf16.mxu0 %v7334_v19 }
0x1224   :  { %6290 = vmatmul.mubr.msk.f32.vlgmr.msra.gmra.mrb[40].mxu0 %vm56_vm0, %v7580_v40 }
0x1225   :  { %6292 = vmatprep.mubr.msk.f32.mxu0 %vm56_vm0, %v7587_v41  ;;  %6717 = vmatpush3.bf16.msra.mxu0 %v7334_v19 }
0x1226   :  { %6719 = vmatprep.subr.bf16.mxu0 %v7344_v24 }
0x1228   :  { %6293 = vmatmul.mubr.msk.f32.gmra.mrb[42].mxu0 %vm56_vm0, %v7596_v42 }
0x1229   :  { %6721 = vmatpush3.bf16.msra.mxu0 %v7344_v24 }
0x128b   :  { %v3000_v15 = vpop.permute.xlu1 %2999 }
0x128c   :  { %3010 = vst.msk [vmem:[#allocation2 + $0x8] sm:$0xff] %vm760_vm2, %v3000_v15  ;;  %v2998_v18 = vpop.permute.xlu0 %2997 }
0x128d   :  { %3009 = vst.msk [vmem:[#allocation2] sm:$0xff] %vm760_vm2, %v2998_v18 }
0x128f   :  { %v3004_v27 = vpop.permute.xlu1 %3003 }
0x1290   :  { %3012 = vst.msk [vmem:[#allocation2 + $0x18] sm:$0xff] %vm760_vm2, %v3004_v27  ;;  %v3002_v39 = vpop.permute.xlu0 %3001 }
0x1291   :  { %3011 = vst.msk [vmem:[#allocation2 + $0x10] sm:$0xff] %vm760_vm2, %v3002_v39  ;;  %v7912_v39 = vld [vmem:[%s8445_s1] sm:$0xff] }
0x12f7   :  { %v6291_v38 = vpop.f32.mrb[40].mxu0 }
0x12f8   :  { %v2889_v37 = vmul.f32 2.0, %v6291_v38  ;;  %v2869_v0 = vpop.f32.mrb[41].mxu0 }
0x12f9   :  { %v2888_v1 = vmul.f32 2.0, %v2869_v0 }
0x12fa   :  { %v2893_v57 = vsub.f32 %v2889_v37, %v6944_v35 }
0x12fb   :  { %v2892_v6 = vsub.f32 %v2888_v1, %v6946_v44  ;;  %v6294_v58 = vpop.f32.mrb[42].mxu0 }
0x12fc   :  { %v2891_v33 = vmul.f32 2.0, %v6294_v58  ;;  %3019 = vrot.lane.b32.xlu1 %v2893_v57, %s7062_s30  ;;  %v2879_v2 = vpop.f32.mrb[43].mxu0 }
0x12fd   :  { %v2890_v4 = vmul.f32 2.0, %v2879_v2  ;;  %3017 = vrot.lane.b32.xlu0 %v2892_v6, %s7062_s30  ;;  %v6706_v8 = vpack.c.bf16 %v2893_v57, %v2892_v6 }
0x12fe   :  { %v2895_v32 = vsub.f32 %v2891_v33, %v6948_v47 }
0x12ff   :  { %v2894_v3 = vsub.f32 %v2890_v4, %v6950_v50  ;;  %6707 = vmatprep.subr.bf16.mxu1 %v6706_v8 }
0x1300   :  { %6709 = vmatpush3.bf16.msra.mxu1 %v6706_v8  ;;  %3023 = vrot.lane.b32.xlu1 %v2895_v32, %s7062_s30 }
0x1301   :  { %3021 = vrot.lane.b32.xlu0 %v2894_v3, %s7062_s30  ;;  %v6710_v30 = vpack.c.bf16 %v2895_v32, %v2894_v3 }
0x1303   :  { %6711 = vmatprep.subr.bf16.mxu1 %v6710_v30 }
0x1304   :  { %6713 = vmatpush3.bf16.msra.mxu1 %v6710_v30 }
0x1307   :  { %6304 = vmatmul.mubr.msk.f32.vlgmr.msra.gmra.mrb[40].mxu1 %vm56_vm0, %v7580_v40 }
0x1308   :  { %6306 = vmatprep.mubr.msk.f32.mxu1 %vm56_vm0, %v7587_v41 }
0x130b   :  { %6307 = vmatmul.mubr.msk.f32.gmra.mrb[42].mxu1 %vm56_vm0, %v7596_v42 }
0x130c   :  { %6331 = vmatprep.mubr.msk.f32.mxu1 %vm56_vm0, %v7552_v62 }
0x136e   :  { %v3020_v34 = vpop.permute.xlu1 %3019 }
0x136f   :  { %3030 = vst.msk [vmem:[#allocation2 + $0x8] sm:$0xff] %vm781_vm3, %v3020_v34  ;;  %v3018_v35 = vpop.permute.xlu0 %3017 }
0x1370   :  { %3029 = vst.msk [vmem:[#allocation2] sm:$0xff] %vm781_vm3, %v3018_v35 }
0x1372   :  { %v3024_v44 = vpop.permute.xlu1 %3023 }
0x1373   :  { %3032 = vst.msk [vmem:[#allocation2 + $0x18] sm:$0xff] %vm781_vm3, %v3024_v44  ;;  %v3022_v40 = vpop.permute.xlu0 %3021 }
0x1374   :  { %3031 = vst.msk [vmem:[#allocation2 + $0x10] sm:$0xff] %vm781_vm3, %v3022_v40 }
0x13da   :  { %v6305_v41 = vpop.f32.mrb[40].mxu1 }
0x13db   :  { %v2982_v42 = vmul.f32 2.0, %v6305_v41  ;;  %v2962_v43 = vpop.f32.mrb[41].mxu1 }
0x13dc   :  { %v2981_v47 = vmul.f32 2.0, %v2962_v43 }
0x13dd   :  { %v2986_v62 = vsub.f32 %v2982_v42, %v7827_v54 }
0x13de   :  { %v2985_v50 = vsub.f32 %v2981_v47, %v7831_v55  ;;  %v6308_v49 = vpop.f32.mrb[42].mxu1 }
0x13df   :  { %v2984_v5 = vmul.f32 2.0, %v6308_v49  ;;  %3039 = vrot.lane.b32.xlu1 %v2986_v62, %s7064_s23  ;;  %v2972_v59 = vpop.f32.mrb[43].mxu1 }
0x13e0   :  { %v2983_v15 = vmul.f32 2.0, %v2972_v59  ;;  %3037 = vrot.lane.b32.xlu0 %v2985_v50, %s7064_s23 }
0x13e1   :  { %v2988_v18 = vsub.f32 %v2984_v5, %v7837_v56 }
0x13e2   :  { %v2987_v27 = vsub.f32 %v2983_v15, %v7841_v61 }
0x13e3   :  { %3043 = vrot.lane.b32.xlu1 %v2988_v18, %s7064_s23 }
0x13e4   :  { %3041 = vrot.lane.b32.xlu0 %v2987_v27, %s7064_s23 }
0x13e7   :  { %2631 = vperm.xlu1 %6864, %v7634_v17  }
0x13e8   :  { %2627 = vperm.xlu0 %6863, %v7640_v7  }
0x13eb   :  { %2647 = vperm.xlu1 %6864, %v7208_v11  }
0x13ec   :  { %2651 = vperm.xlu0 %6863, %v7206_v10  }
0x13ef   :  { %2671 = vperm.xlu1 %6864, %v7248_v22  }
0x13f0   :  { %2675 = vperm.xlu0 %6863, %v7245_v21  }
0x13f3   :  { %2635 = vperm.xlu1 %6864, %v7650_v9  }
0x13f4   :  { %2639 = vperm.xlu0 %6863, %v7656_v25  }
0x13f7   :  { %2655 = vperm.xlu1 %6864, %v7214_v14  }
0x13f8   :  { %2659 = vperm.xlu0 %6863, %v7212_v13  }
0x13fb   :  { %2695 = vperm.xlu1 %6864, %v7302_v46  }
0x13fc   :  { %2699 = vperm.xlu0 %6863, %v7299_v45  }
0x13ff   :  { %2679 = vperm.xlu1 %6864, %v7256_v29  }
0x1400   :  { %2683 = vperm.xlu0 %6863, %v7253_v28  }
0x1403   :  { %2703 = vperm.xlu1 %6864, %v7308_v52  }
0x1404   :  { %2707 = vperm.xlu0 %6863, %v7305_v51  }
0x1451   :  { %v3040_v17 = vpop.permute.xlu1 %3039 }
0x1452   :  { %3050 = vst.msk [vmem:[#allocation2 + $0x8] sm:$0xff] %vm802_vm4, %v3040_v17  ;;  %v3038_v7 = vpop.permute.xlu0 %3037 }
0x1453   :  { %3049 = vst.msk [vmem:[#allocation2] sm:$0xff] %vm802_vm4, %v3038_v7 }
0x1455   :  { %v3044_v9 = vpop.permute.xlu1 %3043 }
0x1456   :  { %3052 = vst.msk [vmem:[#allocation2 + $0x18] sm:$0xff] %vm802_vm4, %v3044_v9  ;;  %v3042_v25 = vpop.permute.xlu0 %3041 }
0x1457   :  { %3051 = vst.msk [vmem:[#allocation2 + $0x10] sm:$0xff] %vm802_vm4, %v3042_v25 }
0x1459   :  { %v3054_v55 = vld [vmem:[#allocation2 + $0x8] sm:$0xff] }
0x145a   :  { %v3053_v54 = vld [vmem:[#allocation2] sm:$0xff] }
0x145b   :  { %6317 = vmatprep.mubr.msk.f32.mxu0 %vm56_vm0, %v3053_v54 }
0x145c   :  { %6318 = vmatmul.mubr.msk.f32.vlgmr.msra.gmra.mrb[44].mxu0 %vm56_vm0, %v3054_v55 }
0x145d   :  { %v3056_v61 = vld [vmem:[#allocation2 + $0x18] sm:$0xff] }
0x145e   :  { %v3055_v56 = vld [vmem:[#allocation2 + $0x10] sm:$0xff] }
0x145f   :  { %6320 = vmatprep.mubr.msk.f32.mxu0 %vm56_vm0, %v3055_v56 }
0x1460   :  { %6321 = vmatmul.mubr.msk.f32.gmra.mrb[46].mxu0 %vm56_vm0, %v3056_v61 }
0x1461   :  { %6345 = vmatprep.mubr.msk.f32.mxu0 %vm56_vm0, %v7912_v39 }
0x1466   :  { %v2632_v37 = vpop.permute.xlu1 %2631 }
0x1467   :  { %v2628_v38 = vpop.permute.xlu0 %2627  ;;  %v2643_v30 = vmul.f32 %v2632_v37, %v7385_v20 }
0x1468   :  { %v2642_v35 = vmul.f32 %v2628_v38, %v7385_v20 }
0x146a   :  { %v2648_v1 = vpop.permute.xlu1 %2647 }
0x146b   :  { %v2652_v0 = vpop.permute.xlu0 %2651  ;;  %v2662_v44 = vmul.f32 %v2648_v1, %v7387_v23 }
0x146c   :  { %v2663_v31 = vmul.f32 %v2652_v0, %v7387_v23 }
0x146d   :  { %v2666_v50 = vadd.f32 %v2662_v44, %v2642_v35 }
0x146e   :  { %v2672_v6 = vpop.permute.xlu1 %2671  ;;  %v2667_v42 = vadd.f32 %v2663_v31, %v2643_v30 }
0x146f   :  { %v2676_v57 = vpop.permute.xlu0 %2675  ;;  %v2686_v41 = vmul.f32 %v2672_v6, %v7389_v26 }
0x1470   :  { %v2687_v40 = vmul.f32 %v2676_v57, %v7389_v26 }
0x1471   :  { %v2690_v7 = vadd.f32 %v2686_v41, %v2666_v50 }
0x1472   :  { %v2636_v33 = vpop.permute.xlu1 %2635  ;;  %v2691_v18 = vadd.f32 %v2687_v40, %v2667_v42 }
0x1473   :  { %v2640_v58 = vpop.permute.xlu0 %2639  ;;  %v2644_v49 = vmul.f32 %v2636_v33, %v7385_v20 }
0x1474   :  { %v2645_v43 = vmul.f32 %v2640_v58, %v7385_v20 }
0x1476   :  { %v2656_v4 = vpop.permute.xlu1 %2655 }
0x1477   :  { %v2660_v2 = vpop.permute.xlu0 %2659  ;;  %v2664_v5 = vmul.f32 %v2656_v4, %v7387_v23 }
0x1478   :  { %v2665_v47 = vmul.f32 %v2660_v2, %v7387_v23 }
0x1479   :  { %v2668_v56 = vadd.f32 %v2664_v5, %v2644_v49 }
0x147a   :  { %v2696_v32 = vpop.permute.xlu1 %2695  ;;  %v2669_v25 = vadd.f32 %v2665_v47, %v2645_v43 }
0x147b   :  { %v2700_v8 = vpop.permute.xlu0 %2699  ;;  %v2710_v59 = vmul.f32 %v2696_v32, %v7393_v36 }
0x147c   :  { %v2711_v62 = vmul.f32 %v2700_v8, %v7393_v36 }
0x147d   :  { %v2714_v37 = vadd.f32 %v2710_v59, %v2690_v7 }
0x147e   :  { %v2680_v34 = vpop.permute.xlu1 %2679  ;;  %v2715_v55 = vadd.f32 %v2711_v62, %v2691_v18 }
0x147f   :  { %v2684_v3 = vpop.permute.xlu0 %2683  ;;  %v2688_v9 = vmul.f32 %v2680_v34, %v7389_v26 }
0x1480   :  { %v2689_v27 = vmul.f32 %v2684_v3, %v7389_v26 }
0x1481   :  { %v2692_v6 = vadd.f32 %v2688_v9, %v2668_v56  ;;  %v7957_v56 = vld [vmem:[%s8445_s1 + $0x18] sm:$0xff] }
0x1482   :  { %v2704_v17 = vpop.permute.xlu1 %2703  ;;  %v2693_v0 = vadd.f32 %v2689_v27, %v2669_v25 }
0x1483   :  { %v2708_v15 = vpop.permute.xlu0 %2707  ;;  %v2712_v61 = vmul.f32 %v2704_v17, %v7393_v36 }
0x1484   :  { %v2713_v54 = vmul.f32 %v2708_v15, %v7393_v36 }
0x1485   :  { %v2716_v32 = vadd.f32 %v2712_v61, %v2692_v6 }
0x1486   :  { %v2717_v2 = vadd.f32 %v2713_v54, %v2693_v0  ;;  %v7943_v54 = vld [vmem:[%s8445_s1 + $0x8] sm:$0xff] }
0x152f   :  { %v6319_v38 = vpop.f32.mrb[44].mxu0 }
0x1530   :  { %v3155_v1 = vadd.f32 %v6319_v38, %v2715_v55  ;;  %v3135_v57 = vpop.f32.mrb[45].mxu0  ;;  %v7950_v55 = vld [vmem:[%s8445_s1 + $0x10] sm:$0xff] }
0x1531   :  { %v3154_v58 = vadd.f32 %v3135_v57, %v2714_v37 }
0x1532   :  { %v3159_v33 = vadd.f32 %v3155_v1, %v7414_v12 }
0x1533   :  { %v3158_v4 = vadd.f32 %v3154_v58, %v7414_v12  ;;  %v6322_v8 = vpop.f32.mrb[46].mxu0 }
0x1534   :  { %v5604_v3 = vmul.f32 -1.442695, %v3159_v33  ;;  %v3157_v30 = vadd.f32 %v6322_v8, %v2717_v2  ;;  %v3145_v31 = vpop.f32.mrb[47].mxu0 }
0x1535   :  { %v5603_v34 = vmul.f32 -1.442695, %v3158_v4  ;;  %v3156_v35 = vadd.f32 %v3145_v31, %v2716_v32 }
0x1536   :  { %6951 = vpow2.f32 %v5604_v3  ;;  %v3161_v44 = vadd.f32 %v3157_v30, %v7414_v12 }
0x1537   :  { %6953 = vpow2.f32 %v5603_v34  ;;  %v3160_v40 = vadd.f32 %v3156_v35, %v7414_v12 }
0x1538   :  { %v5606_v41 = vmul.f32 -1.442695, %v3161_v44 }
0x1539   :  { %v5605_v42 = vmul.f32 -1.442695, %v3160_v40 }
0x153a   :  { %6955 = vpow2.f32 %v5606_v41 }
0x153b   :  { %6957 = vpow2.f32 %v5605_v42 }
0x1540   :  { %v6952_v43 = vpop.eup %6951 }
0x1541   :  { %v6954_v47 = vpop.eup %6953  ;;  %v3175_v62 = vadd.f32 1.0, %v6952_v43 }
0x1542   :  { %v3174_v50 = vadd.f32 1.0, %v6954_v47 }
0x1543   :  { %6959 = vrcp.f32 %v3175_v62  ;;  %v7069_v62 = vmov 5  }
0x1544   :  { %v6956_v49 = vpop.eup %6955  ;;  %6961 = vrcp.f32 %v3174_v50  ;;  %6866 = vset.pattern.permute.xlu0 %v7069_v62  ;;  %6865 = vset.pattern.permute.xlu1 %v7069_v62 }
0x1545   :  { %v6958_v5 = vpop.eup %6957  ;;  %v3177_v59 = vadd.f32 1.0, %v6956_v49 }
0x1546   :  { %v3176_v15 = vadd.f32 1.0, %v6958_v5 }
0x1547   :  { %6963 = vrcp.f32 %v3177_v59 }
0x1548   :  { %6965 = vrcp.f32 %v3176_v15 }
0x154d   :  { %v6960_v18 = vpop.eup %6959 }
0x154e   :  { %v6962_v27 = vpop.eup %6961  ;;  %3550 = vst.msk [vmem:[#allocation2 + $0x8] sm:$0xff] %vm739_vm1, %v6960_v18 }
0x154f   :  { %3549 = vst.msk [vmem:[#allocation2] sm:$0xff] %vm739_vm1, %v6962_v27  ;;  %v6722_v17 = vpack.c.bf16 %v6960_v18, %v6962_v27 }
0x1551   :  { %v6964_v7 = vpop.eup %6963  ;;  %6723 = vmatprep.subr.bf16.mxu1 %v6722_v17 }
0x1552   :  { %v6966_v9 = vpop.eup %6965  ;;  %3552 = vst.msk [vmem:[#allocation2 + $0x18] sm:$0xff] %vm739_vm1, %v6964_v7  ;;  %6725 = vmatpush3.bf16.msra.mxu1 %v6722_v17 }
0x1553   :  { %3551 = vst.msk [vmem:[#allocation2 + $0x10] sm:$0xff] %vm739_vm1, %v6966_v9  ;;  %v6726_v25 = vpack.c.bf16 %v6964_v7, %v6966_v9 }
0x1555   :  { %6727 = vmatprep.subr.bf16.mxu1 %v6726_v25 }
0x1556   :  { %6729 = vmatpush3.bf16.msra.mxu1 %v6726_v25 }
0x1559   :  { %6332 = vmatmul.mubr.msk.f32.vlgmr.msra.gmra.mrb[44].mxu1 %vm56_vm0, %v7943_v54 }
0x155a   :  { %6334 = vmatprep.mubr.msk.f32.mxu1 %vm56_vm0, %v7950_v55 }
0x155d   :  { %6335 = vmatmul.mubr.msk.f32.gmra.mrb[46].mxu1 %vm56_vm0, %v7957_v56 }
0x155e   :  { %6359 = vmatprep.mubr.msk.f32.mxu1 %vm56_vm0, %v7912_v39 }
0x162c   :  { %v7963_v61 = vpop.f32.mrb[44].mxu1 }
0x162d   :  { %3559 = vrot.lane.b32.xlu0 %v7963_v61, %s7061_s29  ;;  %v7967_v38 = vpop.f32.mrb[45].mxu1 }
0x162e   :  { %v6730_v37 = vpack.c.bf16 %v7963_v61, %v7967_v38  ;;  %3557 = vrot.lane.b32.xlu1 %v7967_v38, %s7061_s29 }
0x1630   :  { %v7973_v0 = vpop.f32.mrb[46].mxu1  ;;  %6731 = vmatprep.subr.bf16.mxu0 %v6730_v37 }
0x1631   :  { %6733 = vmatpush3.bf16.msra.mxu0 %v6730_v37  ;;  %3563 = vrot.lane.b32.xlu0 %v7973_v0, %s7061_s29  ;;  %v7977_v1 = vpop.f32.mrb[47].mxu1 }
0x1632   :  { %v6734_v57 = vpack.c.bf16 %v7973_v0, %v7977_v1  ;;  %3561 = vrot.lane.b32.xlu1 %v7977_v1, %s7061_s29 }
0x1634   :  { %6735 = vmatprep.subr.bf16.mxu0 %v6734_v57 }
0x1635   :  { %6737 = vmatpush3.bf16.msra.mxu0 %v6734_v57 }
0x1636   :  { %6747 = vmatprep.subr.bf16.mxu0 %v7334_v19 }
0x1638   :  { %6346 = vmatmul.mubr.msk.f32.vlgmr.msra.gmra.mrb[48].mxu0 %vm56_vm0, %v7943_v54 }
0x1639   :  { %6348 = vmatprep.mubr.msk.f32.mxu0 %vm56_vm0, %v7950_v55  ;;  %6749 = vmatpush3.bf16.msra.mxu0 %v7334_v19 }
0x163a   :  { %6751 = vmatprep.subr.bf16.mxu0 %v7344_v24 }
0x163c   :  { %6349 = vmatmul.mubr.msk.f32.gmra.mrb[50].mxu0 %vm56_vm0, %v7957_v56 }
0x163d   :  { %6753 = vmatpush3.bf16.msra.mxu0 %v7344_v24 }
0x169f   :  { %v3560_v6 = vpop.permute.xlu0 %3559 }
0x16a0   :  { %3570 = vst.msk [vmem:[#allocation2 + $0x8] sm:$0xff] %vm760_vm2, %v3560_v6  ;;  %v3558_v58 = vpop.permute.xlu1 %3557 }
0x16a1   :  { %3569 = vst.msk [vmem:[#allocation2] sm:$0xff] %vm760_vm2, %v3558_v58 }
0x16a3   :  { %v3564_v33 = vpop.permute.xlu0 %3563 }
0x16a4   :  { %3572 = vst.msk [vmem:[#allocation2 + $0x18] sm:$0xff] %vm760_vm2, %v3564_v33  ;;  %v3562_v2 = vpop.permute.xlu1 %3561 }
0x16a5   :  { %3571 = vst.msk [vmem:[#allocation2 + $0x10] sm:$0xff] %vm760_vm2, %v3562_v2 }
0x170b   :  { %v6347_v4 = vpop.f32.mrb[48].mxu0 }
0x170c   :  { %v3449_v8 = vmul.f32 2.0, %v6347_v4  ;;  %v3429_v32 = vpop.f32.mrb[49].mxu0 }
0x170d   :  { %v3448_v3 = vmul.f32 2.0, %v3429_v32 }
0x170e   :  { %v3453_v30 = vsub.f32 %v3449_v8, %v6960_v18 }
0x170f   :  { %v3452_v31 = vsub.f32 %v3448_v3, %v6962_v27  ;;  %v6350_v34 = vpop.f32.mrb[50].mxu0 }
0x1710   :  { %v3451_v35 = vmul.f32 2.0, %v6350_v34  ;;  %3579 = vrot.lane.b32.xlu0 %v3453_v30, %s7062_s30  ;;  %v3439_v44 = vpop.f32.mrb[51].mxu0 }
0x1711   :  { %v3450_v40 = vmul.f32 2.0, %v3439_v44  ;;  %3577 = vrot.lane.b32.xlu1 %v3452_v31, %s7062_s30  ;;  %v6738_v41 = vpack.c.bf16 %v3453_v30, %v3452_v31 }
0x1712   :  { %v3455_v42 = vsub.f32 %v3451_v35, %v6964_v7 }
0x1713   :  { %v3454_v43 = vsub.f32 %v3450_v40, %v6966_v9  ;;  %6739 = vmatprep.subr.bf16.mxu1 %v6738_v41 }
0x1714   :  { %6741 = vmatpush3.bf16.msra.mxu1 %v6738_v41  ;;  %3583 = vrot.lane.b32.xlu0 %v3455_v42, %s7062_s30 }
0x1715   :  { %3581 = vrot.lane.b32.xlu1 %v3454_v43, %s7062_s30  ;;  %v6742_v47 = vpack.c.bf16 %v3455_v42, %v3454_v43 }
0x1717   :  { %6743 = vmatprep.subr.bf16.mxu1 %v6742_v47 }
0x1718   :  { %6745 = vmatpush3.bf16.msra.mxu1 %v6742_v47 }
0x171b   :  { %6360 = vmatmul.mubr.msk.f32.vlgmr.msra.gmra.mrb[48].mxu1 %vm56_vm0, %v7943_v54 }
0x171c   :  { %6362 = vmatprep.mubr.msk.f32.mxu1 %vm56_vm0, %v7950_v55 }
0x171f   :  { %6363 = vmatmul.mubr.msk.f32.gmra.mrb[50].mxu1 %vm56_vm0, %v7957_v56 }
0x1720   :  { %6387 = vmatprep.mubr.msk.f32.mxu1 %vm56_vm0, %v7912_v39 }
0x1782   :  { %v3580_v50 = vpop.permute.xlu0 %3579 }
0x1783   :  { %3590 = vst.msk [vmem:[#allocation2 + $0x8] sm:$0xff] %vm781_vm3, %v3580_v50  ;;  %v3578_v49 = vpop.permute.xlu1 %3577 }
0x1784   :  { %3589 = vst.msk [vmem:[#allocation2] sm:$0xff] %vm781_vm3, %v3578_v49 }
0x1786   :  { %v3584_v5 = vpop.permute.xlu0 %3583 }
0x1787   :  { %3592 = vst.msk [vmem:[#allocation2 + $0x18] sm:$0xff] %vm781_vm3, %v3584_v5  ;;  %v3582_v59 = vpop.permute.xlu1 %3581 }
0x1788   :  { %3591 = vst.msk [vmem:[#allocation2 + $0x10] sm:$0xff] %vm781_vm3, %v3582_v59 }
0x17ee   :  { %v6361_v15 = vpop.f32.mrb[48].mxu1 }
0x17ef   :  { %v3542_v18 = vmul.f32 2.0, %v6361_v15  ;;  %v3522_v27 = vpop.f32.mrb[49].mxu1 }
0x17f0   :  { %v3541_v17 = vmul.f32 2.0, %v3522_v27 }
0x17f1   :  { %v3546_v7 = vsub.f32 %v3542_v18, %v7963_v61  ;;  %v8024_v61 = vld [vmem:[%s8444_s0 + $0x8] sm:$0xff] }
0x17f2   :  { %v3545_v9 = vsub.f32 %v3541_v17, %v7967_v38  ;;  %v6364_v25 = vpop.f32.mrb[50].mxu1  ;;  %v8030_v38 = vld [vmem:[%s8444_s0] sm:$0xff] }
0x17f3   :  { %v3544_v37 = vmul.f32 2.0, %v6364_v25  ;;  %3599 = vrot.lane.b32.xlu0 %v3546_v7, %s7064_s23  ;;  %v3532_v57 = vpop.f32.mrb[51].mxu1 }
0x17f4   :  { %v3543_v6 = vmul.f32 2.0, %v3532_v57  ;;  %3597 = vrot.lane.b32.xlu1 %v3545_v9, %s7064_s23 }
0x17f5   :  { %v3548_v58 = vsub.f32 %v3544_v37, %v7973_v0  ;;  %v8038_v0 = vld [vmem:[%s8444_s0 + $0x10] sm:$0xff] }
0x17f6   :  { %v3547_v33 = vsub.f32 %v3543_v6, %v7977_v1  ;;  %v8048_v1 = vld [vmem:[%s8444_s0 + $0x18] sm:$0xff] }
0x17f7   :  { %3603 = vrot.lane.b32.xlu0 %v3548_v58, %s7064_s23 }
0x17f8   :  { %3601 = vrot.lane.b32.xlu1 %v3547_v33, %s7064_s23 }
0x17fb   :  { %3191 = vperm.xlu0 %6866, %v8024_v61  }
0x17fc   :  { %3187 = vperm.xlu1 %6865, %v8030_v38  }
0x17ff   :  { %3231 = vperm.xlu0 %6866, %v7248_v22  }
0x1800   :  { %3207 = vperm.xlu1 %6865, %v7208_v11  }
0x1803   :  { %3195 = vperm.xlu0 %6866, %v8038_v0  }
0x1804   :  { %3211 = vperm.xlu1 %6865, %v7206_v10  }
0x1807   :  { %3215 = vperm.xlu0 %6866, %v7214_v14  }
0x1808   :  { %3235 = vperm.xlu1 %6865, %v7245_v21  }
0x180b   :  { %3255 = vperm.xlu0 %6866, %v7302_v46  }
0x180c   :  { %3199 = vperm.xlu1 %6865, %v8048_v1  }
0x180f   :  { %3239 = vperm.xlu0 %6866, %v7256_v29  }
0x1810   :  { %3219 = vperm.xlu1 %6865, %v7212_v13  }
0x1813   :  { %3263 = vperm.xlu0 %6866, %v7308_v52  }
0x1814   :  { %3259 = vperm.xlu1 %6865, %v7299_v45  }
0x1818   :  { %3243 = vperm.xlu1 %6865, %v7253_v28  }
0x181c   :  { %3267 = vperm.xlu1 %6865, %v7305_v51  }
0x1865   :  { %v3600_v2 = vpop.permute.xlu0 %3599 }
0x1866   :  { %3610 = vst.msk [vmem:[#allocation2 + $0x8] sm:$0xff] %vm802_vm4, %v3600_v2  ;;  %v3598_v4 = vpop.permute.xlu1 %3597 }
0x1867   :  { %3609 = vst.msk [vmem:[#allocation2] sm:$0xff] %vm802_vm4, %v3598_v4 }
0x1869   :  { %v3604_v8 = vpop.permute.xlu0 %3603 }
0x186a   :  { %3612 = vst.msk [vmem:[#allocation2 + $0x18] sm:$0xff] %vm802_vm4, %v3604_v8  ;;  %v3602_v32 = vpop.permute.xlu1 %3601 }
0x186b   :  { %3611 = vst.msk [vmem:[#allocation2 + $0x10] sm:$0xff] %vm802_vm4, %v3602_v32 }
0x186d   :  { %v3614_v30 = vld [vmem:[#allocation2 + $0x8] sm:$0xff] }
0x186e   :  { %v3613_v3 = vld [vmem:[#allocation2] sm:$0xff] }
0x186f   :  { %6373 = vmatprep.mubr.msk.f32.mxu0 %vm56_vm0, %v3613_v3 }
0x1870   :  { %6374 = vmatmul.mubr.msk.f32.vlgmr.msra.gmra.mrb[52].mxu0 %vm56_vm0, %v3614_v30 }
0x1871   :  { %v3616_v34 = vld [vmem:[#allocation2 + $0x18] sm:$0xff] }
0x1872   :  { %v3615_v31 = vld [vmem:[#allocation2 + $0x10] sm:$0xff] }
0x1873   :  { %6376 = vmatprep.mubr.msk.f32.mxu0 %vm56_vm0, %v3615_v31 }
0x1874   :  { %6377 = vmatmul.mubr.msk.f32.gmra.mrb[54].mxu0 %vm56_vm0, %v3616_v34 }
0x1875   :  { %6401 = vmatprep.mubr.msk.f32.mxu0 %vm56_vm0, %v7912_v39 }
0x187a   :  { %v3192_v41 = vpop.permute.xlu0 %3191 }
0x187b   :  { %v3188_v35 = vpop.permute.xlu1 %3187  ;;  %v3203_v17 = vmul.f32 %v3192_v41, %v7385_v20 }
0x187c   :  { %v3202_v15 = vmul.f32 %v3188_v35, %v7385_v20 }
0x187e   :  { %v3232_v43 = vpop.permute.xlu0 %3231 }
0x187f   :  { %v3208_v44 = vpop.permute.xlu1 %3207  ;;  %v3246_v2 = vmul.f32 %v3232_v43, %v7389_v26 }
0x1880   :  { %v3222_v18 = vmul.f32 %v3208_v44, %v7387_v23 }
0x1882   :  { %v3196_v62 = vpop.permute.xlu0 %3195  ;;  %v3226_v37 = vadd.f32 %v3222_v18, %v3202_v15 }
0x1883   :  { %v3212_v40 = vpop.permute.xlu1 %3211  ;;  %v3204_v4 = vmul.f32 %v3196_v62, %v7385_v20 }
0x1884   :  { %v3223_v7 = vmul.f32 %v3212_v40, %v7387_v23  ;;  %v3250_v44 = vadd.f32 %v3246_v2, %v3226_v37 }
0x1886   :  { %v3216_v49 = vpop.permute.xlu0 %3215  ;;  %v3227_v57 = vadd.f32 %v3223_v7, %v3203_v17 }
0x1887   :  { %v3236_v42 = vpop.permute.xlu1 %3235  ;;  %v3224_v8 = vmul.f32 %v3216_v49, %v7387_v23 }
0x1888   :  { %v3247_v25 = vmul.f32 %v3236_v42, %v7389_v26 }
0x188a   :  { %v3256_v59 = vpop.permute.xlu0 %3255  ;;  %v3251_v30 = vadd.f32 %v3247_v25, %v3227_v57 }
0x188b   :  { %v3200_v47 = vpop.permute.xlu1 %3199  ;;  %v3270_v32 = vmul.f32 %v3256_v59, %v7393_v36 }
0x188c   :  { %v3205_v6 = vmul.f32 %v3200_v47, %v7385_v20  ;;  %v3228_v47 = vadd.f32 %v3224_v8, %v3204_v4 }
0x188e   :  { %v3240_v9 = vpop.permute.xlu0 %3239 }
0x188f   :  { %v3220_v50 = vpop.permute.xlu1 %3219  ;;  %v3248_v35 = vmul.f32 %v3240_v9, %v7389_v26 }
0x1890   :  { %v3225_v58 = vmul.f32 %v3220_v50, %v7387_v23  ;;  %v3274_v50 = vadd.f32 %v3270_v32, %v3250_v44 }
0x1891   :  { %v3252_v15 = vadd.f32 %v3248_v35, %v3228_v47 }
0x1892   :  { %v3264_v31 = vpop.permute.xlu0 %3263  ;;  %v3229_v40 = vadd.f32 %v3225_v58, %v3205_v6 }
0x1893   :  { %v3260_v5 = vpop.permute.xlu1 %3259  ;;  %v3272_v43 = vmul.f32 %v3264_v31, %v7393_v36 }
0x1894   :  { %v3271_v33 = vmul.f32 %v3260_v5, %v7393_v36 }
0x1895   :  { %v3276_v25 = vadd.f32 %v3272_v43, %v3252_v15 }
0x1896   :  { %v3275_v42 = vadd.f32 %v3271_v33, %v3251_v30 }
0x1897   :  { %v3244_v27 = vpop.permute.xlu1 %3243 }
0x1898   :  { %v3249_v34 = vmul.f32 %v3244_v27, %v7389_v26 }
0x189a   :  { %v3253_v49 = vadd.f32 %v3249_v34, %v3229_v40 }
0x189b   :  { %v3268_v3 = vpop.permute.xlu1 %3267 }
0x189c   :  { %v3273_v41 = vmul.f32 %v3268_v3, %v7393_v36 }
0x189e   :  { %v3277_v27 = vadd.f32 %v3273_v41, %v3253_v49 }
0x1943   :  { %v6375_v62 = vpop.f32.mrb[52].mxu0 }
0x1944   :  { %v3715_v5 = vadd.f32 %v6375_v62, %v3275_v42  ;;  %v3695_v59 = vpop.f32.mrb[53].mxu0 }
0x1945   :  { %v3714_v18 = vadd.f32 %v3695_v59, %v3274_v50 }
0x1946   :  { %v3719_v17 = vadd.f32 %v3715_v5, %v7414_v12 }
0x1947   :  { %v3718_v7 = vadd.f32 %v3714_v18, %v7414_v12  ;;  %v6378_v9 = vpop.f32.mrb[54].mxu0 }
0x1948   :  { %v5624_v37 = vmul.f32 -1.442695, %v3719_v17  ;;  %v3717_v57 = vadd.f32 %v6378_v9, %v3277_v27  ;;  %v3705_v6 = vpop.f32.mrb[55].mxu0 }
0x1949   :  { %v5623_v58 = vmul.f32 -1.442695, %v3718_v7  ;;  %v3716_v33 = vadd.f32 %v3705_v6, %v3276_v25 }
0x194a   :  { %6967 = vpow2.f32 %v5624_v37  ;;  %v3721_v2 = vadd.f32 %v3717_v57, %v7414_v12 }
0x194b   :  { %6969 = vpow2.f32 %v5623_v58  ;;  %v3720_v4 = vadd.f32 %v3716_v33, %v7414_v12 }
0x194c   :  { %v5626_v8 = vmul.f32 -1.442695, %v3721_v2 }
0x194d   :  { %v5625_v32 = vmul.f32 -1.442695, %v3720_v4 }
0x194e   :  { %6971 = vpow2.f32 %v5626_v8 }
0x194f   :  { %6973 = vpow2.f32 %v5625_v32 }
0x1954   :  { %v6968_v3 = vpop.eup %6967 }
0x1955   :  { %v6970_v30 = vpop.eup %6969  ;;  %v3735_v31 = vadd.f32 1.0, %v6968_v3 }
0x1956   :  { %v3734_v34 = vadd.f32 1.0, %v6970_v30 }
0x1957   :  { %6975 = vrcp.f32 %v3735_v31 }
0x1958   :  { %v6972_v35 = vpop.eup %6971  ;;  %6977 = vrcp.f32 %v3734_v34 }
0x1959   :  { %v6974_v44 = vpop.eup %6973  ;;  %v3737_v40 = vadd.f32 1.0, %v6972_v35 }
0x195a   :  { %v3736_v41 = vadd.f32 1.0, %v6974_v44 }
0x195b   :  { %6979 = vrcp.f32 %v3737_v40  ;;  %v7070_v40 = vmov 6  }
0x195c   :  { %6981 = vrcp.f32 %v3736_v41  ;;  %6868 = vset.pattern.permute.xlu1 %v7070_v40  ;;  %6867 = vset.pattern.permute.xlu0 %v7070_v40 }
0x1961   :  { %v6976_v42 = vpop.eup %6975 }
0x1962   :  { %v6978_v47 = vpop.eup %6977  ;;  %4110 = vst.msk [vmem:[#allocation2 + $0x8] sm:$0xff] %vm739_vm1, %v6976_v42 }
0x1963   :  { %4109 = vst.msk [vmem:[#allocation2] sm:$0xff] %vm739_vm1, %v6978_v47  ;;  %v6754_v43 = vpack.c.bf16 %v6976_v42, %v6978_v47 }
0x1965   :  { %v6980_v62 = vpop.eup %6979  ;;  %6755 = vmatprep.subr.bf16.mxu1 %v6754_v43 }
0x1966   :  { %v6982_v50 = vpop.eup %6981  ;;  %4112 = vst.msk [vmem:[#allocation2 + $0x18] sm:$0xff] %vm739_vm1, %v6980_v62  ;;  %6757 = vmatpush3.bf16.msra.mxu1 %v6754_v43 }
0x1967   :  { %4111 = vst.msk [vmem:[#allocation2 + $0x10] sm:$0xff] %vm739_vm1, %v6982_v50  ;;  %v6758_v49 = vpack.c.bf16 %v6980_v62, %v6982_v50 }
0x1969   :  { %6759 = vmatprep.subr.bf16.mxu1 %v6758_v49 }
0x196a   :  { %6761 = vmatpush3.bf16.msra.mxu1 %v6758_v49 }
0x196d   :  { %6388 = vmatmul.mubr.msk.f32.vlgmr.msra.gmra.mrb[52].mxu1 %vm56_vm0, %v7943_v54 }
0x196e   :  { %6390 = vmatprep.mubr.msk.f32.mxu1 %vm56_vm0, %v7950_v55 }
0x1971   :  { %6391 = vmatmul.mubr.msk.f32.gmra.mrb[54].mxu1 %vm56_vm0, %v7957_v56 }
0x1972   :  { %6415 = vmatprep.mubr.msk.f32.mxu1 %vm56_vm0, %v7912_v39 }
0x1a40   :  { %v8099_v5 = vpop.f32.mrb[52].mxu1 }
0x1a41   :  { %4119 = vrot.lane.b32.xlu1 %v8099_v5, %s7061_s29  ;;  %v8103_v59 = vpop.f32.mrb[53].mxu1 }
0x1a42   :  { %v6762_v15 = vpack.c.bf16 %v8099_v5, %v8103_v59  ;;  %4117 = vrot.lane.b32.xlu0 %v8103_v59, %s7061_s29 }
0x1a44   :  { %v8109_v18 = vpop.f32.mrb[54].mxu1  ;;  %6763 = vmatprep.subr.bf16.mxu0 %v6762_v15 }
0x1a45   :  { %6765 = vmatpush3.bf16.msra.mxu0 %v6762_v15  ;;  %4123 = vrot.lane.b32.xlu1 %v8109_v18, %s7061_s29  ;;  %v8113_v17 = vpop.f32.mrb[55].mxu1 }
0x1a46   :  { %v6766_v27 = vpack.c.bf16 %v8109_v18, %v8113_v17  ;;  %4121 = vrot.lane.b32.xlu0 %v8113_v17, %s7061_s29 }
0x1a48   :  { %6767 = vmatprep.subr.bf16.mxu0 %v6766_v27 }
0x1a49   :  { %6769 = vmatpush3.bf16.msra.mxu0 %v6766_v27 }
0x1a4a   :  { %6779 = vmatprep.subr.bf16.mxu0 %v7334_v19 }
0x1a4c   :  { %6402 = vmatmul.mubr.msk.f32.vlgmr.msra.gmra.mrb[56].mxu0 %vm56_vm0, %v7943_v54 }
0x1a4d   :  { %6404 = vmatprep.mubr.msk.f32.mxu0 %vm56_vm0, %v7950_v55  ;;  %6781 = vmatpush3.bf16.msra.mxu0 %v7334_v19 }
0x1a4e   :  { %6783 = vmatprep.subr.bf16.mxu0 %v7344_v24 }
0x1a50   :  { %6405 = vmatmul.mubr.msk.f32.gmra.mrb[58].mxu0 %vm56_vm0, %v7957_v56 }
0x1a51   :  { %6785 = vmatpush3.bf16.msra.mxu0 %v7344_v24 }
0x1ab3   :  { %v4120_v7 = vpop.permute.xlu1 %4119 }
0x1ab4   :  { %4130 = vst.msk [vmem:[#allocation2 + $0x8] sm:$0xff] %vm760_vm2, %v4120_v7  ;;  %v4118_v9 = vpop.permute.xlu0 %4117 }
0x1ab5   :  { %4129 = vst.msk [vmem:[#allocation2] sm:$0xff] %vm760_vm2, %v4118_v9 }
0x1ab7   :  { %v4124_v25 = vpop.permute.xlu1 %4123 }
0x1ab8   :  { %4132 = vst.msk [vmem:[#allocation2 + $0x18] sm:$0xff] %vm760_vm2, %v4124_v25  ;;  %v4122_v37 = vpop.permute.xlu0 %4121 }
0x1ab9   :  { %4131 = vst.msk [vmem:[#allocation2 + $0x10] sm:$0xff] %vm760_vm2, %v4122_v37 }
0x1b1f   :  { %v6403_v57 = vpop.f32.mrb[56].mxu0 }
0x1b20   :  { %v4009_v6 = vmul.f32 2.0, %v6403_v57  ;;  %v3989_v58 = vpop.f32.mrb[57].mxu0 }
0x1b21   :  { %v4008_v33 = vmul.f32 2.0, %v3989_v58 }
0x1b22   :  { %v4013_v2 = vsub.f32 %v4009_v6, %v6976_v42 }
0x1b23   :  { %v4012_v4 = vsub.f32 %v4008_v33, %v6978_v47  ;;  %v6406_v8 = vpop.f32.mrb[58].mxu0 }
0x1b24   :  { %v4011_v32 = vmul.f32 2.0, %v6406_v8  ;;  %4139 = vrot.lane.b32.xlu1 %v4013_v2, %s7062_s30  ;;  %v3999_v3 = vpop.f32.mrb[59].mxu0 }
0x1b25   :  { %v4010_v30 = vmul.f32 2.0, %v3999_v3  ;;  %4137 = vrot.lane.b32.xlu0 %v4012_v4, %s7062_s30  ;;  %v6770_v31 = vpack.c.bf16 %v4013_v2, %v4012_v4 }
0x1b26   :  { %v4015_v34 = vsub.f32 %v4011_v32, %v6980_v62 }
0x1b27   :  { %v4014_v35 = vsub.f32 %v4010_v30, %v6982_v50  ;;  %6771 = vmatprep.subr.bf16.mxu1 %v6770_v31 }
0x1b28   :  { %6773 = vmatpush3.bf16.msra.mxu1 %v6770_v31  ;;  %4143 = vrot.lane.b32.xlu1 %v4015_v34, %s7062_s30 }
0x1b29   :  { %4141 = vrot.lane.b32.xlu0 %v4014_v35, %s7062_s30  ;;  %v6774_v44 = vpack.c.bf16 %v4015_v34, %v4014_v35 }
0x1b2b   :  { %6775 = vmatprep.subr.bf16.mxu1 %v6774_v44 }
0x1b2c   :  { %6777 = vmatpush3.bf16.msra.mxu1 %v6774_v44 }
0x1b2f   :  { %6416 = vmatmul.mubr.msk.f32.vlgmr.msra.gmra.mrb[56].mxu1 %vm56_vm0, %v7943_v54 }
0x1b30   :  { %6418 = vmatprep.mubr.msk.f32.mxu1 %vm56_vm0, %v7950_v55 }
0x1b33   :  { %6419 = vmatmul.mubr.msk.f32.gmra.mrb[58].mxu1 %vm56_vm0, %v7957_v56 }
0x1b34   :  { %6443 = vmatprep.mubr.msk.f32.mxu1 %vm56_vm0, %v7912_v39 }
0x1b96   :  { %v4140_v41 = vpop.permute.xlu1 %4139 }
0x1b97   :  { %4150 = vst.msk [vmem:[#allocation2 + $0x8] sm:$0xff] %vm781_vm3, %v4140_v41  ;;  %v4138_v42 = vpop.permute.xlu0 %4137 }
0x1b98   :  { %4149 = vst.msk [vmem:[#allocation2] sm:$0xff] %vm781_vm3, %v4138_v42 }
0x1b9a   :  { %v4144_v47 = vpop.permute.xlu1 %4143 }
0x1b9b   :  { %4152 = vst.msk [vmem:[#allocation2 + $0x18] sm:$0xff] %vm781_vm3, %v4144_v47  ;;  %v4142_v43 = vpop.permute.xlu0 %4141 }
0x1b9c   :  { %4151 = vst.msk [vmem:[#allocation2 + $0x10] sm:$0xff] %vm781_vm3, %v4142_v43 }
0x1c02   :  { %v6417_v62 = vpop.f32.mrb[56].mxu1 }
0x1c03   :  { %v4102_v50 = vmul.f32 2.0, %v6417_v62  ;;  %v4082_v49 = vpop.f32.mrb[57].mxu1 }
0x1c04   :  { %v4101_v15 = vmul.f32 2.0, %v4082_v49 }
0x1c05   :  { %v4106_v27 = vsub.f32 %v4102_v50, %v8099_v5 }
0x1c06   :  { %v4105_v7 = vsub.f32 %v4101_v15, %v8103_v59  ;;  %v6420_v9 = vpop.f32.mrb[58].mxu1 }
0x1c07   :  { %v4104_v25 = vmul.f32 2.0, %v6420_v9  ;;  %4159 = vrot.lane.b32.xlu1 %v4106_v27, %s7064_s23  ;;  %v4092_v37 = vpop.f32.mrb[59].mxu1 }
0x1c08   :  { %v4103_v57 = vmul.f32 2.0, %v4092_v37  ;;  %4157 = vrot.lane.b32.xlu0 %v4105_v7, %s7064_s23 }
0x1c09   :  { %v4108_v6 = vsub.f32 %v4104_v25, %v8109_v18 }
0x1c0a   :  { %v4107_v58 = vsub.f32 %v4103_v57, %v8113_v17 }
0x1c0b   :  { %4163 = vrot.lane.b32.xlu1 %v4108_v6, %s7064_s23 }
0x1c0c   :  { %4161 = vrot.lane.b32.xlu0 %v4107_v58, %s7064_s23 }
0x1c0f   :  { %3751 = vperm.xlu1 %6868, %v8024_v61  }
0x1c10   :  { %3747 = vperm.xlu0 %6867, %v8030_v38  }
0x1c13   :  { %3767 = vperm.xlu1 %6868, %v7208_v11  }
0x1c14   :  { %3771 = vperm.xlu0 %6867, %v7206_v10  }
0x1c17   :  { %3791 = vperm.xlu1 %6868, %v7248_v22  }
0x1c18   :  { %3795 = vperm.xlu0 %6867, %v7245_v21  }
0x1c1b   :  { %3755 = vperm.xlu1 %6868, %v8038_v0  }
0x1c1c   :  { %3759 = vperm.xlu0 %6867, %v8048_v1  }
0x1c1f   :  { %3775 = vperm.xlu1 %6868, %v7214_v14  }
0x1c20   :  { %3779 = vperm.xlu0 %6867, %v7212_v13  }
0x1c23   :  { %3815 = vperm.xlu1 %6868, %v7302_v46  }
0x1c24   :  { %3819 = vperm.xlu0 %6867, %v7299_v45  }
0x1c27   :  { %3799 = vperm.xlu1 %6868, %v7256_v29  }
0x1c28   :  { %3803 = vperm.xlu0 %6867, %v7253_v28  }
0x1c2b   :  { %3823 = vperm.xlu1 %6868, %v7308_v52  }
0x1c2c   :  { %3827 = vperm.xlu0 %6867, %v7305_v51  }
0x1c79   :  { %v4160_v5 = vpop.permute.xlu1 %4159 }
0x1c7a   :  { %4170 = vst.msk [vmem:[#allocation2 + $0x8] sm:$0xff] %vm802_vm4, %v4160_v5  ;;  %v4158_v59 = vpop.permute.xlu0 %4157 }
0x1c7b   :  { %4169 = vst.msk [vmem:[#allocation2] sm:$0xff] %vm802_vm4, %v4158_v59 }
0x1c7d   :  { %v4164_v18 = vpop.permute.xlu1 %4163 }
0x1c7e   :  { %4172 = vst.msk [vmem:[#allocation2 + $0x18] sm:$0xff] %vm802_vm4, %v4164_v18  ;;  %v4162_v17 = vpop.permute.xlu0 %4161 }
0x1c7f   :  { %4171 = vst.msk [vmem:[#allocation2 + $0x10] sm:$0xff] %vm802_vm4, %v4162_v17 }
0x1c81   :  { %v4174_v2 = vld [vmem:[#allocation2 + $0x8] sm:$0xff] }
0x1c82   :  { %v4173_v33 = vld [vmem:[#allocation2] sm:$0xff] }
0x1c83   :  { %6429 = vmatprep.mubr.msk.f32.mxu0 %vm56_vm0, %v4173_v33 }
0x1c84   :  { %6430 = vmatmul.mubr.msk.f32.vlgmr.msra.gmra.mrb[60].mxu0 %vm56_vm0, %v4174_v2 }
0x1c85   :  { %v4176_v8 = vld [vmem:[#allocation2 + $0x18] sm:$0xff] }
0x1c86   :  { %v4175_v4 = vld [vmem:[#allocation2 + $0x10] sm:$0xff] }
0x1c87   :  { %6432 = vmatprep.mubr.msk.f32.mxu0 %vm56_vm0, %v4175_v4 }
0x1c88   :  { %6433 = vmatmul.mubr.msk.f32.gmra.mrb[62].mxu0 %vm56_vm0, %v4176_v8 }
0x1c89   :  { %6457 = vmatprep.mubr.msk.f32.mxu0 %vm56_vm0, %v7912_v39 }
0x1c8e   :  { %v3752_v3 = vpop.permute.xlu1 %3751 }
0x1c8f   :  { %v3748_v32 = vpop.permute.xlu0 %3747  ;;  %v3763_v50 = vmul.f32 %v3752_v3, %v7385_v20 }
0x1c90   :  { %v3762_v39 = vmul.f32 %v3748_v32, %v7385_v20 }
0x1c92   :  { %v3768_v31 = vpop.permute.xlu1 %3767 }
0x1c93   :  { %v3772_v30 = vpop.permute.xlu0 %3771  ;;  %v3782_v27 = vmul.f32 %v3768_v31, %v7387_v23 }
0x1c94   :  { %v3783_v49 = vmul.f32 %v3772_v30, %v7387_v23 }
0x1c95   :  { %v3786_v58 = vadd.f32 %v3782_v27, %v3762_v39 }
0x1c96   :  { %v3792_v35 = vpop.permute.xlu1 %3791  ;;  %v3787_v25 = vadd.f32 %v3783_v49, %v3763_v50 }
0x1c97   :  { %v3796_v34 = vpop.permute.xlu0 %3795  ;;  %v3806_v9 = vmul.f32 %v3792_v35, %v7389_v26 }
0x1c98   :  { %v3807_v7 = vmul.f32 %v3796_v34, %v7389_v26 }
0x1c99   :  { %v3810_v8 = vadd.f32 %v3806_v9, %v3786_v58 }
0x1c9a   :  { %v3756_v40 = vpop.permute.xlu1 %3755  ;;  %v3811_v33 = vadd.f32 %v3807_v7, %v3787_v25 }
0x1c9b   :  { %v3760_v44 = vpop.permute.xlu0 %3759  ;;  %v3764_v5 = vmul.f32 %v3756_v40, %v7385_v20 }
0x1c9c   :  { %v3765_v37 = vmul.f32 %v3760_v44, %v7385_v20 }
0x1c9e   :  { %v3776_v42 = vpop.permute.xlu1 %3775 }
0x1c9f   :  { %v3780_v41 = vpop.permute.xlu0 %3779  ;;  %v3784_v59 = vmul.f32 %v3776_v42, %v7387_v23 }
0x1ca0   :  { %v3785_v57 = vmul.f32 %v3780_v41, %v7387_v23 }
0x1ca1   :  { %v3788_v34 = vadd.f32 %v3784_v59, %v3764_v5 }
0x1ca2   :  { %v3816_v43 = vpop.permute.xlu1 %3815  ;;  %v3789_v3 = vadd.f32 %v3785_v57, %v3765_v37 }
0x1ca3   :  { %v3820_v47 = vpop.permute.xlu0 %3819  ;;  %v3830_v18 = vmul.f32 %v3816_v43, %v7393_v36 }
0x1ca4   :  { %v3831_v6 = vmul.f32 %v3820_v47, %v7393_v36 }
0x1ca5   :  { %v3834_v40 = vadd.f32 %v3830_v18, %v3810_v8 }
0x1ca6   :  { %v3800_v15 = vpop.permute.xlu1 %3799  ;;  %v3835_v31 = vadd.f32 %v3831_v6, %v3811_v33 }
0x1ca7   :  { %v3804_v62 = vpop.permute.xlu0 %3803  ;;  %v3808_v32 = vmul.f32 %v3800_v15, %v7389_v26 }
0x1ca8   :  { %v3809_v2 = vmul.f32 %v3804_v62, %v7389_v26 }
0x1ca9   :  { %v3812_v43 = vadd.f32 %v3808_v32, %v3788_v34 }
0x1caa   :  { %v3824_v4 = vpop.permute.xlu1 %3823  ;;  %v3813_v41 = vadd.f32 %v3809_v2, %v3789_v3 }
0x1cab   :  { %v3828_v17 = vpop.permute.xlu0 %3827  ;;  %v3832_v35 = vmul.f32 %v3824_v4, %v7393_v36 }
0x1cac   :  { %v3833_v30 = vmul.f32 %v3828_v17, %v7393_v36 }
0x1cad   :  { %v3836_v27 = vadd.f32 %v3832_v35, %v3812_v43 }
0x1cae   :  { %v3837_v49 = vadd.f32 %v3833_v30, %v3813_v41  ;;  %v7035_v41 = vld [vmem:[%s8445_s1] sm:$0xff] }
0x1d57   :  { %v6431_v44 = vpop.f32.mrb[60].mxu0 }
0x1d58   :  { %v4275_v42 = vadd.f32 %v6431_v44, %v3835_v31  ;;  %v4255_v47 = vpop.f32.mrb[61].mxu0 }
0x1d59   :  { %v4274_v50 = vadd.f32 %v4255_v47, %v3834_v40 }
0x1d5a   :  { %v4279_v62 = vadd.f32 %v4275_v42, %v7414_v12 }
0x1d5b   :  { %v4278_v39 = vadd.f32 %v4274_v50, %v7414_v12  ;;  %v6434_v15 = vpop.f32.mrb[62].mxu0 }
0x1d5c   :  { %v5644_v7 = vmul.f32 -1.442695, %v4279_v62  ;;  %v4277_v9 = vadd.f32 %v6434_v15, %v3837_v49  ;;  %v4265_v25 = vpop.f32.mrb[63].mxu0 }
0x1d5d   :  { %v5643_v37 = vmul.f32 -1.442695, %v4278_v39  ;;  %v4276_v57 = vadd.f32 %v4265_v25, %v3836_v27 }
0x1d5e   :  { %6983 = vpow2.f32 %v5644_v7  ;;  %v4281_v6 = vadd.f32 %v4277_v9, %v7414_v12 }
0x1d5f   :  { %6985 = vpow2.f32 %v5643_v37  ;;  %v4280_v58 = vadd.f32 %v4276_v57, %v7414_v12 }
0x1d60   :  { %v5646_v5 = vmul.f32 -1.442695, %v4281_v6 }
0x1d61   :  { %v5645_v59 = vmul.f32 -1.442695, %v4280_v58 }
0x1d62   :  { %6987 = vpow2.f32 %v5646_v5 }
0x1d63   :  { %6989 = vpow2.f32 %v5645_v59 }
0x1d68   :  { %v6984_v18 = vpop.eup %6983 }
0x1d69   :  { %v6986_v17 = vpop.eup %6985  ;;  %v4295_v33 = vadd.f32 1.0, %v6984_v18 }
0x1d6a   :  { %v4294_v2 = vadd.f32 1.0, %v6986_v17 }
0x1d6b   :  { %6991 = vrcp.f32 %v4295_v33 }
0x1d6c   :  { %v6988_v4 = vpop.eup %6987  ;;  %6993 = vrcp.f32 %v4294_v2 }
0x1d6d   :  { %v6990_v8 = vpop.eup %6989  ;;  %v4297_v32 = vadd.f32 1.0, %v6988_v4  ;;  %v7071_v4 = vmov 7  }
0x1d6e   :  { %v4296_v3 = vadd.f32 1.0, %v6990_v8  ;;  %6870 = vset.pattern.permute.xlu0 %v7071_v4  ;;  %6869 = vset.pattern.permute.xlu1 %v7071_v4 }
0x1d6f   :  { %6995 = vrcp.f32 %v4297_v32 }
0x1d70   :  { %6997 = vrcp.f32 %v4296_v3 }
0x1d75   :  { %v6992_v30 = vpop.eup %6991 }
0x1d76   :  { %v6994_v31 = vpop.eup %6993  ;;  %4670 = vst.msk [vmem:[#allocation2 + $0x8] sm:$0xff] %vm739_vm1, %v6992_v30 }
0x1d77   :  { %4669 = vst.msk [vmem:[#allocation2] sm:$0xff] %vm739_vm1, %v6994_v31  ;;  %v6786_v34 = vpack.c.bf16 %v6992_v30, %v6994_v31 }
0x1d79   :  { %v6996_v35 = vpop.eup %6995  ;;  %6787 = vmatprep.subr.bf16.mxu1 %v6786_v34 }
0x1d7a   :  { %v6998_v44 = vpop.eup %6997  ;;  %4672 = vst.msk [vmem:[#allocation2 + $0x18] sm:$0xff] %vm739_vm1, %v6996_v35  ;;  %6789 = vmatpush3.bf16.msra.mxu1 %v6786_v34 }
0x1d7b   :  { %4671 = vst.msk [vmem:[#allocation2 + $0x10] sm:$0xff] %vm739_vm1, %v6998_v44  ;;  %v6790_v40 = vpack.c.bf16 %v6996_v35, %v6998_v44 }
0x1d7d   :  { %6791 = vmatprep.subr.bf16.mxu1 %v6790_v40 }
0x1d7e   :  { %6793 = vmatpush3.bf16.msra.mxu1 %v6790_v40 }
0x1d81   :  { %6444 = vmatmul.mubr.msk.f32.vlgmr.msra.gmra.mrb[60].mxu1 %vm56_vm0, %v7943_v54 }
0x1d82   :  { %6446 = vmatprep.mubr.msk.f32.mxu1 %vm56_vm0, %v7950_v55 }
0x1d85   :  { %6447 = vmatmul.mubr.msk.f32.gmra.mrb[62].mxu1 %vm56_vm0, %v7957_v56 }
0x1d86   :  { %6471 = vmatprep.mubr.msk.f32.mxu1 %vm56_vm0, %v7035_v41 }
0x1e54   :  { %v8217_v42 = vpop.f32.mrb[60].mxu1 }
0x1e55   :  { %4679 = vrot.lane.b32.xlu0 %v8217_v42, %s7061_s29  ;;  %v8221_v47 = vpop.f32.mrb[61].mxu1 }
0x1e56   :  { %v6794_v43 = vpack.c.bf16 %v8217_v42, %v8221_v47  ;;  %4677 = vrot.lane.b32.xlu1 %v8221_v47, %s7061_s29 }
0x1e58   :  { %v8227_v50 = vpop.f32.mrb[62].mxu1  ;;  %6795 = vmatprep.subr.bf16.mxu0 %v6794_v43 }
0x1e59   :  { %6797 = vmatpush3.bf16.msra.mxu0 %v6794_v43  ;;  %4683 = vrot.lane.b32.xlu0 %v8227_v50, %s7061_s29  ;;  %v8231_v62 = vpop.f32.mrb[63].mxu1 }
0x1e5a   :  { %v6798_v49 = vpack.c.bf16 %v8227_v50, %v8231_v62  ;;  %4681 = vrot.lane.b32.xlu1 %v8231_v62, %s7061_s29 }
0x1e5c   :  { %6799 = vmatprep.subr.bf16.mxu0 %v6798_v49 }
0x1e5d   :  { %6801 = vmatpush3.bf16.msra.mxu0 %v6798_v49 }
0x1e5e   :  { %6811 = vmatprep.subr.bf16.mxu0 %v7334_v19 }
0x1e60   :  { %6458 = vmatmul.mubr.msk.f32.vlgmr.msra.gmra.mrb[64].mxu0 %vm56_vm0, %v7943_v54 }
0x1e61   :  { %6460 = vmatprep.mubr.msk.f32.mxu0 %vm56_vm0, %v7950_v55  ;;  %6813 = vmatpush3.bf16.msra.mxu0 %v7334_v19 }
0x1e62   :  { %6815 = vmatprep.subr.bf16.mxu0 %v7344_v24 }
0x1e64   :  { %6461 = vmatmul.mubr.msk.f32.gmra.mrb[66].mxu0 %vm56_vm0, %v7957_v56 }
0x1e65   :  { %6817 = vmatpush3.bf16.msra.mxu0 %v7344_v24 }
0x1ec7   :  { %v4680_v39 = vpop.permute.xlu0 %4679 }
0x1ec8   :  { %4690 = vst.msk [vmem:[#allocation2 + $0x8] sm:$0xff] %vm760_vm2, %v4680_v39  ;;  %v4678_v15 = vpop.permute.xlu1 %4677 }
0x1ec9   :  { %4689 = vst.msk [vmem:[#allocation2] sm:$0xff] %vm760_vm2, %v4678_v15 }
0x1ecb   :  { %v4684_v27 = vpop.permute.xlu0 %4683 }
0x1ecc   :  { %4692 = vst.msk [vmem:[#allocation2 + $0x18] sm:$0xff] %vm760_vm2, %v4684_v27  ;;  %v4682_v7 = vpop.permute.xlu1 %4681 }
0x1ecd   :  { %4691 = vst.msk [vmem:[#allocation2 + $0x10] sm:$0xff] %vm760_vm2, %v4682_v7 }
0x1f33   :  { %v6459_v19 = vpop.f32.mrb[64].mxu0 }
0x1f34   :  { %v4569_v9 = vmul.f32 2.0, %v6459_v19  ;;  %v4549_v25 = vpop.f32.mrb[65].mxu0 }
0x1f35   :  { %v4568_v37 = vmul.f32 2.0, %v4549_v25 }
0x1f36   :  { %v4573_v57 = vsub.f32 %v4569_v9, %v6992_v30 }
0x1f37   :  { %v4572_v6 = vsub.f32 %v4568_v37, %v6994_v31  ;;  %v6462_v58 = vpop.f32.mrb[66].mxu0 }
0x1f38   :  { %v4571_v24 = vmul.f32 2.0, %v6462_v58  ;;  %4699 = vrot.lane.b32.xlu0 %v4573_v57, %s7062_s30  ;;  %v4559_v5 = vpop.f32.mrb[67].mxu0 }
0x1f39   :  { %v4570_v59 = vmul.f32 2.0, %v4559_v5  ;;  %4697 = vrot.lane.b32.xlu1 %v4572_v6, %s7062_s30  ;;  %v6802_v18 = vpack.c.bf16 %v4573_v57, %v4572_v6 }
0x1f3a   :  { %v4575_v17 = vsub.f32 %v4571_v24, %v6996_v35 }
0x1f3b   :  { %v4574_v33 = vsub.f32 %v4570_v59, %v6998_v44  ;;  %6803 = vmatprep.subr.bf16.mxu1 %v6802_v18 }
0x1f3c   :  { %6805 = vmatpush3.bf16.msra.mxu1 %v6802_v18  ;;  %4703 = vrot.lane.b32.xlu0 %v4575_v17, %s7062_s30 }
0x1f3d   :  { %4701 = vrot.lane.b32.xlu1 %v4574_v33, %s7062_s30  ;;  %v6806_v2 = vpack.c.bf16 %v4575_v17, %v4574_v33 }
0x1f3f   :  { %6807 = vmatprep.subr.bf16.mxu1 %v6806_v2 }
0x1f40   :  { %6809 = vmatpush3.bf16.msra.mxu1 %v6806_v2 }
0x1f43   :  { %6472 = vmatmul.mubr.msk.f32.vlgmr.msra.gmra.mrb[64].mxu1 %vm56_vm0, %v7943_v54 }
0x1f44   :  { %6474 = vmatprep.mubr.msk.f32.mxu1 %vm56_vm0, %v7950_v55 }
0x1f47   :  { %6475 = vmatmul.mubr.msk.f32.gmra.mrb[66].mxu1 %vm56_vm0, %v7957_v56 }
0x1faa   :  { %v4700_v8 = vpop.permute.xlu0 %4699 }
0x1fab   :  { %4710 = vst.msk [vmem:[#allocation2 + $0x8] sm:$0xff] %vm781_vm3, %v4700_v8  ;;  %v4698_v32 = vpop.permute.xlu1 %4697 }
0x1fac   :  { %4709 = vst.msk [vmem:[#allocation2] sm:$0xff] %vm781_vm3, %v4698_v32 }
0x1fae   :  { %v4704_v3 = vpop.permute.xlu0 %4703 }
0x1faf   :  { %4712 = vst.msk [vmem:[#allocation2 + $0x18] sm:$0xff] %vm781_vm3, %v4704_v3  ;;  %v4702_v30 = vpop.permute.xlu1 %4701 }
0x1fb0   :  { %4711 = vst.msk [vmem:[#allocation2 + $0x10] sm:$0xff] %vm781_vm3, %v4702_v30 }
0x2016   :  { %v6473_v54 = vpop.f32.mrb[64].mxu1 }
0x2017   :  { %v4662_v55 = vmul.f32 2.0, %v6473_v54  ;;  %v4642_v31 = vpop.f32.mrb[65].mxu1 }
0x2018   :  { %v4661_v34 = vmul.f32 2.0, %v4642_v31 }
0x2019   :  { %v4666_v56 = vsub.f32 %v4662_v55, %v8217_v42 }
0x201a   :  { %v4665_v35 = vsub.f32 %v4661_v34, %v8221_v47  ;;  %v6476_v44 = vpop.f32.mrb[66].mxu1 }
0x201b   :  { %v4664_v40 = vmul.f32 2.0, %v6476_v44  ;;  %4719 = vrot.lane.b32.xlu0 %v4666_v56, %s7064_s23  ;;  %v4652_v41 = vpop.f32.mrb[67].mxu1 }
0x201c   :  { %v4663_v43 = vmul.f32 2.0, %v4652_v41  ;;  %4717 = vrot.lane.b32.xlu1 %v4665_v35, %s7064_s23 }
0x201d   :  { %v4668_v49 = vsub.f32 %v4664_v40, %v8227_v50 }
0x201e   :  { %v4667_v39 = vsub.f32 %v4663_v43, %v8231_v62 }
0x201f   :  { %4723 = vrot.lane.b32.xlu0 %v4668_v49, %s7064_s23 }
0x2020   :  { %4721 = vrot.lane.b32.xlu1 %v4667_v39, %s7064_s23 }
0x2023   :  { %4327 = vperm.xlu0 %6870, %v7208_v11  }
0x2024   :  { %4307 = vperm.xlu1 %6869, %v8030_v38  }
0x2027   :  { %4351 = vperm.xlu0 %6870, %v7248_v22  }
0x2028   :  { %4311 = vperm.xlu1 %6869, %v8024_v61  }
0x202b   :  { %4315 = vperm.xlu0 %6870, %v8038_v0  }
0x202c   :  { %4331 = vperm.xlu1 %6869, %v7206_v10  }
0x202f   :  { %4375 = vperm.xlu0 %6870, %v7302_v46  }
0x2030   :  { %4355 = vperm.xlu1 %6869, %v7245_v21  }
0x2033   :  { %4339 = vperm.xlu0 %6870, %v7212_v13  }
0x2034   :  { %4335 = vperm.xlu1 %6869, %v7214_v14  }
0x2037   :  { %4359 = vperm.xlu0 %6870, %v7256_v29  }
0x2038   :  { %4319 = vperm.xlu1 %6869, %v8048_v1  }
0x203b   :  { %4383 = vperm.xlu0 %6870, %v7308_v52  }
0x203c   :  { %4379 = vperm.xlu1 %6869, %v7299_v45   ;;  %v4870_v45 = vld [vmem:[%s8451_s7] sm:$0xff] }
0x203d   :  { %6491 = vmatprep.subr.mxu1 %v4870_v45 }
0x203e   :  { %6492 = vmatpush3.msra.mxu1 %v4870_v45 }
0x203f   :  { %6872 = vset.pattern.permute.xlu0 %v7065_v53 }
0x2040   :  { %4363 = vperm.xlu1 %6869, %v7253_v28  }
0x2044   :  { %4387 = vperm.xlu1 %6869, %v7305_v51  }
0x2048   :  { %6871 = vset.pattern.permute.xlu1 %v7063_v63 }
0x208d   :  { %v4720_v10 = vpop.permute.xlu0 %4719 }
0x208e   :  { %4730 = vst.msk [vmem:[#allocation2 + $0x8] sm:$0xff] %vm802_vm4, %v4720_v10  ;;  %v4718_v11 = vpop.permute.xlu1 %4717 }
0x208f   :  { %4729 = vst.msk [vmem:[#allocation2] sm:$0xff] %vm802_vm4, %v4718_v11 }
0x2091   :  { %v4724_v13 = vpop.permute.xlu0 %4723 }
0x2092   :  { %4732 = vst.msk [vmem:[#allocation2 + $0x18] sm:$0xff] %vm802_vm4, %v4724_v13  ;;  %v4722_v14 = vpop.permute.xlu1 %4721 }
0x2093   :  { %4731 = vst.msk [vmem:[#allocation2 + $0x10] sm:$0xff] %vm802_vm4, %v4722_v14 }
0x2095   :  { %v4734_v22 = vld [vmem:[#allocation2 + $0x8] sm:$0xff] }
0x2096   :  { %v4733_v21 = vld [vmem:[#allocation2] sm:$0xff] }
0x2097   :  { %6485 = vmatprep.mubr.msk.f32.mxu0 %vm56_vm0, %v4733_v21 }
0x2098   :  { %6486 = vmatmul.mubr.msk.f32.vlgmr.msra.gmra.mrb[68].mxu0 %vm56_vm0, %v4734_v22 }
0x2099   :  { %v4736_v29 = vld [vmem:[#allocation2 + $0x18] sm:$0xff] }
0x209a   :  { %v4735_v28 = vld [vmem:[#allocation2 + $0x10] sm:$0xff] }
0x209b   :  { %6488 = vmatprep.mubr.msk.f32.mxu0 %vm56_vm0, %v4735_v28 }
0x209c   :  { %6489 = vmatmul.mubr.msk.f32.gmra.mrb[70].mxu0 %vm56_vm0, %v4736_v29 }
0x20a2   :  { %v4328_v61 = vpop.permute.xlu0 %4327 }
0x20a3   :  { %v4308_v46 = vpop.permute.xlu1 %4307  ;;  %v4342_v27 = vmul.f32 %v4328_v61, %v7387_v23 }
0x20a4   :  { %v4322_v7 = vmul.f32 %v4308_v46, %v7385_v20 }
0x20a6   :  { %v4352_v0 = vpop.permute.xlu0 %4351  ;;  %v4346_v6 = vadd.f32 %v4342_v27, %v4322_v7  ;;  %v4866_v7 = vld [vmem:[%s8446_s2] sm:$0xff] }
0x20a7   :  { %v4312_v51 = vpop.permute.xlu1 %4311  ;;  %v4366_v58 = vmul.f32 %v4352_v0, %v7389_v26  ;;  %6507 = vmatprep.mubr.msk.f32.mxu0 %vm56_vm0, %v4866_v7 }
0x20a8   :  { %v4323_v9 = vmul.f32 %v4312_v51, %v7385_v20 }
0x20a9   :  { %v4370_v30 = vadd.f32 %v4366_v58, %v4346_v6 }
0x20aa   :  { %v4316_v42 = vpop.permute.xlu0 %4315 }
0x20ab   :  { %v4332_v52 = vpop.permute.xlu1 %4331  ;;  %v4324_v24 = vmul.f32 %v4316_v42, %v7385_v20 }
0x20ac   :  { %v4343_v25 = vmul.f32 %v4332_v52, %v7387_v23 }
0x20ae   :  { %v4376_v50 = vpop.permute.xlu0 %4375  ;;  %v4347_v59 = vadd.f32 %v4343_v25, %v4323_v9 }
0x20af   :  { %v4356_v38 = vpop.permute.xlu1 %4355  ;;  %v4390_v33 = vmul.f32 %v4376_v50, %v7393_v36 }
0x20b0   :  { %v4367_v57 = vmul.f32 %v4356_v38, %v7389_v26 }
0x20b1   :  { %v4394_v44 = vadd.f32 %v4390_v33, %v4370_v30 }
0x20b2   :  { %v4340_v15 = vpop.permute.xlu0 %4339  ;;  %v4371_v4 = vadd.f32 %v4367_v57, %v4347_v59  ;;  %v4869_v59 = vld [vmem:[%s8446_s2 + $0x18] sm:$0xff] }
0x20b3   :  { %v4336_v1 = vpop.permute.xlu1 %4335  ;;  %v4345_v8 = vmul.f32 %v4340_v15, %v7387_v23 }
0x20b4   :  { %v4344_v5 = vmul.f32 %v4336_v1, %v7387_v23 }
0x20b6   :  { %v4360_v37 = vpop.permute.xlu0 %4359  ;;  %v4348_v54 = vadd.f32 %v4344_v5, %v4324_v24  ;;  %v4867_v24 = vld [vmem:[%s8446_s2 + $0x8] sm:$0xff]  ;;  %v4868_v5 = vld [vmem:[%s8446_s2 + $0x10] sm:$0xff] }
0x20b7   :  { %v4320_v47 = vpop.permute.xlu1 %4319  ;;  %v4368_v55 = vmul.f32 %v4360_v37, %v7389_v26 }
0x20b8   :  { %v4325_v18 = vmul.f32 %v4320_v47, %v7385_v20 }
0x20b9   :  { %v4372_v49 = vadd.f32 %v4368_v55, %v4348_v54 }
0x20ba   :  { %v4384_v32 = vpop.permute.xlu0 %4383  ;;  %v4349_v31 = vadd.f32 %v4345_v8, %v4325_v18  ;;  %v5671_v18 = vld [vmem:[%s8452_s8] ss:$0 sm:$0xff] }
0x20bb   :  { %v4380_v62 = vpop.permute.xlu1 %4379  ;;  %v4392_v20 = vmul.f32 %v4384_v32, %v7393_v36 }
0x20bc   :  { %v4391_v17 = vmul.f32 %v4380_v62, %v7393_v36 }
0x20be   :  { %v4395_v56 = vadd.f32 %v4391_v17, %v4371_v4 }
0x20bf   :  { %v4364_v19 = vpop.permute.xlu1 %4363 }
0x20c0   :  { %v4369_v3 = vmul.f32 %v4364_v19, %v7389_v26  ;;  %v4396_v26 = vadd.f32 %v4392_v20, %v4372_v49  ;;  %v5076_v19 = vld [vmem:[%s8453_s9] sm:$0xff] }
0x20c1   :  { %6513 = vmatprep.subr.mxu1 %v5076_v19 }
0x20c2   :  { %v4373_v40 = vadd.f32 %v4369_v3, %v4349_v31 }
0x20c3   :  { %v4388_v2 = vpop.permute.xlu1 %4387 }
0x20c4   :  { %v4393_v34 = vmul.f32 %v4388_v2, %v7393_v36 }
0x20c6   :  { %v4397_v10 = vadd.f32 %v4393_v34, %v4373_v40 }
0x216b   :  { %v6487_v35 = vpop.f32.mrb[68].mxu0 }
0x216c   :  { %v4835_v41 = vadd.f32 %v6487_v35, %v4395_v56  ;;  %v4815_v43 = vpop.f32.mrb[69].mxu0 }
0x216d   :  { %v4834_v23 = vadd.f32 %v4815_v43, %v4394_v44  ;;  %v5680_v43 = vld [vmem:[%s8454_s10] ss:$0 sm:$0xff] }
0x216e   :  { %v4839_v39 = vadd.f32 %v4835_v41, %v7414_v12 }
0x216f   :  { %v4838_v11 = vadd.f32 %v4834_v23, %v7414_v12  ;;  %v6490_v13 = vpop.f32.mrb[70].mxu0 }
0x2170   :  { %v5664_v14 = vmul.f32 -1.442695, %v4839_v39  ;;  %v4837_v21 = vadd.f32 %v6490_v13, %v4397_v10  ;;  %v4825_v22 = vpop.f32.mrb[71].mxu0 }
0x2171   :  { %v5663_v28 = vmul.f32 -1.442695, %v4838_v11  ;;  %v4836_v29 = vadd.f32 %v4825_v22, %v4396_v26 }
0x2172   :  { %6999 = vpow2.f32 %v5664_v14  ;;  %v4841_v36 = vadd.f32 %v4837_v21, %v7414_v12 }
0x2173   :  { %7001 = vpow2.f32 %v5663_v28  ;;  %v4840_v45 = vadd.f32 %v4836_v29, %v7414_v12 }
0x2174   :  { %v5666_v46 = vmul.f32 -1.442695, %v4841_v36  ;;  %v7072_v36 = vmov 0.0|0.0  }
0x2175   :  { %v5665_v51 = vmul.f32 -1.442695, %v4840_v45 }
0x2176   :  { %7003 = vpow2.f32 %v5666_v46 }
0x2177   :  { %7005 = vpow2.f32 %v5665_v51 }
0x217c   :  { %v7000_v52 = vpop.eup %6999 }
0x217d   :  { %v7002_v61 = vpop.eup %7001  ;;  %v4855_v38 = vadd.f32 1.0, %v7000_v52 }
0x217e   :  { %v4854_v0 = vadd.f32 1.0, %v7002_v61  ;;  %v5686_v61 = vld [vmem:[%s8455_s11 + $0x28] sm:$0xff] }
0x2180   :  { %v7004_v1 = vpop.eup %7003  ;;  %7007 = vrcp.f32 %v4854_v0  ;;  %v5689_v0 = vld [vmem:[%s8455_s11 + $0x40] sm:$0xff] }
0x2181   :  { %v7006_v42 = vpop.eup %7005  ;;  %7009 = vrcp.f32 %v4855_v38  ;;  %v4857_v47 = vadd.f32 1.0, %v7004_v1 }
0x2182   :  { %v4856_v50 = vadd.f32 1.0, %v7006_v42 }
0x2184   :  { %7011 = vrcp.f32 %v4856_v50 }
0x2185   :  { %7013 = vrcp.f32 %v4857_v47 }
0x218a   :  { %v7008_v62 = vpop.eup %7007 }
0x218b   :  { %v7010_v15 = vpop.eup %7009  ;;  %6493 = vmatprep.mubr.msk.f32.mxu1 %vm739_vm1, %v7008_v62  ;;  %v5694_v62 = vld [vmem:[%s8455_s11 + $0x68] sm:$0xff] }
0x218c   :  { %6494 = vmatmul.mubr.msk.f32.vlgmr.msra.gmra.mrb[68].mxu1 %vm739_vm1, %v7010_v15 }
0x218d   :  { %6514 = vmatpush3.msra.mxu1 %v5076_v19 }
0x218e   :  { %v7012_v12 = vpop.eup %7011  ;;  %6834 = vmatprep.subr.bf16.mxu1 %v7072_v36 }
0x218f   :  { %v7014_v27 = vpop.eup %7013  ;;  %6496 = vmatprep.mubr.msk.f32.mxu1 %vm739_vm1, %v7012_v12 }
0x2190   :  { %6497 = vmatmul.mubr.msk.f32.gmra.mrb[70].mxu1 %vm739_vm1, %v7014_v27 }
0x225f   :  { %v6495_v9 = vpop.f32.mrb[68].mxu1 }
0x2260   :  { %v4949_v25 = vpop.f32.mrb[69].mxu1 }
0x2261   :  { %v6818_v37 = vpack.c.bf16 %v6495_v9, %v4949_v25 }
0x2263   :  { %v6498_v57 = vpop.f32.mrb[70].mxu1  ;;  %6819 = vmatprep.subr.bf16.mxu0 %v6818_v37 }
0x2264   :  { %v4959_v6 = vpop.f32.mrb[71].mxu1  ;;  %6821 = vmatpush3.bf16.msra.mxu0 %v6818_v37 }
0x2265   :  { %v6822_v58 = vpack.c.bf16 %v6498_v57, %v4959_v6 }
0x2267   :  { %6823 = vmatprep.subr.bf16.mxu0 %v6822_v58 }
0x2268   :  { %6825 = vmatpush3.bf16.msra.mxu0 %v6822_v58 }
0x226b   :  { %6508 = vmatmul.mubr.msk.f32.vlgmr.msra.gmra.mrb[72].mxu0 %vm56_vm0, %v4867_v24 }
0x226c   :  { %6510 = vmatprep.mubr.msk.f32.mxu0 %vm56_vm0, %v4868_v5 }
0x226f   :  { %6511 = vmatmul.mubr.msk.f32.gmra.mrb[74].mxu0 %vm56_vm0, %v4869_v59 }
0x2270   :  { %6529 = vmatprep.mubr.msk.f32.mxu0 %vm56_vm0, %v4866_v7  ;;  %v5693_v7 = vld [vmem:[%s8455_s11 + $0x60] sm:$0xff] }
0x233e   :  { %v6509_v17 = vpop.f32.mrb[72].mxu0 }
0x233f   :  { %v5059_v33 = vadd.f32 %v6509_v17, %v5671_v18  ;;  %v5053_v2 = vpop.f32.mrb[73].mxu0 }
0x2340   :  { %v5054_v4 = vadd.f32 %v5671_v18, %v5053_v2  ;;  %v5688_v2 = vld [vmem:[%s8455_s11 + $0x38] sm:$0xff] }
0x2341   :  { %v5073_v3 = vmax.f32 %v5059_v33, 0.0 }
0x2342   :  { %v5072_v8 = vmax.f32 %v5054_v4, 0.0  ;;  %v6512_v32 = vpop.f32.mrb[74].mxu0  ;;  %v5273_v4 = vld [vmem:[%s8455_s11 + $0x18] sm:$0xff] }
0x2343   :  { %v5069_v30 = vadd.f32 %v6512_v32, %v5671_v18  ;;  %v5063_v54 = vpop.f32.mrb[75].mxu0 }
0x2344   :  { %v5064_v55 = vadd.f32 %v5671_v18, %v5063_v54  ;;  %6515 = vmatprep.mubr.msk.f32.mxu1 %vm739_vm1, %v5072_v8  ;;  %v5272_v54 = vld [vmem:[%s8455_s11 + $0x10] sm:$0xff] }
0x2345   :  { %6516 = vmatmul.mubr.msk.f32.vlgmr.msra.gmra.mrb[72].mxu1 %vm739_vm1, %v5073_v3  ;;  %v5075_v34 = vmax.f32 %v5069_v30, 0.0  ;;  %v5692_v3 = vld [vmem:[%s8455_s11 + $0x58] sm:$0xff] }
0x2346   :  { %v5074_v31 = vmax.f32 %v5064_v55, 0.0 }
0x2348   :  { %6518 = vmatprep.mubr.msk.f32.mxu1 %vm739_vm1, %v5074_v31  ;;  %v5687_v31 = vld [vmem:[%s8455_s11 + $0x30] sm:$0xff] }
0x2349   :  { %6519 = vmatmul.mubr.msk.f32.gmra.mrb[74].mxu1 %vm739_vm1, %v5075_v34  ;;  %v5691_v34 = vld [vmem:[%s8455_s11 + $0x50] sm:$0xff] }
0x234a   :  { %6543 = vmatprep.mubr.msk.f32.mxu1 %vm7073_vm5, %v7060_v16  ;;  %v5690_v16 = vld [vmem:[%s8455_s11 + $0x48] sm:$0xff] }
0x2418   :  { %v6517_v56 = vpop.f32.mrb[72].mxu1 }
0x2419   :  { %v5155_v20 = vpop.f32.mrb[73].mxu1 }
0x241a   :  { %v6826_v35 = vpack.c.bf16 %v6517_v56, %v5155_v20 }
0x241c   :  { %v6520_v44 = vpop.f32.mrb[74].mxu1  ;;  %6827 = vmatprep.subr.bf16.mxu0 %v6826_v35 }
0x241d   :  { %v5165_v40 = vpop.f32.mrb[75].mxu1  ;;  %6829 = vmatpush3.bf16.msra.mxu0 %v6826_v35 }
0x241e   :  { %v6830_v41 = vpack.c.bf16 %v6520_v44, %v5165_v40 }
0x2420   :  { %6831 = vmatprep.subr.bf16.mxu0 %v6830_v41 }
0x2421   :  { %6833 = vmatpush3.bf16.msra.mxu0 %v6830_v41 }
0x2424   :  { %6530 = vmatmul.mubr.msk.f32.vlgmr.msra.gmra.mrb[76].mxu0 %vm56_vm0, %v4867_v24 }
0x2425   :  { %6532 = vmatprep.mubr.msk.f32.mxu0 %vm56_vm0, %v4868_v5 }
0x2428   :  { %6533 = vmatmul.mubr.msk.f32.gmra.mrb[78].mxu0 %vm56_vm0, %v4869_v59 }
0x24f7   :  { %v6531_v49 = vpop.f32.mrb[76].mxu0 }
0x24f8   :  { %v5253_v23 = vadd.f32 %v6531_v49, %v5680_v43  ;;  %v5247_v39 = vpop.f32.mrb[77].mxu0 }
0x24f9   :  { %v5248_v11 = vadd.f32 %v5680_v43, %v5247_v39  ;;  %v5695_v39 = vld [vmem:[%s8455_s11 + $0x70] sm:$0xff] }
0x24fa   :  { %v5267_v10 = vmax.f32 %v5253_v23, 0.0 }
0x24fb   :  { %v6534_v13 = vpop.f32.mrb[78].mxu0  ;;  %v5266_v21 = vmax.f32 %v5248_v11, 0.0 }
0x24fc   :  { %5308 = vperm.xlu0 %6872, %v5267_v10   ;;  %5281 = vperm.xlu1 %6871, %v5267_v10   ;;  %v5257_v26 = vpop.f32.mrb[79].mxu0  ;;  %v5263_v14 = vadd.f32 %v6534_v13, %v5680_v43 }
0x24fd   :  { %v5258_v28 = vadd.f32 %v5680_v43, %v5257_v26  ;;  %v5696_v43 = vld [vmem:[%s8455_s11 + $0x78] sm:$0xff] }
0x24fe   :  { %v5269_v22 = vmax.f32 %v5263_v14, 0.0 }
0x24ff   :  { %v5268_v29 = vmax.f32 %v5258_v28, 0.0 }
0x2500   :  { %6875 = vset.pattern.permute.xlu0 %v7063_v63  ;;  %6873 = vset.pattern.permute.xlu1 %v7066_v60 }
0x2501   :  { %5337 = vperm.xlu1 %6873, %v5267_v10   ;;  %5276 = vperm.xlu0 %6875, %v5266_v21  }
0x2505   :  { %6874 = vset.pattern.permute.xlu1 %v7067_v48  ;;  %6880 = vset.pattern.permute.xlu0 %v7065_v53 }
0x2506   :  { %5366 = vperm.xlu1 %6874, %v5267_v10   ;;  %5316 = vperm.xlu0 %6880, %v5269_v22  }
0x250a   :  { %6876 = vset.pattern.permute.xlu1 %v7065_v53  ;;  %6882 = vset.pattern.permute.xlu0 %v7063_v63 }
0x250b   :  { %5304 = vperm.xlu1 %6876, %v5266_v21   ;;  %5286 = vperm.xlu0 %6882, %v5268_v29  }
0x250f   :  { %6877 = vset.pattern.permute.xlu1 %v7066_v60  ;;  %6884 = vset.pattern.permute.xlu0 %v7066_v60 }
0x2510   :  { %5333 = vperm.xlu1 %6877, %v5266_v21   ;;  %5341 = vperm.xlu0 %6884, %v5268_v29  }
0x2514   :  { %6878 = vset.pattern.permute.xlu1 %v7067_v48  ;;  %6886 = vset.pattern.permute.xlu0 %v7067_v48 }
0x2515   :  { %5362 = vperm.xlu1 %6878, %v5266_v21   ;;  %5374 = vperm.xlu0 %6886, %v5269_v22  }
0x2519   :  { %6879 = vset.pattern.permute.xlu1 %v7063_v63 }
0x251a   :  { %5291 = vperm.xlu1 %6879, %v5269_v22  }
0x251e   :  { %6881 = vset.pattern.permute.xlu1 %v7066_v60  ;;  %v5685_v60 = vld [vmem:[%s8455_s11 + $0x20] sm:$0xff] }
0x251f   :  { %5345 = vperm.xlu1 %6881, %v5269_v22  }
0x2523   :  { %6883 = vset.pattern.permute.xlu1 %v7065_v53  ;;  %v5271_v53 = vld [vmem:[%s8455_s11 + $0x8] sm:$0xff] }
0x2524   :  { %5312 = vperm.xlu1 %6883, %v5268_v29  }
0x2528   :  { %6885 = vset.pattern.permute.xlu1 %v7067_v48  ;;  %v5270_v48 = vld [vmem:[%s8455_s11] sm:$0xff]  ;;  %s7074_s11 = smov [#allocation3]  }
0x2529   :  { %5370 = vperm.xlu1 %6885, %v5268_v29   ;;  %v5385_v29 = vld [vmem:[%s8457_s13] sm:$0x3] }
0x257b   :  { %v5282_v45 = vpop.permute.xlu1 %5281  ;;  %v5309_v52 = vpop.permute.xlu0 %5308 }
0x257c   :  { %v5320_v1 = vmul.f32 %v5686_v61, %v5309_v52  ;;  %v5295_v42 = vmul.f32 %v5282_v45, %v5271_v53 }
0x257e   :  { %v5324_v19 = vadd.f32 %v5320_v1, %v5295_v42 }
0x2580   :  { %v5338_v46 = vpop.permute.xlu1 %5337  ;;  %v5277_v38 = vpop.permute.xlu0 %5276 }
0x2581   :  { %v5349_v15 = vmul.f32 %v5690_v16, %v5338_v46  ;;  %v5294_v12 = vmul.f32 %v5277_v38, %v5270_v48 }
0x2583   :  { %v5353_v6 = vadd.f32 %v5349_v15, %v5324_v19 }
0x2585   :  { %v5367_v51 = vpop.permute.xlu1 %5366  ;;  %v5317_v37 = vpop.permute.xlu0 %5316 }
0x2586   :  { %v5378_v9 = vmul.f32 %v5694_v62, %v5367_v51  ;;  %v5322_v30 = vmul.f32 %v5688_v2, %v5317_v37 }
0x2588   :  { %v5382_v5 = vadd.f32 %v5378_v9, %v5353_v6 }
0x258a   :  { %v5305_v63 = vpop.permute.xlu1 %5304  ;;  %v5287_v33 = vpop.permute.xlu0 %5286 }
0x258b   :  { %v5319_v47 = vmul.f32 %v5685_v60, %v5305_v63  ;;  %v5296_v35 = vmul.f32 %v5287_v33, %v5272_v54 }
0x258d   :  { %v5323_v25 = vadd.f32 %v5319_v47, %v5294_v12 }
0x258f   :  { %v5334_v50 = vpop.permute.xlu1 %5333  ;;  %v5342_v32 = vpop.permute.xlu0 %5341 }
0x2590   :  { %v5348_v27 = vmul.f32 %v5689_v0, %v5334_v50  ;;  %v5350_v41 = vmul.f32 %v5691_v34, %v5342_v32 }
0x2592   :  { %v5352_v58 = vadd.f32 %v5348_v27, %v5323_v25 }
0x2594   :  { %v5363_v57 = vpop.permute.xlu1 %5362  ;;  %v5375_v49 = vpop.permute.xlu0 %5374 }
0x2595   :  { %v5377_v24 = vmul.f32 %v5693_v7, %v5363_v57  ;;  %v5380_v26 = vmul.f32 %v5696_v43, %v5375_v49 }
0x2597   :  { %v5381_v59 = vadd.f32 %v5377_v24, %v5352_v58 }
0x2599   :  { %v6835_v18 = vpack.c.bf16 %v5382_v5, %v5381_v59  ;;  %v5292_v17 = vpop.permute.xlu1 %5291 }
0x259a   :  { %v5297_v55 = vmul.f32 %v5292_v17, %v5273_v4 }
0x259b   :  { %6836 = vmatpush3.bf16.msra.mxu1 %v6835_v18 }
0x259c   :  { %6837 = vmatprep.subr.bf16.mxu1 %v7072_v36  ;;  %v5326_v40 = vadd.f32 %v5322_v30, %v5297_v55  ;;  %v5697_v36 = vld [vmem:[%s8456_s12] ss:$0 sm:$0xff]  ;;  %s5487_s12 = sshll.u32 %s7074_s11, 4  ;;  %s5488_s12 = int_to_ptr.vmem [resolvable:$true] %s5487_s12 }
0x259d   :  { %s7036_s13 = scalar_lea.vmem %s5488_s12, 32  ;;  %p7041_p1 = scmp.lt.s32.totalorder %s5488_s12, %s5488_s12 }
0x259e   :  { %v5346_v8 = vpop.permute.xlu1 %5345  ;;  %p7037_p0 = scmp.ne.s32.totalorder %s5488_s12, %s7036_s13  ;;  %p7042_p2 = scmp.lt.s32.totalorder %s7036_s13, %s7036_s13 }
0x259f   :  { %v5351_v56 = vmul.f32 %v5692_v3, %v5346_v8 }
0x25a0   :  { %p7043_p3 = por %p7042_p2, %p7041_p1 }
0x25a1   :  { %v5355_v10 = vadd.f32 %v5351_v56, %v5326_v40 }
0x25a2   :  { %p7044_p4 = pnand %p7043_p3, %p7037_p0 }
0x25a3   :  { %v5313_v20 = vpop.permute.xlu1 %5312  ;;  %v5384_v21 = vadd.f32 %v5380_v26, %v5355_v10 }
0x25a4   :  { %v5321_v44 = vmul.f32 %v5687_v31, %v5313_v20 }
0x25a6   :  { %v5325_v23 = vadd.f32 %v5321_v44, %v5296_v35 }
0x25a8   :  { %v5371_v11 = vpop.permute.xlu1 %5370  ;;  %v5354_v13 = vadd.f32 %v5350_v41, %v5325_v23 }
0x25a9   :  { %v5379_v14 = vmul.f32 %v5695_v39, %v5371_v11 }
0x25ab   :  { %v5383_v22 = vadd.f32 %v5379_v14, %v5354_v13 }
0x25ad   :  { %v6838_v28 = vpack.c.bf16 %v5384_v21, %v5383_v22 }
0x25af   :  { %6839 = vmatpush3.bf16.msra.mxu1 %v6838_v28 }
0x25b2   :  { %6544 = vmatmul.mubr.msk.f32.vlgmr.msra.gmra.mrb[76].mxu1 %vm56_vm0, %v5385_v29 }
0x2685   :  { %v5462_v45 = vpop.f32.mrb[76].mxu1 }
0x2686   :  { %v5463_v46 = vadd.f32 %v5697_v36, %v5462_v45  ;;  %v6545_v51 = vpop.f32.mrb[77].mxu1 }
0x2688   :  { %v5467_v52 = vsel %vm5466_vm6, %v5463_v46, -inf }
0x2689   :  { %5468 = vmax.xlane.f32.xlu1 %v5467_v52 }
0x2716   :  { %v5469_v63 = vpop.xlane.xlu1 %5468 }
0x2717   :  { %v5470_v61 = vsub.f32 %v5463_v46, %v5469_v63 }
0x2719   :  { %v5471_v53 = vmul.f32 1.442695, %v5470_v61 }
0x271b   :  { %7015 = vpow2.f32 %v5471_v53 }
0x2725   :  { %v7016_v60 = vpop.eup %7015 }
0x2726   :  { %v5473_v16 = vsel %vm5466_vm6, %v7016_v60, 0.0 }
0x2727   :  { %5474 = vadd.xlane.f32.xlu0 %v5473_v16 }
0x27b4   :  { %v5475_v48 = vpop.xlane.xlu0 %5474 }
0x27b5   :  { %7017 = vlog2.f32 %v5475_v48 }
0x27bf   :  { %v7018_v38 = vpop.eup %7017 }
0x27c0   :  { %v5477_v0 = vmul.f32 0.6931472, %v7018_v38 }
0x27c2   :  { %v5478_v1 = vadd.f32 %v5477_v0, %v5469_v63 }
0x27c4   :  { %v5479_v42 = vsub.f32 %v5463_v46, %v5478_v1 }
0x27c6   :  { %5480 = vst.msk [vmem:[#allocation3] sm:$0x3] %vm5466_vm6, %v5479_v42 }
0x27c7   :  { %7047 = shalt.err (!%p7044_p4)
}
0x27c8   :  { %s7048_s1 = scalar_lea.hbm %s8458_s14, 32 }
0x27c9   :  { %p7049_p5 = scmp.ne.s32.totalorder %s8458_s14, %s7048_s1  ;;  %p7052_p6 = scmp.lt.u32.totalorder %s7048_s1, %s8458_s14 }
0x27cb   :  { %p7054_p7 = pnand %p7052_p6, %p7049_p5 }
0x27cd   :  { %7057 = shalt.err (!%p7054_p7)
}
0x27ce   :  { %5490 = dma.vmem_to_hbm [thread:$0]  %s5488_s12, 32, %s8458_s14, [#allocation4]  }
0x27cf   :  { %7058 = dma.done.wait [#allocation4], 32  }
0x27d0   :  { %7059 = vsyncadd [#allocation4], 4294967264 }
0x27d1   :  { %5494 = vsyncpa [#allocation4], 1 }

</bundles_post_ra>
